<compile_context>
chip_gen: v5e
topology: v5e:2x2
jax: 0.10.0
libtpu: 0.0.40
codegen_flags: <defaults>
</compile_context>

<pallas_src>
import functools

import jax
import jax.numpy as jnp
from jax import lax
from jax.experimental import pallas as pl
from jax.experimental.pallas import tpu as pltpu

# ---- hyperparameters (scaled-down but structurally identical to the
#      reference: block_size=256, n_embd=384, n_head=6, n_layer=6) ----
VOCAB_SIZE = 128
BLOCK_SIZE = 32          # max context length
N_EMBD = 128
N_HEAD = 4
N_LAYER = 2
HEAD_SIZE = N_EMBD // N_HEAD
LN_EPS = 1e-5

# Explicit VMEM cap (review: v7x has 64 MiB physical, 32 MiB scoped default).
VMEM_LIMIT_BYTES = 32 * 1024 * 1024


# ----------------------------------------------------------------------
# in-kernel helpers
# ----------------------------------------------------------------------
def _ln(x, g, b):
    mu = jnp.mean(x, axis=-1, keepdims=True)
    xc = x - mu
    var = jnp.mean(xc * xc, axis=-1, keepdims=True)
    return xc * lax.rsqrt(var + LN_EPS) * g + b


# ----------------------------------------------------------------------
# fused transformer-block kernel (one grid step per Bblk batch elements)
# ----------------------------------------------------------------------
def _block_kernel(x_ref, ln1_g_ref, ln1_b_ref, wqkv_ref, wo_ref, bo_ref,
                  ln2_g_ref, ln2_b_ref, w1_ref, b1_ref, w2_ref, b2_ref,
                  cos_ref, sin_ref, o_ref, *, n_head, head_size, scale):
    bblk, T, D = x_ref.shape
    M = bblk * T

    x = x_ref[...].reshape(M, D)                        # f32 residual stream

    # ---- LN1 (f32) then fused QKV matmul on the MXU (bf16 x bf16 -> f32).
    #      Columns are [wq | wk | wv | wq@R | wk@R]; R = RoPE pair rotation,
    #      folded into the weights once in prepare_params.
    xn = _ln(x, ln1_g_ref[...], ln1_b_ref[...])
    qkv = jnp.dot(xn.astype(jnp.bfloat16), wqkv_ref[...],
                  preferred_element_type=jnp.float32)   # (M, 5D) f32
    qkv = qkv.reshape(bblk, T, 5 * D)

    # ---- RoPE epilogue: pure elementwise (f32), interleaved (even,odd) pairs,
    #      full n_embd width, applied before the head split (matches ref).
    cos = cos_ref[...]                                  # (T, D)
    sin = sin_ref[...]
    q = qkv[:, :, 0 * D:1 * D] * cos + qkv[:, :, 3 * D:4 * D] * sin
    k = qkv[:, :, 1 * D:2 * D] * cos + qkv[:, :, 4 * D:5 * D] * sin
    v = qkv[:, :, 2 * D:3 * D]                          # (Bblk, T, D) each

    qb = q.astype(jnp.bfloat16)
    kb = k.astype(jnp.bfloat16)
    vb = v.astype(jnp.bfloat16)

    # ---- causal attention: per-head batched score matmuls, then ONE fused
    #      mask / max / exp / reciprocal pass over all heads at once.
    row = lax.broadcasted_iota(jnp.int32, (T, T), 0)
    col = lax.broadcasted_iota(jnp.int32, (T, T), 1)
    causal = col <= row
    s_list = []
    for h in range(n_head):                             # static unroll, H tiny
        sl = slice(h * head_size, (h + 1) * head_size)
        s_list.append(jnp.einsum('bqd,bkd->bqk', qb[:, :, sl], kb[:, :, sl],
                                 preferred_element_type=jnp.float32))
    s = jnp.concatenate(s_list, axis=0) * scale         # (H*Bblk, T, T) f32
    s = jnp.where(causal, s, -1e30)                     # finite mask (no NaNs)
    s = s - jnp.max(s, axis=-1, keepdims=True)
    p = jnp.exp(s)
    p = p * pl.reciprocal(jnp.sum(p, axis=-1, keepdims=True), approx=True)
    pb = p.astype(jnp.bfloat16)

    # ---- per-head PV, accumulated straight through the matching wo rows:
    #      no head concat, every intermediate stays lane-dense (M, D).
    wo = wo_ref[...]                                    # (D, D) bf16
    x1 = x + bo_ref[...]                                # residual + proj bias
    for h in range(n_head):
        sl = slice(h * head_size, (h + 1) * head_size)
        ph = pb[h * bblk:(h + 1) * bblk]                # (Bblk, T, T)
        out_h = jnp.einsum('bqk,bkd->bqd', ph, vb[:, :, sl],
                           preferred_element_type=jnp.float32)   # (Bblk,T,Hs)
        x1 = x1 + jnp.dot(out_h.reshape(M, head_size).astype(jnp.bfloat16),
                          wo[sl, :], preferred_element_type=jnp.float32)

    # ---- LN2 + MLP (ReLU) + residual ----
    x1n = _ln(x1, ln2_g_ref[...], ln2_b_ref[...])
    h1 = jnp.maximum(
        jnp.dot(x1n.astype(jnp.bfloat16), w1_ref[...],
                preferred_element_type=jnp.float32) + b1_ref[...], 0.0)
    ff = jnp.dot(h1.astype(jnp.bfloat16), w2_ref[...],
                 preferred_element_type=jnp.float32) + b2_ref[...]
    o_ref[...] = (x1 + ff).reshape(bblk, T, D)


def _pick_bblk(B, T, target_rows=256):
    """Batch elements folded into each grid step (matmul M = bblk*T rows),
    preferring >= 2 grid steps so both v7x TensorCores get work."""
    divs = [d for d in range(1, B + 1) if B % d == 0]
    ok = [d for d in divs if d * T <= target_rows] or [1]
    bblk = max(ok)
    two_step = [d for d in ok if B // d >= 2]
    if B // bblk < 2 and two_step:
        bblk = max(two_step)
    return bblk


def _pick_row_tile(M, target_rows=512):
    """Row tile for the lm_head grid: multiple of 8 (or full M), >= 2 steps."""
    divs = [d for d in range(1, M + 1) if M % d == 0 and (d % 8 == 0 or d == M)]
    ok = [d for d in divs if d <= target_rows] or [divs[-1]]
    tm = max(ok)
    two_step = [d for d in ok if M // d >= 2]
    if M // tm < 2 and two_step:
        tm = max(two_step)
    return tm


def transformer_block(x, blk, cos_r, sin_r, bblk):
    """x: (B, T, D) -> (B, T, D); one fused pallas_call for the whole block."""
    B, T, D = x.shape
    kernel = functools.partial(_block_kernel, n_head=N_HEAD,
                               head_size=HEAD_SIZE, scale=HEAD_SIZE ** (-0.5))

    def shared(shape):
        # Constant-index operands (weights / biases / RoPE tables): the block
        # index never changes so Pallas does not re-fetch them per grid step.
        return pl.BlockSpec(shape, lambda b: (0,) * len(shape))

    return pl.pallas_call(
        kernel,
        out_shape=jax.ShapeDtypeStruct((B, T, D), jnp.float32),
        grid=(B // bblk,),
        in_specs=[
            pl.BlockSpec((bblk, T, D), lambda b: (b, 0, 0)),   # x
            shared((1, D)), shared((1, D)),                    # ln1 gamma/beta
            shared((D, 5 * D)),                                # wq|wk|wv|wqR|wkR (bf16)
            shared((D, D)), shared((1, D)),                    # wo (bf16), bo
            shared((1, D)), shared((1, D)),                    # ln2 gamma/beta
            shared((D, 4 * D)), shared((1, 4 * D)),            # w1 (bf16), b1
            shared((4 * D, D)), shared((1, D)),                # w2 (bf16), b2
            shared((T, D)), shared((T, D)),                    # cos, sin
        ],
        out_specs=pl.BlockSpec((bblk, T, D), lambda b: (b, 0, 0)),
        compiler_params=pltpu.CompilerParams(
            dimension_semantics=("parallel",),
            vmem_limit_bytes=VMEM_LIMIT_BYTES),
    )(x,
      blk["ln1_g"], blk["ln1_b"],
      blk["wqkv"],
      blk["wo"], blk["bo"],
      blk["ln2_g"], blk["ln2_b"],
      blk["w1"], blk["b1"],
      blk["w2"], blk["b2"],
      cos_r, sin_r)


# ----------------------------------------------------------------------
# fused final-LayerNorm + lm_head kernel (row-tiled grid, megacore-parallel)
# ----------------------------------------------------------------------
def _head_kernel(x_ref, g_ref, b_ref, w_ref, bias_ref, o_ref):
    xn = _ln(x_ref[...], g_ref[...], b_ref[...])
    o_ref[...] = jnp.dot(xn.astype(jnp.bfloat16), w_ref[...],
                         preferred_element_type=jnp.float32) + bias_ref[...]


def lm_head(x2d, g, b, w, bias, tm):
    M, D = x2d.shape
    V = w.shape[1]
    return pl.pallas_call(
        _head_kernel,
        out_shape=jax.ShapeDtypeStruct((M, V), jnp.float32),
        grid=(M // tm,),
        in_specs=[
            pl.BlockSpec((tm, D), lambda i: (i, 0)),   # activations, row-tiled
            pl.BlockSpec((1, D), lambda i: (0, 0)),    # ln_f gamma
            pl.BlockSpec((1, D), lambda i: (0, 0)),    # ln_f beta
            pl.BlockSpec((D, V), lambda i: (0, 0)),    # lm_w (bf16)
            pl.BlockSpec((1, V), lambda i: (0, 0)),    # lm_b
        ],
        out_specs=pl.BlockSpec((tm, V), lambda i: (i, 0)),
        compiler_params=pltpu.CompilerParams(
            dimension_semantics=("parallel",),
            vmem_limit_bytes=VMEM_LIMIT_BYTES),
    )(x2d, g, b, w, bias)


# ----------------------------------------------------------------------
# parameter init / one-time packing + forward orchestration (plain JAX glue)
# ----------------------------------------------------------------------
def init_params(key):
    keys = iter(jax.random.split(key, 8 + 8 * N_LAYER))

    def nrm(shape):
        return 0.02 * jax.random.normal(next(keys), shape, jnp.float32)

    params = {
        "tok_emb": nrm((VOCAB_SIZE, N_EMBD)),
        "pos_emb": nrm((BLOCK_SIZE, N_EMBD)),   # present in module, unused in fwd
        "ln_f_g": jnp.ones((N_EMBD,), jnp.float32),
        "ln_f_b": jnp.zeros((N_EMBD,), jnp.float32),
        "lm_w": nrm((N_EMBD, VOCAB_SIZE)),
        "lm_b": jnp.zeros((VOCAB_SIZE,), jnp.float32),
        "blocks": [],
    }
    for _ in range(N_LAYER):
        params["blocks"].append({
            "wq": nrm((N_EMBD, N_EMBD)),
            "wk": nrm((N_EMBD, N_EMBD)),
            "wv": nrm((N_EMBD, N_EMBD)),
            "wo": nrm((N_EMBD, N_EMBD)),
            "bo": jnp.zeros((N_EMBD,), jnp.float32),
            "ln1_g": jnp.ones((N_EMBD,), jnp.float32),
            "ln1_b": jnp.zeros((N_EMBD,), jnp.float32),
            "ln2_g": jnp.ones((N_EMBD,), jnp.float32),
            "ln2_b": jnp.zeros((N_EMBD,), jnp.float32),
            "w1": nrm((N_EMBD, 4 * N_EMBD)),
            "b1": jnp.zeros((4 * N_EMBD,), jnp.float32),
            "w2": nrm((4 * N_EMBD, N_EMBD)),
            "b2": jnp.zeros((N_EMBD,), jnp.float32),
        })
    return params


def _rotate_pairs_cols(w):
    """Exact w @ R where R is the RoPE pair rotation:
    out[:, 2i] = -w[:, 2i+1], out[:, 2i+1] = w[:, 2i]."""
    din, dout = w.shape
    w3 = w.reshape(din, dout // 2, 2)
    return jnp.stack([-w3[..., 1], w3[..., 0]], axis=-1).reshape(din, dout)


def prepare_params(params):
    """One-time packing (NOT inside the jitted forward): fuse the QKV weight
    (with RoPE-rotated column groups) and pre-cast every MXU weight to bf16."""
    D = N_EMBD
    prepped = {
        "tok_emb": params["tok_emb"],
        "ln_f_g": params["ln_f_g"].reshape(1, D),
        "ln_f_b": params["ln_f_b"].reshape(1, D),
        "lm_w": params["lm_w"].astype(jnp.bfloat16),
        "lm_b": params["lm_b"].reshape(1, VOCAB_SIZE),
        "blocks": [],
    }
    for blk in params["blocks"]:
        wqkv = jnp.concatenate(
            [blk["wq"], blk["wk"], blk["wv"],
             _rotate_pairs_cols(blk["wq"]), _rotate_pairs_cols(blk["wk"])],
            axis=1)
        prepped["blocks"].append({
            "wqkv": wqkv.astype(jnp.bfloat16),
            "wo": blk["wo"].astype(jnp.bfloat16),
            "bo": blk["bo"].reshape(1, D),
            "ln1_g": blk["ln1_g"].reshape(1, D),
            "ln1_b": blk["ln1_b"].reshape(1, D),
            "ln2_g": blk["ln2_g"].reshape(1, D),
            "ln2_b": blk["ln2_b"].reshape(1, D),
            "w1": blk["w1"].astype(jnp.bfloat16),
            "b1": blk["b1"].reshape(1, 4 * D),
            "w2": blk["w2"].astype(jnp.bfloat16),
            "b2": blk["b2"].reshape(1, D),
        })
    return prepped


def rope_cos_sin(T, dim, theta=10000.0):
    # matches precompute_theta_pos_frequencies(head_dim=n_embd, seq_len=T)
    inv = 1.0 / (theta ** (jnp.arange(0, dim, 2, dtype=jnp.float32) / dim))
    freqs = jnp.arange(T, dtype=jnp.float32)[:, None] * inv[None, :]  # (T, dim/2)
    return jnp.cos(freqs), jnp.sin(freqs)


def gpt_forward(params, tokens):
    """params: output of prepare_params."""
    B, T = tokens.shape
    D = N_EMBD
    x = params["tok_emb"][tokens]          # (B, T, D) embedding gather (glue)
    # NOTE: reference computes pos embeddings but never adds them -> skipped.

    # RoPE tables hoisted out of the layer loop; expanded to interleaved width.
    cos, sin = rope_cos_sin(T, D)
    cos_r = jnp.repeat(cos, 2, axis=-1)    # (T, D): [c0,c0,c1,c1,...]
    sin_r = jnp.repeat(sin, 2, axis=-1)

    bblk = _pick_bblk(B, T)
    for blk in params["blocks"]:
        x = transformer_block(x, blk, cos_r, sin_r, bblk)

    M = B * T
    tm = _pick_row_tile(M)
    logits = lm_head(x.reshape(M, D),
                     params["ln_f_g"], params["ln_f_b"],
                     params["lm_w"], params["lm_b"], tm)
    # targets=None path -> loss is None
    return logits.reshape(B, T, VOCAB_SIZE), None


# ----------------------------------------------------------------------
# pure-JAX reference (mirrors the PyTorch module) for a numeric sanity check
# ----------------------------------------------------------------------
def gpt_forward_ref(params, tokens):
    B, T = tokens.shape
    D, H, Hs = N_EMBD, N_HEAD, HEAD_SIZE
    hp = lax.Precision.HIGHEST
    cos, sin = rope_cos_sin(T, D)

    def ln(x, g, b):
        mu = x.mean(-1, keepdims=True)
        var = ((x - mu) ** 2).mean(-1, keepdims=True)
        return (x - mu) / jnp.sqrt(var + LN_EPS) * g + b

    def rope(x):
        xe, xo = x[..., 0::2], x[..., 1::2]
        re = xe * cos - xo * sin
        im = xe * sin + xo * cos
        return jnp.stack([re, im], axis=-1).reshape(x.shape)

    def dense(x, w, b=None):
        y = jnp.einsum("btd,de->bte", x, w, precision=hp)
        return y if b is None else y + b

    x = params["tok_emb"][tokens]
    mask = jnp.tril(jnp.ones((T, T), dtype=bool))
    for blk in params["blocks"]:
        xn = ln(x, blk["ln1_g"], blk["ln1_b"])
        q = rope(dense(xn, blk["wq"]))
        k = rope(dense(xn, blk["wk"]))
        v = dense(xn, blk["wv"])
        qh = q.reshape(B, T, H, Hs).transpose(0, 2, 1, 3)
        kh = k.reshape(B, T, H, Hs).transpose(0, 2, 1, 3)
        vh = v.reshape(B, T, H, Hs).transpose(0, 2, 1, 3)
        s = jnp.einsum("bhqd,bhkd->bhqk", qh, kh, precision=hp) * Hs ** (-0.5)
        s = jnp.where(mask, s, -jnp.inf)
        p = jax.nn.softmax(s, axis=-1)
        o = jnp.einsum("bhqk,bhkd->bhqd", p, vh, precision=hp)
        o = o.transpose(0, 2, 1, 3).reshape(B, T, D)
        x = x + dense(o, blk["wo"], blk["bo"])
        xn2 = ln(x, blk["ln2_g"], blk["ln2_b"])
        h1 = jax.nn.relu(dense(xn2, blk["w1"], blk["b1"]))
        x = x + dense(h1, blk["w2"], blk["b2"])
    xf = ln(x, params["ln_f_g"], params["ln_f_b"])
    return jnp.einsum("btd,dv->btv", xf, params["lm_w"], precision=hp) + params["lm_b"]


if __name__ == "__main__":
    key = jax.random.PRNGKey(0)
    pkey, dkey = jax.random.split(key)
    params = init_params(pkey)
    prepped = prepare_params(params)       # one-time fuse + bf16 cast (not jitted)

    B, T = 2, 16
    tokens = jax.random.randint(dkey, (B, T), 0, VOCAB_SIZE, dtype=jnp.int32)

    logits, loss = jax.jit(gpt_forward)(prepped, tokens)
    jax.block_until_ready(logits)
    assert logits.shape == (B, T, VOCAB_SIZE) and logits.dtype == jnp.float32
    assert loss is None
    assert bool(jnp.all(jnp.isfinite(logits))), "non-finite logits"

    ref = jax.jit(gpt_forward_ref)(params, tokens)
    err = float(jnp.max(jnp.abs(logits - ref)))
    # bf16 MXU operands vs a HIGHEST-precision f32 reference: expected max abs
    # diff is a few 1e-3 at this scale; 3e-2 leaves headroom.
    assert err < 3e-2, f"mismatch vs pure-JAX reference: max abs diff = {err}"
    print("KERNEL_OK")
</pallas_src>

<mosaic_0001>
module attributes {stable_mosaic.version = 11 : i64} {
  func.func @_head_kernel(%arg0: i32, %arg1: memref<16x128xf32, #tpu.memory_space<vmem>>, %arg2: memref<1x128xf32, #tpu.memory_space<vmem>>, %arg3: memref<1x128xf32, #tpu.memory_space<vmem>>, %arg4: memref<128x128xbf16, #tpu.memory_space<vmem>>, %arg5: memref<1x128xf32, #tpu.memory_space<vmem>>, %arg6: memref<16x128xf32, #tpu.memory_space<vmem>>) attributes {dimension_semantics = [#tpu.dimension_semantics<parallel>], iteration_bounds = array<i64: 2>, scalar_prefetch = 0 : i64, scratch_operands = 0 : i64, tpu.core_type = #tpu.core_type<tc>, window_params = [{transform_indices = @transform_0, window_bounds = array<i64: 16, 128>}, {pipeline_mode = #tpu.pipeline_mode<synchronous>, transform_indices = @transform_1, window_bounds = array<i64: 1, 128>}, {pipeline_mode = #tpu.pipeline_mode<synchronous>, transform_indices = @transform_2, window_bounds = array<i64: 1, 128>}, {pipeline_mode = #tpu.pipeline_mode<synchronous>, transform_indices = @transform_3, window_bounds = array<i64: 128, 128>}, {pipeline_mode = #tpu.pipeline_mode<synchronous>, transform_indices = @transform_4, window_bounds = array<i64: 1, 128>}, {transform_indices = @transform_5, window_bounds = array<i64: 16, 128>}]} {
    %c0 = arith.constant 0 : index
    %c0_0 = arith.constant 0 : index
    %0 = vector.load %arg1[%c0, %c0_0] : memref<16x128xf32, #tpu.memory_space<vmem>>, vector<16x128xf32>
    %c0_1 = arith.constant 0 : index
    %c0_2 = arith.constant 0 : index
    %1 = vector.load %arg2[%c0_1, %c0_2] : memref<1x128xf32, #tpu.memory_space<vmem>>, vector<1x128xf32>
    %c0_3 = arith.constant 0 : index
    %c0_4 = arith.constant 0 : index
    %2 = vector.load %arg3[%c0_3, %c0_4] : memref<1x128xf32, #tpu.memory_space<vmem>>, vector<1x128xf32>
    %cst = arith.constant dense<0.000000e+00> : vector<16xf32>
    %3 = vector.multi_reduction <add>, %0, %cst [1] : vector<16x128xf32> to vector<16xf32>
    %4 = vector.shape_cast %3 : vector<16xf32> to vector<16x1xf32>
    %cst_5 = arith.constant 1.280000e+02 : f32
    %5 = vector.broadcast %cst_5 : f32 to vector<16x1xf32>
    %6 = arith.divf %4, %5 : vector<16x1xf32>
    %7 = vector.broadcast %6 : vector<16x1xf32> to vector<16x128xf32>
    %8 = arith.subf %0, %7 : vector<16x128xf32>
    %9 = arith.mulf %8, %8 : vector<16x128xf32>
    %cst_6 = arith.constant dense<0.000000e+00> : vector<16xf32>
    %10 = vector.multi_reduction <add>, %9, %cst_6 [1] : vector<16x128xf32> to vector<16xf32>
    %11 = vector.shape_cast %10 : vector<16xf32> to vector<16x1xf32>
    %cst_7 = arith.constant 1.280000e+02 : f32
    %12 = vector.broadcast %cst_7 : f32 to vector<16x1xf32>
    %13 = arith.divf %11, %12 : vector<16x1xf32>
    %cst_8 = arith.constant 9.99999974E-6 : f32
    %14 = vector.broadcast %cst_8 : f32 to vector<16x1xf32>
    %15 = arith.addf %13, %14 : vector<16x1xf32>
    %16 = math.rsqrt %15 : vector<16x1xf32>
    %17 = vector.broadcast %16 : vector<16x1xf32> to vector<16x128xf32>
    %18 = arith.mulf %8, %17 : vector<16x128xf32>
    %19 = vector.broadcast %1 : vector<1x128xf32> to vector<16x128xf32>
    %20 = arith.mulf %18, %19 : vector<16x128xf32>
    %21 = vector.broadcast %2 : vector<1x128xf32> to vector<16x128xf32>
    %22 = arith.addf %20, %21 : vector<16x128xf32>
    %23 = arith.truncf %22 : vector<16x128xf32> to vector<16x128xbf16>
    %c0_9 = arith.constant 0 : index
    %c0_10 = arith.constant 0 : index
    %24 = vector.load %arg4[%c0_9, %c0_10] : memref<128x128xbf16, #tpu.memory_space<vmem>>, vector<128x128xbf16>
    %cst_11 = arith.constant dense<0.000000e+00> : vector<16x128xf32>
    %25 = tpu.matmul %23, %24, %cst_11 {dimension_numbers = #tpu.dot_dimension_numbers<[1], [0], [0], [1], [0, 0, 1, 1], [], []>} : vector<16x128xbf16>, vector<128x128xbf16>, vector<16x128xf32> -> vector<16x128xf32>
    %c0_12 = arith.constant 0 : index
    %c0_13 = arith.constant 0 : index
    %26 = vector.load %arg5[%c0_12, %c0_13] : memref<1x128xf32, #tpu.memory_space<vmem>>, vector<1x128xf32>
    %27 = vector.broadcast %26 : vector<1x128xf32> to vector<16x128xf32>
    %28 = arith.addf %25, %27 : vector<16x128xf32>
    %c0_14 = arith.constant 0 : index
    %c0_15 = arith.constant 0 : index
    %29 = vector.load %arg6[%c0_14, %c0_15] : memref<16x128xf32, #tpu.memory_space<vmem>>, vector<16x128xf32>
    tpu.vector_store %arg6[%c0_14, %c0_15], %28 {strides = array<i32>} : memref<16x128xf32, #tpu.memory_space<vmem>>, vector<16x128xf32>,
    return
  }
  func.func @transform_0(%arg0: i32) -> (i32, i32) {
    %c0_i32 = arith.constant 0 : i32
    %c0_i32_0 = arith.constant 0 : i32
    return %arg0, %c0_i32 : i32, i32
  }
  func.func @transform_1(%arg0: i32) -> (i32, i32) {
    %c0_i32 = arith.constant 0 : i32
    %c0_i32_0 = arith.constant 0 : i32
    %c0_i32_1 = arith.constant 0 : i32
    return %c0_i32, %c0_i32_0 : i32, i32
  }
  func.func @transform_2(%arg0: i32) -> (i32, i32) {
    %c0_i32 = arith.constant 0 : i32
    %c0_i32_0 = arith.constant 0 : i32
    %c0_i32_1 = arith.constant 0 : i32
    return %c0_i32, %c0_i32_0 : i32, i32
  }
  func.func @transform_3(%arg0: i32) -> (i32, i32) {
    %c0_i32 = arith.constant 0 : i32
    %c0_i32_0 = arith.constant 0 : i32
    %c0_i32_1 = arith.constant 0 : i32
    return %c0_i32, %c0_i32_0 : i32, i32
  }
  func.func @transform_4(%arg0: i32) -> (i32, i32) {
    %c0_i32 = arith.constant 0 : i32
    %c0_i32_0 = arith.constant 0 : i32
    %c0_i32_1 = arith.constant 0 : i32
    return %c0_i32, %c0_i32_0 : i32, i32
  }
  func.func @transform_5(%arg0: i32) -> (i32, i32) {
    %c0_i32 = arith.constant 0 : i32
    %c0_i32_0 = arith.constant 0 : i32
    return %arg0, %c0_i32 : i32, i32
  }
}

module attributes {stable_mosaic.version = 11 : i64} {
  func.func @_block_kernel(%arg0: i32, %arg1: memref<1x16x128xf32, #tpu.memory_space<vmem>>, %arg2: memref<1x128xf32, #tpu.memory_space<vmem>>, %arg3: memref<1x128xf32, #tpu.memory_space<vmem>>, %arg4: memref<128x640xbf16, #tpu.memory_space<vmem>>, %arg5: memref<128x128xbf16, #tpu.memory_space<vmem>>, %arg6: memref<1x128xf32, #tpu.memory_space<vmem>>, %arg7: memref<1x128xf32, #tpu.memory_space<vmem>>, %arg8: memref<1x128xf32, #tpu.memory_space<vmem>>, %arg9: memref<128x512xbf16, #tpu.memory_space<vmem>>, %arg10: memref<1x512xf32, #tpu.memory_space<vmem>>, %arg11: memref<512x128xbf16, #tpu.memory_space<vmem>>, %arg12: memref<1x128xf32, #tpu.memory_space<vmem>>, %arg13: memref<16x128xf32, #tpu.memory_space<vmem>>, %arg14: memref<16x128xf32, #tpu.memory_space<vmem>>, %arg15: memref<1x16x128xf32, #tpu.memory_space<vmem>>) attributes {dimension_semantics = [#tpu.dimension_semantics<parallel>], iteration_bounds = array<i64: 2>, scalar_prefetch = 0 : i64, scratch_operands = 0 : i64, tpu.core_type = #tpu.core_type<tc>, window_params = [{transform_indices = @transform_0, window_bounds = array<i64: 1, 16, 128>}, {pipeline_mode = #tpu.pipeline_mode<synchronous>, transform_indices = @transform_1, window_bounds = array<i64: 1, 128>}, {pipeline_mode = #tpu.pipeline_mode<synchronous>, transform_indices = @transform_2, window_bounds = array<i64: 1, 128>}, {pipeline_mode = #tpu.pipeline_mode<synchronous>, transform_indices = @transform_3, window_bounds = array<i64: 128, 640>}, {pipeline_mode = #tpu.pipeline_mode<synchronous>, transform_indices = @transform_4, window_bounds = array<i64: 128, 128>}, {pipeline_mode = #tpu.pipeline_mode<synchronous>, transform_indices = @transform_5, window_bounds = array<i64: 1, 128>}, {pipeline_mode = #tpu.pipeline_mode<synchronous>, transform_indices = @transform_6, window_bounds = array<i64: 1, 128>}, {pipeline_mode = #tpu.pipeline_mode<synchronous>, transform_indices = @transform_7, window_bounds = array<i64: 1, 128>}, {pipeline_mode = #tpu.pipeline_mode<synchronous>, transform_indices = @transform_8, window_bounds = array<i64: 128, 512>}, {pipeline_mode = #tpu.pipeline_mode<synchronous>, transform_indices = @transform_9, window_bounds = array<i64: 1, 512>}, {pipeline_mode = #tpu.pipeline_mode<synchronous>, transform_indices = @transform_10, window_bounds = array<i64: 512, 128>}, {pipeline_mode = #tpu.pipeline_mode<synchronous>, transform_indices = @transform_11, window_bounds = array<i64: 1, 128>}, {pipeline_mode = #tpu.pipeline_mode<synchronous>, transform_indices = @transform_12, window_bounds = array<i64: 16, 128>}, {pipeline_mode = #tpu.pipeline_mode<synchronous>, transform_indices = @transform_13, window_bounds = array<i64: 16, 128>}, {transform_indices = @transform_14, window_bounds = array<i64: 1, 16, 128>}]} {
    %c0 = arith.constant 0 : index
    %c0_0 = arith.constant 0 : index
    %c0_1 = arith.constant 0 : index
    %0 = vector.load %arg1[%c0, %c0_0, %c0_1] : memref<1x16x128xf32, #tpu.memory_space<vmem>>, vector<1x16x128xf32>
    %1 = vector.shape_cast %0 : vector<1x16x128xf32> to vector<16x128xf32>
    %c0_2 = arith.constant 0 : index
    %c0_3 = arith.constant 0 : index
    %2 = vector.load %arg2[%c0_2, %c0_3] : memref<1x128xf32, #tpu.memory_space<vmem>>, vector<1x128xf32>
    %c0_4 = arith.constant 0 : index
    %c0_5 = arith.constant 0 : index
    %3 = vector.load %arg3[%c0_4, %c0_5] : memref<1x128xf32, #tpu.memory_space<vmem>>, vector<1x128xf32>
    %cst = arith.constant dense<0.000000e+00> : vector<16xf32>
    %4 = vector.multi_reduction <add>, %1, %cst [1] : vector<16x128xf32> to vector<16xf32>
    %5 = vector.shape_cast %4 : vector<16xf32> to vector<16x1xf32>
    %cst_6 = arith.constant 1.280000e+02 : f32
    %6 = vector.broadcast %cst_6 : f32 to vector<16x1xf32>
    %7 = arith.divf %5, %6 : vector<16x1xf32>
    %8 = vector.broadcast %7 : vector<16x1xf32> to vector<16x128xf32>
    %9 = arith.subf %1, %8 : vector<16x128xf32>
    %10 = arith.mulf %9, %9 : vector<16x128xf32>
    %cst_7 = arith.constant dense<0.000000e+00> : vector<16xf32>
    %11 = vector.multi_reduction <add>, %10, %cst_7 [1] : vector<16x128xf32> to vector<16xf32>
    %12 = vector.shape_cast %11 : vector<16xf32> to vector<16x1xf32>
    %cst_8 = arith.constant 1.280000e+02 : f32
    %13 = vector.broadcast %cst_8 : f32 to vector<16x1xf32>
    %14 = arith.divf %12, %13 : vector<16x1xf32>
    %cst_9 = arith.constant 9.99999974E-6 : f32
    %15 = vector.broadcast %cst_9 : f32 to vector<16x1xf32>
    %16 = arith.addf %14, %15 : vector<16x1xf32>
    %17 = math.rsqrt %16 : vector<16x1xf32>
    %18 = vector.broadcast %17 : vector<16x1xf32> to vector<16x128xf32>
    %19 = arith.mulf %9, %18 : vector<16x128xf32>
    %20 = vector.broadcast %2 : vector<1x128xf32> to vector<16x128xf32>
    %21 = arith.mulf %19, %20 : vector<16x128xf32>
    %22 = vector.broadcast %3 : vector<1x128xf32> to vector<16x128xf32>
    %23 = arith.addf %21, %22 : vector<16x128xf32>
    %24 = arith.truncf %23 : vector<16x128xf32> to vector<16x128xbf16>
    %c0_10 = arith.constant 0 : index
    %c0_11 = arith.constant 0 : index
    %25 = vector.load %arg4[%c0_10, %c0_11] : memref<128x640xbf16, #tpu.memory_space<vmem>>, vector<128x640xbf16>
    %cst_12 = arith.constant dense<0.000000e+00> : vector<16x640xf32>
    %26 = tpu.matmul %24, %25, %cst_12 {dimension_numbers = #tpu.dot_dimension_numbers<[1], [0], [0], [1], [0, 0, 1, 1], [], []>} : vector<16x128xbf16>, vector<128x640xbf16>, vector<16x640xf32> -> vector<16x640xf32>
    %27 = vector.shape_cast %26 : vector<16x640xf32> to vector<1x16x640xf32>
    %c0_13 = arith.constant 0 : index
    %c0_14 = arith.constant 0 : index
    %28 = vector.load %arg13[%c0_13, %c0_14] : memref<16x128xf32, #tpu.memory_space<vmem>>, vector<16x128xf32>
    %c0_15 = arith.constant 0 : index
    %c0_16 = arith.constant 0 : index
    %29 = vector.load %arg14[%c0_15, %c0_16] : memref<16x128xf32, #tpu.memory_space<vmem>>, vector<16x128xf32>
    %30 = vector.extract_strided_slice %27 {offsets = [0, 0, 0], sizes = [1, 16, 128], strides = [1, 1, 1]} : vector<1x16x640xf32> to vector<1x16x128xf32>
    %31 = vector.shape_cast %28 : vector<16x128xf32> to vector<1x16x128xf32>
    %32 = arith.mulf %30, %31 : vector<1x16x128xf32>
    %33 = vector.extract_strided_slice %27 {offsets = [0, 0, 384], sizes = [1, 16, 128], strides = [1, 1, 1]} : vector<1x16x640xf32> to vector<1x16x128xf32>
    %34 = vector.shape_cast %29 : vector<16x128xf32> to vector<1x16x128xf32>
    %35 = arith.mulf %33, %34 : vector<1x16x128xf32>
    %36 = arith.addf %32, %35 : vector<1x16x128xf32>
    %37 = vector.extract_strided_slice %27 {offsets = [0, 0, 128], sizes = [1, 16, 128], strides = [1, 1, 1]} : vector<1x16x640xf32> to vector<1x16x128xf32>
    %38 = vector.shape_cast %28 : vector<16x128xf32> to vector<1x16x128xf32>
    %39 = arith.mulf %37, %38 : vector<1x16x128xf32>
    %40 = vector.extract_strided_slice %27 {offsets = [0, 0, 512], sizes = [1, 16, 128], strides = [1, 1, 1]} : vector<1x16x640xf32> to vector<1x16x128xf32>
    %41 = vector.shape_cast %29 : vector<16x128xf32> to vector<1x16x128xf32>
    %42 = arith.mulf %40, %41 : vector<1x16x128xf32>
    %43 = arith.addf %39, %42 : vector<1x16x128xf32>
    %44 = vector.extract_strided_slice %27 {offsets = [0, 0, 256], sizes = [1, 16, 128], strides = [1, 1, 1]} : vector<1x16x640xf32> to vector<1x16x128xf32>
    %45 = arith.truncf %36 : vector<1x16x128xf32> to vector<1x16x128xbf16>
    %46 = arith.truncf %43 : vector<1x16x128xf32> to vector<1x16x128xbf16>
    %47 = arith.truncf %44 : vector<1x16x128xf32> to vector<1x16x128xbf16>
    %48 = tpu.iota {dimensions = array<i32: 0>} : vector<16x16xi32>
    %49 = tpu.iota {dimensions = array<i32: 1>} : vector<16x16xi32>
    %50 = arith.cmpi sle, %49, %48 : vector<16x16xi32>
    %51 = vector.extract_strided_slice %45 {offsets = [0, 0, 0], sizes = [1, 16, 32], strides = [1, 1, 1]} : vector<1x16x128xbf16> to vector<1x16x32xbf16>
    %52 = vector.extract_strided_slice %46 {offsets = [0, 0, 0], sizes = [1, 16, 32], strides = [1, 1, 1]} : vector<1x16x128xbf16> to vector<1x16x32xbf16>
    "tpu.trace_start"() <{level = 10 : i32, message = "bqd,bkd->bqk"}> : () -> ()
    %cst_17 = arith.constant dense<0.000000e+00> : vector<1x16x16xf32>
    %53 = tpu.matmul %51, %52, %cst_17 {dimension_numbers = #tpu.dot_dimension_numbers<[2], [2], [1], [1], [0, 0, 0, 1, 1, 1], [0], [0]>} : vector<1x16x32xbf16>, vector<1x16x32xbf16>, vector<1x16x16xf32> -> vector<1x16x16xf32>
    "tpu.trace_stop"() : () -> ()
    %54 = vector.extract_strided_slice %45 {offsets = [0, 0, 32], sizes = [1, 16, 32], strides = [1, 1, 1]} : vector<1x16x128xbf16> to vector<1x16x32xbf16>
    %55 = vector.extract_strided_slice %46 {offsets = [0, 0, 32], sizes = [1, 16, 32], strides = [1, 1, 1]} : vector<1x16x128xbf16> to vector<1x16x32xbf16>
    "tpu.trace_start"() <{level = 10 : i32, message = "bqd,bkd->bqk"}> : () -> ()
    %cst_18 = arith.constant dense<0.000000e+00> : vector<1x16x16xf32>
    %56 = tpu.matmul %54, %55, %cst_18 {dimension_numbers = #tpu.dot_dimension_numbers<[2], [2], [1], [1], [0, 0, 0, 1, 1, 1], [0], [0]>} : vector<1x16x32xbf16>, vector<1x16x32xbf16>, vector<1x16x16xf32> -> vector<1x16x16xf32>
    "tpu.trace_stop"() : () -> ()
    %57 = vector.extract_strided_slice %45 {offsets = [0, 0, 64], sizes = [1, 16, 32], strides = [1, 1, 1]} : vector<1x16x128xbf16> to vector<1x16x32xbf16>
    %58 = vector.extract_strided_slice %46 {offsets = [0, 0, 64], sizes = [1, 16, 32], strides = [1, 1, 1]} : vector<1x16x128xbf16> to vector<1x16x32xbf16>
    "tpu.trace_start"() <{level = 10 : i32, message = "bqd,bkd->bqk"}> : () -> ()
    %cst_19 = arith.constant dense<0.000000e+00> : vector<1x16x16xf32>
    %59 = tpu.matmul %57, %58, %cst_19 {dimension_numbers = #tpu.dot_dimension_numbers<[2], [2], [1], [1], [0, 0, 0, 1, 1, 1], [0], [0]>} : vector<1x16x32xbf16>, vector<1x16x32xbf16>, vector<1x16x16xf32> -> vector<1x16x16xf32>
    "tpu.trace_stop"() : () -> ()
    %60 = vector.extract_strided_slice %45 {offsets = [0, 0, 96], sizes = [1, 16, 32], strides = [1, 1, 1]} : vector<1x16x128xbf16> to vector<1x16x32xbf16>
    %61 = vector.extract_strided_slice %46 {offsets = [0, 0, 96], sizes = [1, 16, 32], strides = [1, 1, 1]} : vector<1x16x128xbf16> to vector<1x16x32xbf16>
    "tpu.trace_start"() <{level = 10 : i32, message = "bqd,bkd->bqk"}> : () -> ()
    %cst_20 = arith.constant dense<0.000000e+00> : vector<1x16x16xf32>
    %62 = tpu.matmul %60, %61, %cst_20 {dimension_numbers = #tpu.dot_dimension_numbers<[2], [2], [1], [1], [0, 0, 0, 1, 1, 1], [0], [0]>} : vector<1x16x32xbf16>, vector<1x16x32xbf16>, vector<1x16x16xf32> -> vector<1x16x16xf32>
    "tpu.trace_stop"() : () -> ()
    %63 = tpu.concatenate %53, %56, %59, %62 in 0 : vector<1x16x16xf32>, vector<1x16x16xf32>, vector<1x16x16xf32>, vector<1x16x16xf32> -> vector<4x16x16xf32>
    %cst_21 = arith.constant 0.176776692 : f32
    %64 = vector.broadcast %cst_21 : f32 to vector<4x16x16xf32>
    %65 = arith.mulf %63, %64 : vector<4x16x16xf32>
    %cst_22 = arith.constant -1.000000e+30 : f32
    %66 = vector.shape_cast %50 : vector<16x16xi1> to vector<1x16x16xi1>
    %67 = vector.broadcast %66 : vector<1x16x16xi1> to vector<4x16x16xi1>
    %68 = vector.broadcast %cst_22 : f32 to vector<4x16x16xf32>
    %69 = arith.select %67, %65, %68 : vector<4x16x16xi1>, vector<4x16x16xf32>
    %cst_23 = arith.constant dense<0xFF800000> : vector<4x16xf32>
    %70 = vector.multi_reduction <maximumf>, %69, %cst_23 [2] : vector<4x16x16xf32> to vector<4x16xf32>
    %71 = vector.shape_cast %70 : vector<4x16xf32> to vector<4x16x1xf32>
    %72 = vector.broadcast %71 : vector<4x16x1xf32> to vector<4x16x16xf32>
    %73 = arith.subf %69, %72 : vector<4x16x16xf32>
    %74 = math.exp %73 : vector<4x16x16xf32>
    %cst_24 = arith.constant dense<0.000000e+00> : vector<4x16xf32>
    %75 = vector.multi_reduction <add>, %74, %cst_24 [2] : vector<4x16x16xf32> to vector<4x16xf32>
    %76 = vector.shape_cast %75 : vector<4x16xf32> to vector<4x16x1xf32>
    %77 = tpu.reciprocal %76 {approx = true} : vector<4x16x1xf32> -> vector<4x16x1xf32>
    %78 = vector.broadcast %77 : vector<4x16x1xf32> to vector<4x16x16xf32>
    %79 = arith.mulf %74, %78 : vector<4x16x16xf32>
    %80 = arith.truncf %79 : vector<4x16x16xf32> to vector<4x16x16xbf16>
    %c0_25 = arith.constant 0 : index
    %c0_26 = arith.constant 0 : index
    %81 = vector.load %arg5[%c0_25, %c0_26] : memref<128x128xbf16, #tpu.memory_space<vmem>>, vector<128x128xbf16>
    %c0_27 = arith.constant 0 : index
    %c0_28 = arith.constant 0 : index
    %82 = vector.load %arg6[%c0_27, %c0_28] : memref<1x128xf32, #tpu.memory_space<vmem>>, vector<1x128xf32>
    %83 = vector.broadcast %82 : vector<1x128xf32> to vector<16x128xf32>
    %84 = arith.addf %1, %83 : vector<16x128xf32>
    %85 = vector.extract_strided_slice %80 {offsets = [0, 0, 0], sizes = [1, 16, 16], strides = [1, 1, 1]} : vector<4x16x16xbf16> to vector<1x16x16xbf16>
    %86 = vector.extract_strided_slice %47 {offsets = [0, 0, 0], sizes = [1, 16, 32], strides = [1, 1, 1]} : vector<1x16x128xbf16> to vector<1x16x32xbf16>
    "tpu.trace_start"() <{level = 10 : i32, message = "bqk,bkd->bqd"}> : () -> ()
    %cst_29 = arith.constant dense<0.000000e+00> : vector<1x16x32xf32>
    %87 = tpu.matmul %85, %86, %cst_29 {dimension_numbers = #tpu.dot_dimension_numbers<[2], [1], [1], [2], [0, 0, 0, 1, 1, 2], [0], [0]>} : vector<1x16x16xbf16>, vector<1x16x32xbf16>, vector<1x16x32xf32> -> vector<1x16x32xf32>
    "tpu.trace_stop"() : () -> ()
    %88 = vector.shape_cast %87 : vector<1x16x32xf32> to vector<16x32xf32>
    %89 = arith.truncf %88 : vector<16x32xf32> to vector<16x32xbf16>
    %90 = vector.extract_strided_slice %81 {offsets = [0, 0], sizes = [32, 128], strides = [1, 1]} : vector<128x128xbf16> to vector<32x128xbf16>
    %cst_30 = arith.constant dense<0.000000e+00> : vector<16x128xf32>
    %91 = tpu.matmul %89, %90, %cst_30 {dimension_numbers = #tpu.dot_dimension_numbers<[1], [0], [0], [1], [0, 0, 1, 1], [], []>} : vector<16x32xbf16>, vector<32x128xbf16>, vector<16x128xf32> -> vector<16x128xf32>
    %92 = arith.addf %84, %91 : vector<16x128xf32>
    %93 = vector.extract_strided_slice %80 {offsets = [1, 0, 0], sizes = [1, 16, 16], strides = [1, 1, 1]} : vector<4x16x16xbf16> to vector<1x16x16xbf16>
    %94 = vector.extract_strided_slice %47 {offsets = [0, 0, 32], sizes = [1, 16, 32], strides = [1, 1, 1]} : vector<1x16x128xbf16> to vector<1x16x32xbf16>
    "tpu.trace_start"() <{level = 10 : i32, message = "bqk,bkd->bqd"}> : () -> ()
    %cst_31 = arith.constant dense<0.000000e+00> : vector<1x16x32xf32>
    %95 = tpu.matmul %93, %94, %cst_31 {dimension_numbers = #tpu.dot_dimension_numbers<[2], [1], [1], [2], [0, 0, 0, 1, 1, 2], [0], [0]>} : vector<1x16x16xbf16>, vector<1x16x32xbf16>, vector<1x16x32xf32> -> vector<1x16x32xf32>
    "tpu.trace_stop"() : () -> ()
    %96 = vector.shape_cast %95 : vector<1x16x32xf32> to vector<16x32xf32>
    %97 = arith.truncf %96 : vector<16x32xf32> to vector<16x32xbf16>
    %98 = vector.extract_strided_slice %81 {offsets = [32, 0], sizes = [32, 128], strides = [1, 1]} : vector<128x128xbf16> to vector<32x128xbf16>
    %cst_32 = arith.constant dense<0.000000e+00> : vector<16x128xf32>
    %99 = tpu.matmul %97, %98, %cst_32 {dimension_numbers = #tpu.dot_dimension_numbers<[1], [0], [0], [1], [0, 0, 1, 1], [], []>} : vector<16x32xbf16>, vector<32x128xbf16>, vector<16x128xf32> -> vector<16x128xf32>
    %100 = arith.addf %92, %99 : vector<16x128xf32>
    %101 = vector.extract_strided_slice %80 {offsets = [2, 0, 0], sizes = [1, 16, 16], strides = [1, 1, 1]} : vector<4x16x16xbf16> to vector<1x16x16xbf16>
    %102 = vector.extract_strided_slice %47 {offsets = [0, 0, 64], sizes = [1, 16, 32], strides = [1, 1, 1]} : vector<1x16x128xbf16> to vector<1x16x32xbf16>
    "tpu.trace_start"() <{level = 10 : i32, message = "bqk,bkd->bqd"}> : () -> ()
    %cst_33 = arith.constant dense<0.000000e+00> : vector<1x16x32xf32>
    %103 = tpu.matmul %101, %102, %cst_33 {dimension_numbers = #tpu.dot_dimension_numbers<[2], [1], [1], [2], [0, 0, 0, 1, 1, 2], [0], [0]>} : vector<1x16x16xbf16>, vector<1x16x32xbf16>, vector<1x16x32xf32> -> vector<1x16x32xf32>
    "tpu.trace_stop"() : () -> ()
    %104 = vector.shape_cast %103 : vector<1x16x32xf32> to vector<16x32xf32>
    %105 = arith.truncf %104 : vector<16x32xf32> to vector<16x32xbf16>
    %106 = vector.extract_strided_slice %81 {offsets = [64, 0], sizes = [32, 128], strides = [1, 1]} : vector<128x128xbf16> to vector<32x128xbf16>
    %cst_34 = arith.constant dense<0.000000e+00> : vector<16x128xf32>
    %107 = tpu.matmul %105, %106, %cst_34 {dimension_numbers = #tpu.dot_dimension_numbers<[1], [0], [0], [1], [0, 0, 1, 1], [], []>} : vector<16x32xbf16>, vector<32x128xbf16>, vector<16x128xf32> -> vector<16x128xf32>
    %108 = arith.addf %100, %107 : vector<16x128xf32>
    %109 = vector.extract_strided_slice %80 {offsets = [3, 0, 0], sizes = [1, 16, 16], strides = [1, 1, 1]} : vector<4x16x16xbf16> to vector<1x16x16xbf16>
    %110 = vector.extract_strided_slice %47 {offsets = [0, 0, 96], sizes = [1, 16, 32], strides = [1, 1, 1]} : vector<1x16x128xbf16> to vector<1x16x32xbf16>
    "tpu.trace_start"() <{level = 10 : i32, message = "bqk,bkd->bqd"}> : () -> ()
    %cst_35 = arith.constant dense<0.000000e+00> : vector<1x16x32xf32>
    %111 = tpu.matmul %109, %110, %cst_35 {dimension_numbers = #tpu.dot_dimension_numbers<[2], [1], [1], [2], [0, 0, 0, 1, 1, 2], [0], [0]>} : vector<1x16x16xbf16>, vector<1x16x32xbf16>, vector<1x16x32xf32> -> vector<1x16x32xf32>
    "tpu.trace_stop"() : () -> ()
    %112 = vector.shape_cast %111 : vector<1x16x32xf32> to vector<16x32xf32>
    %113 = arith.truncf %112 : vector<16x32xf32> to vector<16x32xbf16>
    %114 = vector.extract_strided_slice %81 {offsets = [96, 0], sizes = [32, 128], strides = [1, 1]} : vector<128x128xbf16> to vector<32x128xbf16>
    %cst_36 = arith.constant dense<0.000000e+00> : vector<16x128xf32>
    %115 = tpu.matmul %113, %114, %cst_36 {dimension_numbers = #tpu.dot_dimension_numbers<[1], [0], [0], [1], [0, 0, 1, 1], [], []>} : vector<16x32xbf16>, vector<32x128xbf16>, vector<16x128xf32> -> vector<16x128xf32>
    %116 = arith.addf %108, %115 : vector<16x128xf32>
    %c0_37 = arith.constant 0 : index
    %c0_38 = arith.constant 0 : index
    %117 = vector.load %arg7[%c0_37, %c0_38] : memref<1x128xf32, #tpu.memory_space<vmem>>, vector<1x128xf32>
    %c0_39 = arith.constant 0 : index
    %c0_40 = arith.constant 0 : index
    %118 = vector.load %arg8[%c0_39, %c0_40] : memref<1x128xf32, #tpu.memory_space<vmem>>, vector<1x128xf32>
    %cst_41 = arith.constant dense<0.000000e+00> : vector<16xf32>
    %119 = vector.multi_reduction <add>, %116, %cst_41 [1] : vector<16x128xf32> to vector<16xf32>
    %120 = vector.shape_cast %119 : vector<16xf32> to vector<16x1xf32>
    %cst_42 = arith.constant 1.280000e+02 : f32
    %121 = vector.broadcast %cst_42 : f32 to vector<16x1xf32>
    %122 = arith.divf %120, %121 : vector<16x1xf32>
    %123 = vector.broadcast %122 : vector<16x1xf32> to vector<16x128xf32>
    %124 = arith.subf %116, %123 : vector<16x128xf32>
    %125 = arith.mulf %124, %124 : vector<16x128xf32>
    %cst_43 = arith.constant dense<0.000000e+00> : vector<16xf32>
    %126 = vector.multi_reduction <add>, %125, %cst_43 [1] : vector<16x128xf32> to vector<16xf32>
    %127 = vector.shape_cast %126 : vector<16xf32> to vector<16x1xf32>
    %cst_44 = arith.constant 1.280000e+02 : f32
    %128 = vector.broadcast %cst_44 : f32 to vector<16x1xf32>
    %129 = arith.divf %127, %128 : vector<16x1xf32>
    %cst_45 = arith.constant 9.99999974E-6 : f32
    %130 = vector.broadcast %cst_45 : f32 to vector<16x1xf32>
    %131 = arith.addf %129, %130 : vector<16x1xf32>
    %132 = math.rsqrt %131 : vector<16x1xf32>
    %133 = vector.broadcast %132 : vector<16x1xf32> to vector<16x128xf32>
    %134 = arith.mulf %124, %133 : vector<16x128xf32>
    %135 = vector.broadcast %117 : vector<1x128xf32> to vector<16x128xf32>
    %136 = arith.mulf %134, %135 : vector<16x128xf32>
    %137 = vector.broadcast %118 : vector<1x128xf32> to vector<16x128xf32>
    %138 = arith.addf %136, %137 : vector<16x128xf32>
    %139 = arith.truncf %138 : vector<16x128xf32> to vector<16x128xbf16>
    %c0_46 = arith.constant 0 : index
    %c0_47 = arith.constant 0 : index
    %140 = vector.load %arg9[%c0_46, %c0_47] : memref<128x512xbf16, #tpu.memory_space<vmem>>, vector<128x512xbf16>
    %cst_48 = arith.constant dense<0.000000e+00> : vector<16x512xf32>
    %141 = tpu.matmul %139, %140, %cst_48 {dimension_numbers = #tpu.dot_dimension_numbers<[1], [0], [0], [1], [0, 0, 1, 1], [], []>} : vector<16x128xbf16>, vector<128x512xbf16>, vector<16x512xf32> -> vector<16x512xf32>
    %c0_49 = arith.constant 0 : index
    %c0_50 = arith.constant 0 : index
    %142 = vector.load %arg10[%c0_49, %c0_50] : memref<1x512xf32, #tpu.memory_space<vmem>>, vector<1x512xf32>
    %143 = vector.broadcast %142 : vector<1x512xf32> to vector<16x512xf32>
    %144 = arith.addf %141, %143 : vector<16x512xf32>
    %cst_51 = arith.constant 0.000000e+00 : f32
    %145 = vector.broadcast %cst_51 : f32 to vector<16x512xf32>
    %146 = arith.maximumf %144, %145 : vector<16x512xf32>
    %147 = arith.truncf %146 : vector<16x512xf32> to vector<16x512xbf16>
    %c0_52 = arith.constant 0 : index
    %c0_53 = arith.constant 0 : index
    %148 = vector.load %arg11[%c0_52, %c0_53] : memref<512x128xbf16, #tpu.memory_space<vmem>>, vector<512x128xbf16>
    %cst_54 = arith.constant dense<0.000000e+00> : vector<16x128xf32>
    %149 = tpu.matmul %147, %148, %cst_54 {dimension_numbers = #tpu.dot_dimension_numbers<[1], [0], [0], [1], [0, 0, 1, 1], [], []>} : vector<16x512xbf16>, vector<512x128xbf16>, vector<16x128xf32> -> vector<16x128xf32>
    %c0_55 = arith.constant 0 : index
    %c0_56 = arith.constant 0 : index
    %150 = vector.load %arg12[%c0_55, %c0_56] : memref<1x128xf32, #tpu.memory_space<vmem>>, vector<1x128xf32>
    %151 = vector.broadcast %150 : vector<1x128xf32> to vector<16x128xf32>
    %152 = arith.addf %149, %151 : vector<16x128xf32>
    %153 = arith.addf %116, %152 : vector<16x128xf32>
    %154 = vector.shape_cast %153 : vector<16x128xf32> to vector<1x16x128xf32>
    %c0_57 = arith.constant 0 : index
    %c0_58 = arith.constant 0 : index
    %c0_59 = arith.constant 0 : index
    %155 = vector.load %arg15[%c0_57, %c0_58, %c0_59] : memref<1x16x128xf32, #tpu.memory_space<vmem>>, vector<1x16x128xf32>
    tpu.vector_store %arg15[%c0_57, %c0_58, %c0_59], %154 {strides = array<i32>} : memref<1x16x128xf32, #tpu.memory_space<vmem>>, vector<1x16x128xf32>,
    return
  }
  func.func @transform_0(%arg0: i32) -> (i32, i32, i32) {
    %c0_i32 = arith.constant 0 : i32
    %c0_i32_0 = arith.constant 0 : i32
    %c0_i32_1 = arith.constant 0 : i32
    return %arg0, %c0_i32, %c0_i32_0 : i32, i32, i32
  }
  func.func @transform_1(%arg0: i32) -> (i32, i32) {
    %c0_i32 = arith.constant 0 : i32
    %c0_i32_0 = arith.constant 0 : i32
    %c0_i32_1 = arith.constant 0 : i32
    return %c0_i32, %c0_i32_0 : i32, i32
  }
  func.func @transform_2(%arg0: i32) -> (i32, i32) {
    %c0_i32 = arith.constant 0 : i32
    %c0_i32_0 = arith.constant 0 : i32
    %c0_i32_1 = arith.constant 0 : i32
    return %c0_i32, %c0_i32_0 : i32, i32
  }
  func.func @transform_3(%arg0: i32) -> (i32, i32) {
    %c0_i32 = arith.constant 0 : i32
    %c0_i32_0 = arith.constant 0 : i32
    %c0_i32_1 = arith.constant 0 : i32
    return %c0_i32, %c0_i32_0 : i32, i32
  }
  func.func @transform_4(%arg0: i32) -> (i32, i32) {
    %c0_i32 = arith.constant 0 : i32
    %c0_i32_0 = arith.constant 0 : i32
    %c0_i32_1 = arith.constant 0 : i32
    return %c0_i32, %c0_i32_0 : i32, i32
  }
  func.func @transform_5(%arg0: i32) -> (i32, i32) {
    %c0_i32 = arith.constant 0 : i32
    %c0_i32_0 = arith.constant 0 : i32
    %c0_i32_1 = arith.constant 0 : i32
    return %c0_i32, %c0_i32_0 : i32, i32
  }
  func.func @transform_6(%arg0: i32) -> (i32, i32) {
    %c0_i32 = arith.constant 0 : i32
    %c0_i32_0 = arith.constant 0 : i32
    %c0_i32_1 = arith.constant 0 : i32
    return %c0_i32, %c0_i32_0 : i32, i32
  }
  func.func @transform_7(%arg0: i32) -> (i32, i32) {
    %c0_i32 = arith.constant 0 : i32
    %c0_i32_0 = arith.constant 0 : i32
    %c0_i32_1 = arith.constant 0 : i32
    return %c0_i32, %c0_i32_0 : i32, i32
  }
  func.func @transform_8(%arg0: i32) -> (i32, i32) {
    %c0_i32 = arith.constant 0 : i32
    %c0_i32_0 = arith.constant 0 : i32
    %c0_i32_1 = arith.constant 0 : i32
    return %c0_i32, %c0_i32_0 : i32, i32
  }
  func.func @transform_9(%arg0: i32) -> (i32, i32) {
    %c0_i32 = arith.constant 0 : i32
    %c0_i32_0 = arith.constant 0 : i32
    %c0_i32_1 = arith.constant 0 : i32
    return %c0_i32, %c0_i32_0 : i32, i32
  }
  func.func @transform_10(%arg0: i32) -> (i32, i32) {
    %c0_i32 = arith.constant 0 : i32
    %c0_i32_0 = arith.constant 0 : i32
    %c0_i32_1 = arith.constant 0 : i32
    return %c0_i32, %c0_i32_0 : i32, i32
  }
  func.func @transform_11(%arg0: i32) -> (i32, i32) {
    %c0_i32 = arith.constant 0 : i32
    %c0_i32_0 = arith.constant 0 : i32
    %c0_i32_1 = arith.constant 0 : i32
    return %c0_i32, %c0_i32_0 : i32, i32
  }
  func.func @transform_12(%arg0: i32) -> (i32, i32) {
    %c0_i32 = arith.constant 0 : i32
    %c0_i32_0 = arith.constant 0 : i32
    %c0_i32_1 = arith.constant 0 : i32
    return %c0_i32, %c0_i32_0 : i32, i32
  }
  func.func @transform_13(%arg0: i32) -> (i32, i32) {
    %c0_i32 = arith.constant 0 : i32
    %c0_i32_0 = arith.constant 0 : i32
    %c0_i32_1 = arith.constant 0 : i32
    return %c0_i32, %c0_i32_0 : i32, i32
  }
  func.func @transform_14(%arg0: i32) -> (i32, i32, i32) {
    %c0_i32 = arith.constant 0 : i32
    %c0_i32_0 = arith.constant 0 : i32
    %c0_i32_1 = arith.constant 0 : i32
    return %arg0, %c0_i32, %c0_i32_0 : i32, i32, i32
  }
}

module attributes {stable_mosaic.version = 11 : i64} {
  func.func @_block_kernel(%arg0: i32, %arg1: memref<1x16x128xf32, #tpu.memory_space<vmem>>, %arg2: memref<1x128xf32, #tpu.memory_space<vmem>>, %arg3: memref<1x128xf32, #tpu.memory_space<vmem>>, %arg4: memref<128x640xbf16, #tpu.memory_space<vmem>>, %arg5: memref<128x128xbf16, #tpu.memory_space<vmem>>, %arg6: memref<1x128xf32, #tpu.memory_space<vmem>>, %arg7: memref<1x128xf32, #tpu.memory_space<vmem>>, %arg8: memref<1x128xf32, #tpu.memory_space<vmem>>, %arg9: memref<128x512xbf16, #tpu.memory_space<vmem>>, %arg10: memref<1x512xf32, #tpu.memory_space<vmem>>, %arg11: memref<512x128xbf16, #tpu.memory_space<vmem>>, %arg12: memref<1x128xf32, #tpu.memory_space<vmem>>, %arg13: memref<16x128xf32, #tpu.memory_space<vmem>>, %arg14: memref<16x128xf32, #tpu.memory_space<vmem>>, %arg15: memref<1x16x128xf32, #tpu.memory_space<vmem>>) attributes {dimension_semantics = [#tpu.dimension_semantics<parallel>], iteration_bounds = array<i64: 2>, scalar_prefetch = 0 : i64, scratch_operands = 0 : i64, tpu.core_type = #tpu.core_type<tc>, window_params = [{transform_indices = @transform_0, window_bounds = array<i64: 1, 16, 128>}, {pipeline_mode = #tpu.pipeline_mode<synchronous>, transform_indices = @transform_1, window_bounds = array<i64: 1, 128>}, {pipeline_mode = #tpu.pipeline_mode<synchronous>, transform_indices = @transform_2, window_bounds = array<i64: 1, 128>}, {pipeline_mode = #tpu.pipeline_mode<synchronous>, transform_indices = @transform_3, window_bounds = array<i64: 128, 640>}, {pipeline_mode = #tpu.pipeline_mode<synchronous>, transform_indices = @transform_4, window_bounds = array<i64: 128, 128>}, {pipeline_mode = #tpu.pipeline_mode<synchronous>, transform_indices = @transform_5, window_bounds = array<i64: 1, 128>}, {pipeline_mode = #tpu.pipeline_mode<synchronous>, transform_indices = @transform_6, window_bounds = array<i64: 1, 128>}, {pipeline_mode = #tpu.pipeline_mode<synchronous>, transform_indices = @transform_7, window_bounds = array<i64: 1, 128>}, {pipeline_mode = #tpu.pipeline_mode<synchronous>, transform_indices = @transform_8, window_bounds = array<i64: 128, 512>}, {pipeline_mode = #tpu.pipeline_mode<synchronous>, transform_indices = @transform_9, window_bounds = array<i64: 1, 512>}, {pipeline_mode = #tpu.pipeline_mode<synchronous>, transform_indices = @transform_10, window_bounds = array<i64: 512, 128>}, {pipeline_mode = #tpu.pipeline_mode<synchronous>, transform_indices = @transform_11, window_bounds = array<i64: 1, 128>}, {pipeline_mode = #tpu.pipeline_mode<synchronous>, transform_indices = @transform_12, window_bounds = array<i64: 16, 128>}, {pipeline_mode = #tpu.pipeline_mode<synchronous>, transform_indices = @transform_13, window_bounds = array<i64: 16, 128>}, {transform_indices = @transform_14, window_bounds = array<i64: 1, 16, 128>}]} {
    %c0 = arith.constant 0 : index
    %c0_0 = arith.constant 0 : index
    %c0_1 = arith.constant 0 : index
    %0 = vector.load %arg1[%c0, %c0_0, %c0_1] : memref<1x16x128xf32, #tpu.memory_space<vmem>>, vector<1x16x128xf32>
    %1 = vector.shape_cast %0 : vector<1x16x128xf32> to vector<16x128xf32>
    %c0_2 = arith.constant 0 : index
    %c0_3 = arith.constant 0 : index
    %2 = vector.load %arg2[%c0_2, %c0_3] : memref<1x128xf32, #tpu.memory_space<vmem>>, vector<1x128xf32>
    %c0_4 = arith.constant 0 : index
    %c0_5 = arith.constant 0 : index
    %3 = vector.load %arg3[%c0_4, %c0_5] : memref<1x128xf32, #tpu.memory_space<vmem>>, vector<1x128xf32>
    %cst = arith.constant dense<0.000000e+00> : vector<16xf32>
    %4 = vector.multi_reduction <add>, %1, %cst [1] : vector<16x128xf32> to vector<16xf32>
    %5 = vector.shape_cast %4 : vector<16xf32> to vector<16x1xf32>
    %cst_6 = arith.constant 1.280000e+02 : f32
    %6 = vector.broadcast %cst_6 : f32 to vector<16x1xf32>
    %7 = arith.divf %5, %6 : vector<16x1xf32>
    %8 = vector.broadcast %7 : vector<16x1xf32> to vector<16x128xf32>
    %9 = arith.subf %1, %8 : vector<16x128xf32>
    %10 = arith.mulf %9, %9 : vector<16x128xf32>
    %cst_7 = arith.constant dense<0.000000e+00> : vector<16xf32>
    %11 = vector.multi_reduction <add>, %10, %cst_7 [1] : vector<16x128xf32> to vector<16xf32>
    %12 = vector.shape_cast %11 : vector<16xf32> to vector<16x1xf32>
    %cst_8 = arith.constant 1.280000e+02 : f32
    %13 = vector.broadcast %cst_8 : f32 to vector<16x1xf32>
    %14 = arith.divf %12, %13 : vector<16x1xf32>
    %cst_9 = arith.constant 9.99999974E-6 : f32
    %15 = vector.broadcast %cst_9 : f32 to vector<16x1xf32>
    %16 = arith.addf %14, %15 : vector<16x1xf32>
    %17 = math.rsqrt %16 : vector<16x1xf32>
    %18 = vector.broadcast %17 : vector<16x1xf32> to vector<16x128xf32>
    %19 = arith.mulf %9, %18 : vector<16x128xf32>
    %20 = vector.broadcast %2 : vector<1x128xf32> to vector<16x128xf32>
    %21 = arith.mulf %19, %20 : vector<16x128xf32>
    %22 = vector.broadcast %3 : vector<1x128xf32> to vector<16x128xf32>
    %23 = arith.addf %21, %22 : vector<16x128xf32>
    %24 = arith.truncf %23 : vector<16x128xf32> to vector<16x128xbf16>
    %c0_10 = arith.constant 0 : index
    %c0_11 = arith.constant 0 : index
    %25 = vector.load %arg4[%c0_10, %c0_11] : memref<128x640xbf16, #tpu.memory_space<vmem>>, vector<128x640xbf16>
    %cst_12 = arith.constant dense<0.000000e+00> : vector<16x640xf32>
    %26 = tpu.matmul %24, %25, %cst_12 {dimension_numbers = #tpu.dot_dimension_numbers<[1], [0], [0], [1], [0, 0, 1, 1], [], []>} : vector<16x128xbf16>, vector<128x640xbf16>, vector<16x640xf32> -> vector<16x640xf32>
    %27 = vector.shape_cast %26 : vector<16x640xf32> to vector<1x16x640xf32>
    %c0_13 = arith.constant 0 : index
    %c0_14 = arith.constant 0 : index
    %28 = vector.load %arg13[%c0_13, %c0_14] : memref<16x128xf32, #tpu.memory_space<vmem>>, vector<16x128xf32>
    %c0_15 = arith.constant 0 : index
    %c0_16 = arith.constant 0 : index
    %29 = vector.load %arg14[%c0_15, %c0_16] : memref<16x128xf32, #tpu.memory_space<vmem>>, vector<16x128xf32>
    %30 = vector.extract_strided_slice %27 {offsets = [0, 0, 0], sizes = [1, 16, 128], strides = [1, 1, 1]} : vector<1x16x640xf32> to vector<1x16x128xf32>
    %31 = vector.shape_cast %28 : vector<16x128xf32> to vector<1x16x128xf32>
    %32 = arith.mulf %30, %31 : vector<1x16x128xf32>
    %33 = vector.extract_strided_slice %27 {offsets = [0, 0, 384], sizes = [1, 16, 128], strides = [1, 1, 1]} : vector<1x16x640xf32> to vector<1x16x128xf32>
    %34 = vector.shape_cast %29 : vector<16x128xf32> to vector<1x16x128xf32>
    %35 = arith.mulf %33, %34 : vector<1x16x128xf32>
    %36 = arith.addf %32, %35 : vector<1x16x128xf32>
    %37 = vector.extract_strided_slice %27 {offsets = [0, 0, 128], sizes = [1, 16, 128], strides = [1, 1, 1]} : vector<1x16x640xf32> to vector<1x16x128xf32>
    %38 = vector.shape_cast %28 : vector<16x128xf32> to vector<1x16x128xf32>
    %39 = arith.mulf %37, %38 : vector<1x16x128xf32>
    %40 = vector.extract_strided_slice %27 {offsets = [0, 0, 512], sizes = [1, 16, 128], strides = [1, 1, 1]} : vector<1x16x640xf32> to vector<1x16x128xf32>
    %41 = vector.shape_cast %29 : vector<16x128xf32> to vector<1x16x128xf32>
    %42 = arith.mulf %40, %41 : vector<1x16x128xf32>
    %43 = arith.addf %39, %42 : vector<1x16x128xf32>
    %44 = vector.extract_strided_slice %27 {offsets = [0, 0, 256], sizes = [1, 16, 128], strides = [1, 1, 1]} : vector<1x16x640xf32> to vector<1x16x128xf32>
    %45 = arith.truncf %36 : vector<1x16x128xf32> to vector<1x16x128xbf16>
    %46 = arith.truncf %43 : vector<1x16x128xf32> to vector<1x16x128xbf16>
    %47 = arith.truncf %44 : vector<1x16x128xf32> to vector<1x16x128xbf16>
    %48 = tpu.iota {dimensions = array<i32: 0>} : vector<16x16xi32>
    %49 = tpu.iota {dimensions = array<i32: 1>} : vector<16x16xi32>
    %50 = arith.cmpi sle, %49, %48 : vector<16x16xi32>
    %51 = vector.extract_strided_slice %45 {offsets = [0, 0, 0], sizes = [1, 16, 32], strides = [1, 1, 1]} : vector<1x16x128xbf16> to vector<1x16x32xbf16>
    %52 = vector.extract_strided_slice %46 {offsets = [0, 0, 0], sizes = [1, 16, 32], strides = [1, 1, 1]} : vector<1x16x128xbf16> to vector<1x16x32xbf16>
    "tpu.trace_start"() <{level = 10 : i32, message = "bqd,bkd->bqk"}> : () -> ()
    %cst_17 = arith.constant dense<0.000000e+00> : vector<1x16x16xf32>
    %53 = tpu.matmul %51, %52, %cst_17 {dimension_numbers = #tpu.dot_dimension_numbers<[2], [2], [1], [1], [0, 0, 0, 1, 1, 1], [0], [0]>} : vector<1x16x32xbf16>, vector<1x16x32xbf16>, vector<1x16x16xf32> -> vector<1x16x16xf32>
    "tpu.trace_stop"() : () -> ()
    %54 = vector.extract_strided_slice %45 {offsets = [0, 0, 32], sizes = [1, 16, 32], strides = [1, 1, 1]} : vector<1x16x128xbf16> to vector<1x16x32xbf16>
    %55 = vector.extract_strided_slice %46 {offsets = [0, 0, 32], sizes = [1, 16, 32], strides = [1, 1, 1]} : vector<1x16x128xbf16> to vector<1x16x32xbf16>
    "tpu.trace_start"() <{level = 10 : i32, message = "bqd,bkd->bqk"}> : () -> ()
    %cst_18 = arith.constant dense<0.000000e+00> : vector<1x16x16xf32>
    %56 = tpu.matmul %54, %55, %cst_18 {dimension_numbers = #tpu.dot_dimension_numbers<[2], [2], [1], [1], [0, 0, 0, 1, 1, 1], [0], [0]>} : vector<1x16x32xbf16>, vector<1x16x32xbf16>, vector<1x16x16xf32> -> vector<1x16x16xf32>
    "tpu.trace_stop"() : () -> ()
    %57 = vector.extract_strided_slice %45 {offsets = [0, 0, 64], sizes = [1, 16, 32], strides = [1, 1, 1]} : vector<1x16x128xbf16> to vector<1x16x32xbf16>
    %58 = vector.extract_strided_slice %46 {offsets = [0, 0, 64], sizes = [1, 16, 32], strides = [1, 1, 1]} : vector<1x16x128xbf16> to vector<1x16x32xbf16>
    "tpu.trace_start"() <{level = 10 : i32, message = "bqd,bkd->bqk"}> : () -> ()
    %cst_19 = arith.constant dense<0.000000e+00> : vector<1x16x16xf32>
    %59 = tpu.matmul %57, %58, %cst_19 {dimension_numbers = #tpu.dot_dimension_numbers<[2], [2], [1], [1], [0, 0, 0, 1, 1, 1], [0], [0]>} : vector<1x16x32xbf16>, vector<1x16x32xbf16>, vector<1x16x16xf32> -> vector<1x16x16xf32>
    "tpu.trace_stop"() : () -> ()
    %60 = vector.extract_strided_slice %45 {offsets = [0, 0, 96], sizes = [1, 16, 32], strides = [1, 1, 1]} : vector<1x16x128xbf16> to vector<1x16x32xbf16>
    %61 = vector.extract_strided_slice %46 {offsets = [0, 0, 96], sizes = [1, 16, 32], strides = [1, 1, 1]} : vector<1x16x128xbf16> to vector<1x16x32xbf16>
    "tpu.trace_start"() <{level = 10 : i32, message = "bqd,bkd->bqk"}> : () -> ()
    %cst_20 = arith.constant dense<0.000000e+00> : vector<1x16x16xf32>
    %62 = tpu.matmul %60, %61, %cst_20 {dimension_numbers = #tpu.dot_dimension_numbers<[2], [2], [1], [1], [0, 0, 0, 1, 1, 1], [0], [0]>} : vector<1x16x32xbf16>, vector<1x16x32xbf16>, vector<1x16x16xf32> -> vector<1x16x16xf32>
    "tpu.trace_stop"() : () -> ()
    %63 = tpu.concatenate %53, %56, %59, %62 in 0 : vector<1x16x16xf32>, vector<1x16x16xf32>, vector<1x16x16xf32>, vector<1x16x16xf32> -> vector<4x16x16xf32>
    %cst_21 = arith.constant 0.176776692 : f32
    %64 = vector.broadcast %cst_21 : f32 to vector<4x16x16xf32>
    %65 = arith.mulf %63, %64 : vector<4x16x16xf32>
    %cst_22 = arith.constant -1.000000e+30 : f32
    %66 = vector.shape_cast %50 : vector<16x16xi1> to vector<1x16x16xi1>
    %67 = vector.broadcast %66 : vector<1x16x16xi1> to vector<4x16x16xi1>
    %68 = vector.broadcast %cst_22 : f32 to vector<4x16x16xf32>
    %69 = arith.select %67, %65, %68 : vector<4x16x16xi1>, vector<4x16x16xf32>
    %cst_23 = arith.constant dense<0xFF800000> : vector<4x16xf32>
    %70 = vector.multi_reduction <maximumf>, %69, %cst_23 [2] : vector<4x16x16xf32> to vector<4x16xf32>
    %71 = vector.shape_cast %70 : vector<4x16xf32> to vector<4x16x1xf32>
    %72 = vector.broadcast %71 : vector<4x16x1xf32> to vector<4x16x16xf32>
    %73 = arith.subf %69, %72 : vector<4x16x16xf32>
    %74 = math.exp %73 : vector<4x16x16xf32>
    %cst_24 = arith.constant dense<0.000000e+00> : vector<4x16xf32>
    %75 = vector.multi_reduction <add>, %74, %cst_24 [2] : vector<4x16x16xf32> to vector<4x16xf32>
    %76 = vector.shape_cast %75 : vector<4x16xf32> to vector<4x16x1xf32>
    %77 = tpu.reciprocal %76 {approx = true} : vector<4x16x1xf32> -> vector<4x16x1xf32>
    %78 = vector.broadcast %77 : vector<4x16x1xf32> to vector<4x16x16xf32>
    %79 = arith.mulf %74, %78 : vector<4x16x16xf32>
    %80 = arith.truncf %79 : vector<4x16x16xf32> to vector<4x16x16xbf16>
    %c0_25 = arith.constant 0 : index
    %c0_26 = arith.constant 0 : index
    %81 = vector.load %arg5[%c0_25, %c0_26] : memref<128x128xbf16, #tpu.memory_space<vmem>>, vector<128x128xbf16>
    %c0_27 = arith.constant 0 : index
    %c0_28 = arith.constant 0 : index
    %82 = vector.load %arg6[%c0_27, %c0_28] : memref<1x128xf32, #tpu.memory_space<vmem>>, vector<1x128xf32>
    %83 = vector.broadcast %82 : vector<1x128xf32> to vector<16x128xf32>
    %84 = arith.addf %1, %83 : vector<16x128xf32>
    %85 = vector.extract_strided_slice %80 {offsets = [0, 0, 0], sizes = [1, 16, 16], strides = [1, 1, 1]} : vector<4x16x16xbf16> to vector<1x16x16xbf16>
    %86 = vector.extract_strided_slice %47 {offsets = [0, 0, 0], sizes = [1, 16, 32], strides = [1, 1, 1]} : vector<1x16x128xbf16> to vector<1x16x32xbf16>
    "tpu.trace_start"() <{level = 10 : i32, message = "bqk,bkd->bqd"}> : () -> ()
    %cst_29 = arith.constant dense<0.000000e+00> : vector<1x16x32xf32>
    %87 = tpu.matmul %85, %86, %cst_29 {dimension_numbers = #tpu.dot_dimension_numbers<[2], [1], [1], [2], [0, 0, 0, 1, 1, 2], [0], [0]>} : vector<1x16x16xbf16>, vector<1x16x32xbf16>, vector<1x16x32xf32> -> vector<1x16x32xf32>
    "tpu.trace_stop"() : () -> ()
    %88 = vector.shape_cast %87 : vector<1x16x32xf32> to vector<16x32xf32>
    %89 = arith.truncf %88 : vector<16x32xf32> to vector<16x32xbf16>
    %90 = vector.extract_strided_slice %81 {offsets = [0, 0], sizes = [32, 128], strides = [1, 1]} : vector<128x128xbf16> to vector<32x128xbf16>
    %cst_30 = arith.constant dense<0.000000e+00> : vector<16x128xf32>
    %91 = tpu.matmul %89, %90, %cst_30 {dimension_numbers = #tpu.dot_dimension_numbers<[1], [0], [0], [1], [0, 0, 1, 1], [], []>} : vector<16x32xbf16>, vector<32x128xbf16>, vector<16x128xf32> -> vector<16x128xf32>
    %92 = arith.addf %84, %91 : vector<16x128xf32>
    %93 = vector.extract_strided_slice %80 {offsets = [1, 0, 0], sizes = [1, 16, 16], strides = [1, 1, 1]} : vector<4x16x16xbf16> to vector<1x16x16xbf16>
    %94 = vector.extract_strided_slice %47 {offsets = [0, 0, 32], sizes = [1, 16, 32], strides = [1, 1, 1]} : vector<1x16x128xbf16> to vector<1x16x32xbf16>
    "tpu.trace_start"() <{level = 10 : i32, message = "bqk,bkd->bqd"}> : () -> ()
    %cst_31 = arith.constant dense<0.000000e+00> : vector<1x16x32xf32>
    %95 = tpu.matmul %93, %94, %cst_31 {dimension_numbers = #tpu.dot_dimension_numbers<[2], [1], [1], [2], [0, 0, 0, 1, 1, 2], [0], [0]>} : vector<1x16x16xbf16>, vector<1x16x32xbf16>, vector<1x16x32xf32> -> vector<1x16x32xf32>
    "tpu.trace_stop"() : () -> ()
    %96 = vector.shape_cast %95 : vector<1x16x32xf32> to vector<16x32xf32>
    %97 = arith.truncf %96 : vector<16x32xf32> to vector<16x32xbf16>
    %98 = vector.extract_strided_slice %81 {offsets = [32, 0], sizes = [32, 128], strides = [1, 1]} : vector<128x128xbf16> to vector<32x128xbf16>
    %cst_32 = arith.constant dense<0.000000e+00> : vector<16x128xf32>
    %99 = tpu.matmul %97, %98, %cst_32 {dimension_numbers = #tpu.dot_dimension_numbers<[1], [0], [0], [1], [0, 0, 1, 1], [], []>} : vector<16x32xbf16>, vector<32x128xbf16>, vector<16x128xf32> -> vector<16x128xf32>
    %100 = arith.addf %92, %99 : vector<16x128xf32>
    %101 = vector.extract_strided_slice %80 {offsets = [2, 0, 0], sizes = [1, 16, 16], strides = [1, 1, 1]} : vector<4x16x16xbf16> to vector<1x16x16xbf16>
    %102 = vector.extract_strided_slice %47 {offsets = [0, 0, 64], sizes = [1, 16, 32], strides = [1, 1, 1]} : vector<1x16x128xbf16> to vector<1x16x32xbf16>
    "tpu.trace_start"() <{level = 10 : i32, message = "bqk,bkd->bqd"}> : () -> ()
    %cst_33 = arith.constant dense<0.000000e+00> : vector<1x16x32xf32>
    %103 = tpu.matmul %101, %102, %cst_33 {dimension_numbers = #tpu.dot_dimension_numbers<[2], [1], [1], [2], [0, 0, 0, 1, 1, 2], [0], [0]>} : vector<1x16x16xbf16>, vector<1x16x32xbf16>, vector<1x16x32xf32> -> vector<1x16x32xf32>
    "tpu.trace_stop"() : () -> ()
    %104 = vector.shape_cast %103 : vector<1x16x32xf32> to vector<16x32xf32>
    %105 = arith.truncf %104 : vector<16x32xf32> to vector<16x32xbf16>
    %106 = vector.extract_strided_slice %81 {offsets = [64, 0], sizes = [32, 128], strides = [1, 1]} : vector<128x128xbf16> to vector<32x128xbf16>
    %cst_34 = arith.constant dense<0.000000e+00> : vector<16x128xf32>
    %107 = tpu.matmul %105, %106, %cst_34 {dimension_numbers = #tpu.dot_dimension_numbers<[1], [0], [0], [1], [0, 0, 1, 1], [], []>} : vector<16x32xbf16>, vector<32x128xbf16>, vector<16x128xf32> -> vector<16x128xf32>
    %108 = arith.addf %100, %107 : vector<16x128xf32>
    %109 = vector.extract_strided_slice %80 {offsets = [3, 0, 0], sizes = [1, 16, 16], strides = [1, 1, 1]} : vector<4x16x16xbf16> to vector<1x16x16xbf16>
    %110 = vector.extract_strided_slice %47 {offsets = [0, 0, 96], sizes = [1, 16, 32], strides = [1, 1, 1]} : vector<1x16x128xbf16> to vector<1x16x32xbf16>
    "tpu.trace_start"() <{level = 10 : i32, message = "bqk,bkd->bqd"}> : () -> ()
    %cst_35 = arith.constant dense<0.000000e+00> : vector<1x16x32xf32>
    %111 = tpu.matmul %109, %110, %cst_35 {dimension_numbers = #tpu.dot_dimension_numbers<[2], [1], [1], [2], [0, 0, 0, 1, 1, 2], [0], [0]>} : vector<1x16x16xbf16>, vector<1x16x32xbf16>, vector<1x16x32xf32> -> vector<1x16x32xf32>
    "tpu.trace_stop"() : () -> ()
    %112 = vector.shape_cast %111 : vector<1x16x32xf32> to vector<16x32xf32>
    %113 = arith.truncf %112 : vector<16x32xf32> to vector<16x32xbf16>
    %114 = vector.extract_strided_slice %81 {offsets = [96, 0], sizes = [32, 128], strides = [1, 1]} : vector<128x128xbf16> to vector<32x128xbf16>
    %cst_36 = arith.constant dense<0.000000e+00> : vector<16x128xf32>
    %115 = tpu.matmul %113, %114, %cst_36 {dimension_numbers = #tpu.dot_dimension_numbers<[1], [0], [0], [1], [0, 0, 1, 1], [], []>} : vector<16x32xbf16>, vector<32x128xbf16>, vector<16x128xf32> -> vector<16x128xf32>
    %116 = arith.addf %108, %115 : vector<16x128xf32>
    %c0_37 = arith.constant 0 : index
    %c0_38 = arith.constant 0 : index
    %117 = vector.load %arg7[%c0_37, %c0_38] : memref<1x128xf32, #tpu.memory_space<vmem>>, vector<1x128xf32>
    %c0_39 = arith.constant 0 : index
    %c0_40 = arith.constant 0 : index
    %118 = vector.load %arg8[%c0_39, %c0_40] : memref<1x128xf32, #tpu.memory_space<vmem>>, vector<1x128xf32>
    %cst_41 = arith.constant dense<0.000000e+00> : vector<16xf32>
    %119 = vector.multi_reduction <add>, %116, %cst_41 [1] : vector<16x128xf32> to vector<16xf32>
    %120 = vector.shape_cast %119 : vector<16xf32> to vector<16x1xf32>
    %cst_42 = arith.constant 1.280000e+02 : f32
    %121 = vector.broadcast %cst_42 : f32 to vector<16x1xf32>
    %122 = arith.divf %120, %121 : vector<16x1xf32>
    %123 = vector.broadcast %122 : vector<16x1xf32> to vector<16x128xf32>
    %124 = arith.subf %116, %123 : vector<16x128xf32>
    %125 = arith.mulf %124, %124 : vector<16x128xf32>
    %cst_43 = arith.constant dense<0.000000e+00> : vector<16xf32>
    %126 = vector.multi_reduction <add>, %125, %cst_43 [1] : vector<16x128xf32> to vector<16xf32>
    %127 = vector.shape_cast %126 : vector<16xf32> to vector<16x1xf32>
    %cst_44 = arith.constant 1.280000e+02 : f32
    %128 = vector.broadcast %cst_44 : f32 to vector<16x1xf32>
    %129 = arith.divf %127, %128 : vector<16x1xf32>
    %cst_45 = arith.constant 9.99999974E-6 : f32
    %130 = vector.broadcast %cst_45 : f32 to vector<16x1xf32>
    %131 = arith.addf %129, %130 : vector<16x1xf32>
    %132 = math.rsqrt %131 : vector<16x1xf32>
    %133 = vector.broadcast %132 : vector<16x1xf32> to vector<16x128xf32>
    %134 = arith.mulf %124, %133 : vector<16x128xf32>
    %135 = vector.broadcast %117 : vector<1x128xf32> to vector<16x128xf32>
    %136 = arith.mulf %134, %135 : vector<16x128xf32>
    %137 = vector.broadcast %118 : vector<1x128xf32> to vector<16x128xf32>
    %138 = arith.addf %136, %137 : vector<16x128xf32>
    %139 = arith.truncf %138 : vector<16x128xf32> to vector<16x128xbf16>
    %c0_46 = arith.constant 0 : index
    %c0_47 = arith.constant 0 : index
    %140 = vector.load %arg9[%c0_46, %c0_47] : memref<128x512xbf16, #tpu.memory_space<vmem>>, vector<128x512xbf16>
    %cst_48 = arith.constant dense<0.000000e+00> : vector<16x512xf32>
    %141 = tpu.matmul %139, %140, %cst_48 {dimension_numbers = #tpu.dot_dimension_numbers<[1], [0], [0], [1], [0, 0, 1, 1], [], []>} : vector<16x128xbf16>, vector<128x512xbf16>, vector<16x512xf32> -> vector<16x512xf32>
    %c0_49 = arith.constant 0 : index
    %c0_50 = arith.constant 0 : index
    %142 = vector.load %arg10[%c0_49, %c0_50] : memref<1x512xf32, #tpu.memory_space<vmem>>, vector<1x512xf32>
    %143 = vector.broadcast %142 : vector<1x512xf32> to vector<16x512xf32>
    %144 = arith.addf %141, %143 : vector<16x512xf32>
    %cst_51 = arith.constant 0.000000e+00 : f32
    %145 = vector.broadcast %cst_51 : f32 to vector<16x512xf32>
    %146 = arith.maximumf %144, %145 : vector<16x512xf32>
    %147 = arith.truncf %146 : vector<16x512xf32> to vector<16x512xbf16>
    %c0_52 = arith.constant 0 : index
    %c0_53 = arith.constant 0 : index
    %148 = vector.load %arg11[%c0_52, %c0_53] : memref<512x128xbf16, #tpu.memory_space<vmem>>, vector<512x128xbf16>
    %cst_54 = arith.constant dense<0.000000e+00> : vector<16x128xf32>
    %149 = tpu.matmul %147, %148, %cst_54 {dimension_numbers = #tpu.dot_dimension_numbers<[1], [0], [0], [1], [0, 0, 1, 1], [], []>} : vector<16x512xbf16>, vector<512x128xbf16>, vector<16x128xf32> -> vector<16x128xf32>
    %c0_55 = arith.constant 0 : index
    %c0_56 = arith.constant 0 : index
    %150 = vector.load %arg12[%c0_55, %c0_56] : memref<1x128xf32, #tpu.memory_space<vmem>>, vector<1x128xf32>
    %151 = vector.broadcast %150 : vector<1x128xf32> to vector<16x128xf32>
    %152 = arith.addf %149, %151 : vector<16x128xf32>
    %153 = arith.addf %116, %152 : vector<16x128xf32>
    %154 = vector.shape_cast %153 : vector<16x128xf32> to vector<1x16x128xf32>
    %c0_57 = arith.constant 0 : index
    %c0_58 = arith.constant 0 : index
    %c0_59 = arith.constant 0 : index
    %155 = vector.load %arg15[%c0_57, %c0_58, %c0_59] : memref<1x16x128xf32, #tpu.memory_space<vmem>>, vector<1x16x128xf32>
    tpu.vector_store %arg15[%c0_57, %c0_58, %c0_59], %154 {strides = array<i32>} : memref<1x16x128xf32, #tpu.memory_space<vmem>>, vector<1x16x128xf32>,
    return
  }
  func.func @transform_0(%arg0: i32) -> (i32, i32, i32) {
    %c0_i32 = arith.constant 0 : i32
    %c0_i32_0 = arith.constant 0 : i32
    %c0_i32_1 = arith.constant 0 : i32
    return %arg0, %c0_i32, %c0_i32_0 : i32, i32, i32
  }
  func.func @transform_1(%arg0: i32) -> (i32, i32) {
    %c0_i32 = arith.constant 0 : i32
    %c0_i32_0 = arith.constant 0 : i32
    %c0_i32_1 = arith.constant 0 : i32
    return %c0_i32, %c0_i32_0 : i32, i32
  }
  func.func @transform_2(%arg0: i32) -> (i32, i32) {
    %c0_i32 = arith.constant 0 : i32
    %c0_i32_0 = arith.constant 0 : i32
    %c0_i32_1 = arith.constant 0 : i32
    return %c0_i32, %c0_i32_0 : i32, i32
  }
  func.func @transform_3(%arg0: i32) -> (i32, i32) {
    %c0_i32 = arith.constant 0 : i32
    %c0_i32_0 = arith.constant 0 : i32
    %c0_i32_1 = arith.constant 0 : i32
    return %c0_i32, %c0_i32_0 : i32, i32
  }
  func.func @transform_4(%arg0: i32) -> (i32, i32) {
    %c0_i32 = arith.constant 0 : i32
    %c0_i32_0 = arith.constant 0 : i32
    %c0_i32_1 = arith.constant 0 : i32
    return %c0_i32, %c0_i32_0 : i32, i32
  }
  func.func @transform_5(%arg0: i32) -> (i32, i32) {
    %c0_i32 = arith.constant 0 : i32
    %c0_i32_0 = arith.constant 0 : i32
    %c0_i32_1 = arith.constant 0 : i32
    return %c0_i32, %c0_i32_0 : i32, i32
  }
  func.func @transform_6(%arg0: i32) -> (i32, i32) {
    %c0_i32 = arith.constant 0 : i32
    %c0_i32_0 = arith.constant 0 : i32
    %c0_i32_1 = arith.constant 0 : i32
    return %c0_i32, %c0_i32_0 : i32, i32
  }
  func.func @transform_7(%arg0: i32) -> (i32, i32) {
    %c0_i32 = arith.constant 0 : i32
    %c0_i32_0 = arith.constant 0 : i32
    %c0_i32_1 = arith.constant 0 : i32
    return %c0_i32, %c0_i32_0 : i32, i32
  }
  func.func @transform_8(%arg0: i32) -> (i32, i32) {
    %c0_i32 = arith.constant 0 : i32
    %c0_i32_0 = arith.constant 0 : i32
    %c0_i32_1 = arith.constant 0 : i32
    return %c0_i32, %c0_i32_0 : i32, i32
  }
  func.func @transform_9(%arg0: i32) -> (i32, i32) {
    %c0_i32 = arith.constant 0 : i32
    %c0_i32_0 = arith.constant 0 : i32
    %c0_i32_1 = arith.constant 0 : i32
    return %c0_i32, %c0_i32_0 : i32, i32
  }
  func.func @transform_10(%arg0: i32) -> (i32, i32) {
    %c0_i32 = arith.constant 0 : i32
    %c0_i32_0 = arith.constant 0 : i32
    %c0_i32_1 = arith.constant 0 : i32
    return %c0_i32, %c0_i32_0 : i32, i32
  }
  func.func @transform_11(%arg0: i32) -> (i32, i32) {
    %c0_i32 = arith.constant 0 : i32
    %c0_i32_0 = arith.constant 0 : i32
    %c0_i32_1 = arith.constant 0 : i32
    return %c0_i32, %c0_i32_0 : i32, i32
  }
  func.func @transform_12(%arg0: i32) -> (i32, i32) {
    %c0_i32 = arith.constant 0 : i32
    %c0_i32_0 = arith.constant 0 : i32
    %c0_i32_1 = arith.constant 0 : i32
    return %c0_i32, %c0_i32_0 : i32, i32
  }
  func.func @transform_13(%arg0: i32) -> (i32, i32) {
    %c0_i32 = arith.constant 0 : i32
    %c0_i32_0 = arith.constant 0 : i32
    %c0_i32_1 = arith.constant 0 : i32
    return %c0_i32, %c0_i32_0 : i32, i32
  }
  func.func @transform_14(%arg0: i32) -> (i32, i32, i32) {
    %c0_i32 = arith.constant 0 : i32
    %c0_i32_0 = arith.constant 0 : i32
    %c0_i32_1 = arith.constant 0 : i32
    return %arg0, %c0_i32, %c0_i32_0 : i32, i32, i32
  }
}

</mosaic_0001>

<bundles_post_ra>
// kernel: gpt_forward.5
= control target key start
LH: loop header
LB: loop body
LE: loop exit
PB: predicated region body
PF: predicated region fallthrough
CT: control target
= control target key end

     0   :  { %10 = vsyncpa [#allocation3], 0  ;;  %s768_s0 = inlined_call_operand.vmem [shape: f32[32,128], index: 0, kind: input, shape index: {}]   ;;  %s769_s1 = inlined_call_operand.vmem [shape: f32[1,128], index: 1, kind: input, shape index: {}]   ;;  %s770_s2 = inlined_call_operand.vmem [shape: f32[1,128], index: 2, kind: input, shape index: {}]   ;;  %s771_s3 = inlined_call_operand.vmem [shape: bf16[128,128], index: 3, kind: input, shape index: {}]   ;;  %s772_s4 = inlined_call_operand.vmem [shape: f32[1,128], index: 4, kind: input, shape index: {}]   ;;  %s773_s5 = inlined_call_operand.hbm [shape: f32[32,128], index: 5, kind: output, shape index: {}]  }
   0x1   :  { %12 = vsyncpa [#allocation3 + $0x1], 0  ;;  %s651_s18 = smov 0   ;;  %s653_s19 = smov 0  }
   0x2   :  { %s655_s20 = smov 0   ;;  %s657_s21 = smov 0  }
   0x3 LB: > { %s672_s22 = sadd.s32 4294967295, %s616_s21   ;;  %s450_s23 = sadd.s32 4294967294, %s616_s21   ;;  %s616_s21 = sphi %s657_s21, %s779_s21   ;;  %s612_s20 = sphi %s655_s20, %s778_s20   ;;  %s608_s19 = sphi %s653_s19, %s777_s19   ;;  %s604_s18 = sphi %s651_s18, %s776_s18  }
   0x4   : > { %s676_s24 = sadd.s32 1, %s616_s21   ;;  %s135_s25 = sadd.s32 1, %s612_s20 }
   0x5   : > { %s132_s26 = ssub.s32 %s616_s21, %s676_s24  ;;  %p145_p0 = scmp.ne.s32.totalorder %s612_s20, %s608_s19 }
   0x6   : > { %p133_p1 = scmp.eq.s32.totalorder %s132_s26, 0  ;;  %p146_p2 = scmp.eq.s32.totalorder %s672_s22, 1 }
   0x7   : > { %p151_p3 = scmp.ne.s32.totalorder %s608_s19, %s604_s18  ;;  %p152_p4 = scmp.eq.s32.totalorder %s450_s23, 1 }
   0x8   : > { %s687_s27 = scalar_select %p133_p1, %s612_s20, %s135_s25  }
   0x9   : > { %p689_p5 = por %p146_p2, %p145_p0  ;;  %p693_p6 = por %p152_p4, %p151_p3 }
   0xa   : > { %p453_p7 = scmp.ge.s32.totalorder %s616_s21, 1  ;;  %p191_p8 = scmp.lt.s32.totalorder %s616_s21, 3 }
   0xc   : > { %p192_p9 = pnand %p453_p7, %p191_p8 }
   0xd   : > { %s455_s30 = sshll.u32 (!%p192_p9), %s672_s22, 1  ;;  %s216_s14 = sand.u32 (!%p192_p9), 1, %s608_s19  }
   0xe   : > { %195 = sbr.rel (%p192_p9) target bundleno = 439 (0x1b7), region = 40  ;;  %p220_p10 = scmp.lt.s32.totalorder (!%p192_p9), %s455_s30, 3 }
   0xf   : > { %s454_s15 = sshll.u32 (!%p192_p9), %s216_s14, 4  ;;  %s502_s23 = sshll.u32 (!%p192_p9), %s672_s22, 4 }
  0x10   : > { %s574_s13 = scalar_lea.hbm (!%p192_p9), %s773_s5, 32 }
  0x13   : > { %s781_s30 = smov (!%p220_p10, %s455_s30), 3  ;;  %v618_v2 = vmov 128.0   ;;  %v501_v17 = vld [vmem:[%s771_s3 + $0x38] sm:$0xff]  ;;  %v500_v18 = vld [vmem:[%s771_s3 + $0x30] sm:$0xff]  ;;  %v499_v19 = vld [vmem:[%s771_s3 + $0x28] sm:$0xff] }
  0x14   : > { %s456_s6 = sshll.u32 %s781_s30, 3  ;;  %548 = vrcp.f32 %v618_v2  ;;  %356 = vmatpush.bf16.msra.mxu0 %v501_v17  ;;  %v498_v20 = vld [vmem:[%s771_s3 + $0x20] sm:$0xff]  ;;  %v497_v21 = vld [vmem:[%s771_s3 + $0x18] sm:$0xff]  ;;  %v496_v22 = vld [vmem:[%s771_s3 + $0x10] sm:$0xff]  ;;  %s384_s30 = scalar_lea.hbm %s773_s5, %s502_s23 }
  0x15   : > { %s223_s9 = scalar_lea.vmem %s768_s0, %s456_s6  ;;  %v495_v23 = vld [vmem:[%s771_s3 + $0x8] sm:$0xff]  ;;  %v494_v25 = vld [vmem:[%s771_s3] sm:$0xff]  ;;  %s218_s6 = scalar_lea.vmem [#allocation2], %s454_s15 }
  0x16   : > { %v226_v0 = vld [vmem:[%s223_s9] sm:$0xff]  ;;  %v227_v1 = vld [vmem:[%s223_s9 + $0x8] sm:$0xff]  ;;  %s385_s7 = sshll.u32 %s218_s6, 4  ;;  %s387_s8 = sshll.u32 %s384_s30, 4  ;;  %s386_s7 = int_to_ptr.vmem [resolvable:$true] %s385_s7  ;;  %s388_s8 = int_to_ptr.hbm [resolvable:$true] %s387_s8 }
  0x17   : > { %230 = vadd.xlane.f32.xlu0 %v226_v0  ;;  %v545_v44 = vld [vmem:[%s769_s1] ss:$0 sm:$0xff]  ;;  %s373_s9 = scalar_lea.sflag [#allocation3], %s216_s14  ;;  %s568_s10 = sshra.s32 %s388_s8, 4  ;;  %s569_s10 = int_to_ptr.hbm [resolvable:$true] %s568_s10 }
  0x18   : > { %357 = vmatpush.bf16.msra.mxu0 %v500_v18  ;;  %v546_v49 = vld [vmem:[%s770_s2] ss:$0 sm:$0xff]  ;;  %s570_s22 = scalar_lea.hbm %s569_s10, 16  ;;  %p575_p0 = scmp.lt.s32.totalorder %s569_s10, %s773_s5 }
  0x19   : > { %v547_v54 = vld [vmem:[%s772_s4] ss:$0 sm:$0xff]  ;;  %p571_p11 = scmp.ne.s32.totalorder %s569_s10, %s570_s22  ;;  %p576_p1 = scmp.lt.s32.totalorder %s574_s13, %s570_s22 }
  0x1a   : > { %v549_v3 = vpop.eup %548 }
  0x1b   : > { %v235_v4 = vmul.f32 128.0, %v549_v3  ;;  %vm239_vm0 = vweird.f32 %v549_v3  ;;  %p572_p12 = pnand %p571_p11, %p689_p5  ;;  %p577_p2 = por %p576_p1, %p575_p0 }
  0x1c   : > { %358 = vmatpush.bf16.msra.mxu0 %v499_v19 }
  0x1d   : > { %v236_v5 = vsub.f32 1.0, %v235_v4  ;;  %p573_p13 = pneg %p572_p12 }
  0x1f   : > { %232 = vadd.xlane.f32.xlu0 %v227_v1  ;;  %v237_v6 = vmul.f32 %v549_v3, %v236_v5  ;;  %p578_p3 = pnand %p577_p2, %p573_p13 }
  0x20   : > { %359 = vmatpush.bf16.msra.mxu0 %v498_v20 }
  0x21   : > { %v238_v7 = vadd.f32 %v549_v3, %v237_v6 }
  0x23   : > { %v240_v8 = vsel %vm239_vm0, %v549_v3, %v238_v7 }
  0x24   : > { %360 = vmatpush.bf16.msra.mxu0 %v497_v21 }
  0x28   : > { %361 = vmatpush.bf16.msra.mxu0 %v496_v22 }
  0x2c   : > { %362 = vmatpush.bf16.msra.mxu0 %v495_v23 }
  0x30   : > { %363 = vmatpush.bf16.msra.mxu0 %v494_v25 }
  0x8a   : > { %v231_v9 = vpop.xlane.xlu0 %230 }
  0x8b   : > { %v241_v10 = vmul.f32 %v240_v8, %v231_v9 }
  0x8d   : > { %v243_v11 = vsub.f32 %v226_v0, %v241_v10 }
  0x8f   : > { %v245_v12 = vmul.f32 %v243_v11, %v243_v11 }
  0x91   : > { %247 = vadd.xlane.f32.xlu1 %v245_v12 }
  0x92   : > { %v233_v13 = vpop.xlane.xlu0 %232 }
  0x93   : > { %v242_v14 = vmul.f32 %v240_v8, %v233_v13 }
  0x95   : > { %v244_v15 = vsub.f32 %v227_v1, %v242_v14 }
  0x97   : > { %v246_v16 = vmul.f32 %v244_v15, %v244_v15 }
  0x99   : > { %249 = vadd.xlane.f32.xlu1 %v246_v16 }
 0x104   : > { %v248_v24 = vpop.xlane.xlu1 %247 }
 0x105   : > { %v251_v26 = vmul.f32 %v248_v24, %v240_v8 }
 0x107   : > { %v253_v27 = vadd.f32 1e-05, %v251_v26 }
 0x109   : > { %550 = vrsqrt.f32 %v253_v27  ;;  %vm261_vm2 = vweird.f32 %v253_v27 }
 0x10c   : > { %v250_v28 = vpop.xlane.xlu1 %249 }
 0x10d   : > { %v252_v29 = vmul.f32 %v250_v28, %v240_v8 }
 0x10f   : > { %v551_v30 = vpop.eup %550  ;;  %v254_v31 = vadd.f32 1e-05, %v252_v29 }
 0x110   : > { %v256_v32 = vmul.f32 %v551_v30, %v253_v27  ;;  %vm262_vm1 = vweird.f32 %v551_v30 }
 0x111   : > { %552 = vrsqrt.f32 %v254_v31  ;;  %vm263_vm3 = vmor %vm261_vm2, %vm262_vm1  ;;  %vm271_vm5 = vweird.f32 %v254_v31 }
 0x112   : > { %v257_v33 = vmul.f32 %v551_v30, %v256_v32 }
 0x114   : > { %v258_v34 = vmul.f32 0.5, %v257_v33 }
 0x116   : > { %v259_v35 = vsub.f32 1.5, %v258_v34 }
 0x117   : > { %v553_v36 = vpop.eup %552 }
 0x118   : > { %v260_v37 = vmul.f32 %v551_v30, %v259_v35  ;;  %v266_v38 = vmul.f32 %v553_v36, %v254_v31  ;;  %vm272_vm4 = vweird.f32 %v553_v36 }
 0x119   : > { %vm273_vm6 = vmor %vm271_vm5, %vm272_vm4 }
 0x11a   : > { %v267_v39 = vmul.f32 %v553_v36, %v266_v38  ;;  %v264_v41 = vsel %vm263_vm3, %v551_v30, %v260_v37 }
 0x11b   : > { %v275_v43 = vmul.f32 %v264_v41, %v243_v11 }
 0x11c   : > { %v268_v40 = vmul.f32 0.5, %v267_v39 }
 0x11d   : > { %v280_v48 = vmul.f32 %v545_v44, %v275_v43 }
 0x11e   : > { %v269_v42 = vsub.f32 1.5, %v268_v40 }
 0x11f   : > { %v285_v51 = vadd.f32 %v546_v49, %v280_v48 }
 0x120   : > { %v270_v45 = vmul.f32 %v553_v36, %v269_v42 }
 0x122   : > { %v274_v46 = vsel %vm273_vm6, %v553_v36, %v270_v45 }
 0x123   : > { %v276_v47 = vmul.f32 %v274_v46, %v244_v15 }
 0x125   : > { %v281_v50 = vmul.f32 %v545_v44, %v276_v47 }
 0x127   : > { %v286_v52 = vadd.f32 %v546_v49, %v281_v50 }
 0x129   : > { %v287_v53 = vpack.c.bf16 %v286_v52, %v285_v51 }
 0x12b   : > { %364 = vmatmul.bf16.vlgmr.msra.gmra.mxu0 %v287_v53 }
 0x1a8   : > { %v365_v55 = vpop.f32.mrf.mxu0 }
 0x1a9   : > { %v366_v56 = vadd.f32 %v547_v54, %v365_v55 }
 0x1ab   : > { %370 = vst [vmem:[%s218_s6] sm:$0xff] %v366_v56 }
 0x1b0   : > { %v367_v57 = vpop.f32.mrf.mxu0 }
 0x1b1   : > { %v368_v58 = vadd.f32 %v547_v54, %v367_v57 }
 0x1b3   : > { %371 = vst [vmem:[%s218_s6 + $0x8] sm:$0xff] %v368_v58 }
 0x1b4   : > { %581 = shalt.err (!%p578_p3)
}
 0x1b5   : > { %s619_s14 = smov 128   ;;  %s620_s17 = smov 8  }
 0x1b6   : > { %503 = dma.vmem_to_hbm [thread:$0]  (%p689_p5), %s386_s7, 256, %s388_s8, %s373_s9, %s619_s14, %s619_s14, %s620_s17  }
 0x1b7 PF: > { %p509_p4 = scmp.ge.s32.totalorder %s616_s21, 2  ;;  %s402_s23 = sand.u32 1, %s604_s18  }
 0x1b8   : > { %s403_s25 = scalar_lea.sflag [#allocation3], %s402_s23 }
 0x1b9   : > { %p506_p7 = pnand %p509_p4, %p693_p6 }
 0x1bb   : > { %p507_p8 = pneg %p506_p7 }
 0x1bd   : > { %599 = dma.done.wait (%p507_p8), %s403_s25, 256  }
 0x1be   : > { %601 = vsyncadd (%p507_p8), %s403_s25, 4294967040  ;;  %p15_p9 = scmp.ge.s32.totalorder %s676_s24, 4   ;;  %s776_s18 = smov %s608_s19 }
 0x1bf   : > { %s777_s19 = smov %s612_s20  ;;  %s778_s20 = smov %s687_s27 }
 0x1c0   : > { %s779_s21 = smov %s676_s24  ;;  %17 = sbr.rel (!%p15_p9) target bundleno = 3 (0x3), region = 75 }
 0x1c5   :  { %409 = vsyncpa [#allocation3], 1 }
 0x1c6   :  { %411 = vsyncpa [#allocation3 + $0x1], 1 }

// kernel: gpt_forward.3
= control target key start
LH: loop header
LB: loop body
LE: loop exit
PB: predicated region body
PF: predicated region fallthrough
CT: control target
= control target key end

     0   :  { %19 = vsyncpa [#allocation3], 0  ;;  %s2870_s29 = smov 0   ;;  %s3499_s0 = inlined_call_operand.vmem [shape: f32[2,16,128], index: 0, kind: input, shape index: {}]   ;;  %s3500_s1 = inlined_call_operand.vmem [shape: f32[1,128], index: 1, kind: input, shape index: {}]   ;;  %s3501_s2 = inlined_call_operand.vmem [shape: f32[1,128], index: 2, kind: input, shape index: {}]   ;;  %s3502_s3 = inlined_call_operand.vmem [shape: bf16[128,640], index: 3, kind: input, shape index: {}]   ;;  %s3503_s4 = inlined_call_operand.vmem [shape: bf16[128,128], index: 4, kind: input, shape index: {}]   ;;  %s3504_s5 = inlined_call_operand.vmem [shape: f32[1,128], index: 5, kind: input, shape index: {}]   ;;  %s3505_s6 = inlined_call_operand.vmem [shape: f32[1,128], index: 6, kind: input, shape index: {}]   ;;  %s3506_s7 = inlined_call_operand.vmem [shape: f32[1,128], index: 7, kind: input, shape index: {}]   ;;  %s3507_s8 = inlined_call_operand.vmem [shape: bf16[128,512], index: 8, kind: input, shape index: {}]   ;;  %s3508_s9 = inlined_call_operand.vmem [shape: f32[1,512], index: 9, kind: input, shape index: {}]   ;;  %s3509_s10 = inlined_call_operand.hbm [shape: bf16[512,128], index: 10, kind: input, shape index: {}]   ;;  %s3510_s11 = inlined_call_operand.vmem [shape: f32[1,128], index: 11, kind: input, shape index: {}]   ;;  %s3511_s12 = inlined_call_operand.vmem [shape: f32[16,128], index: 12, kind: input, shape index: {}]   ;;  %s3512_s13 = inlined_call_operand.vmem [shape: f32[16,128], index: 13, kind: input, shape index: {}]   ;;  %s3513_s14 = inlined_call_operand.vmem [shape: f32[2,16,128], index: 14, kind: output, shape index: {}]  }
   0x1 LB: > { %s393_s16 = sshll.u32 %s3509_s10, 4  ;;  %s2086_s17 = sadd.s32 4294967295, %s2786_s29   ;;  %s2786_s29 = sphi %s2870_s29, %s25_s29   ;;  %s394_s16 = int_to_ptr.hbm [resolvable:$true] %s393_s16 }
   0x2   : > { %p2088_p0 = scmp.ge.s32.totalorder %s2786_s29, 1  ;;  %p355_p1 = scmp.lt.s32.totalorder %s2786_s29, 3 }
   0x3   : > { %p2681_p2 = scmp.eq.s32.totalorder %s2086_s17, 0  ;;  %s2788_s18 = smov [#allocation2]  }
   0x4   : > { %p356_p3 = pnand %p2088_p0, %p355_p1  ;;  %s395_s19 = sshll.u32 %s2788_s18, 4  ;;  %s396_s19 = int_to_ptr.vmem [resolvable:$true] %s395_s19 }
   0x5   : > { %s2789_s20 = smov 64   ;;  %s2790_s21 = smov 4  }
   0x6   : > { %p2677_p4 = pneg %p356_p3  ;;  %428 = sbr.rel (%p356_p3) target bundleno = 1831 (0x727), region = 76 }
   0x8   : > { %p2678_p5 = pnand %p2681_p2, %p2677_p4 }
   0xa   : > { %2680 = dma.hbm_to_vmem [thread:$0]  (!%p2678_p5), %s394_s16, 4096, %s396_s19, [#allocation3], %s2789_s20, %s2789_s20, %s2790_s21  }
   0xb   : > { %2781 = dma.done.wait (%p2681_p2), [#allocation3], 4096  }
   0xc   : > { %2783 = vsyncadd (%p2681_p2), [#allocation3], 4294963200  ;;  %p475_p6 = scmp.lt.s32.totalorder %s2086_s17, 1  ;;  %v2791_v2 = vmov 128.0   ;;  %v2239_v5 = vld [vmem:[%s3502_s3 + $0x118] sm:$0xf] }
   0xd   : > { %2704 = vrcp.f32 %v2791_v2  ;;  %v2598_v6 = vld [vmem:[%s3502_s3 + $0x128] sm:$0xf0]  ;;  %v2219_v7 = vld [vmem:[%s3502_s3 + $0xf0] sm:$0xf]  ;;  %v2593_v9 = vld [vmem:[%s3502_s3 + $0x100] sm:$0xf0] }
   0xe   : > { %s3515_s17 = smov (!%p475_p6, %s2086_s17), 1  ;;  %v2240_v8 = vor.u32 %v2598_v6, %v2239_v5  ;;  %v2220_v11 = vor.u32 %v2593_v9, %v2219_v7  ;;  %v2199_v23 = vld [vmem:[%s3502_s3 + $0xc8] sm:$0xf]  ;;  %v2588_v24 = vld [vmem:[%s3502_s3 + $0xd8] sm:$0xf0]  ;;  %s2792_s30 = smov 64  }
   0xf   : > { %s2559_s22 = sshll.u32 %s3515_s17, 4  ;;  %v2200_v25 = vor.u32 %v2588_v24, %v2199_v23  ;;  %v2179_v26 = vld [vmem:[%s3502_s3 + $0xa0] sm:$0xf]  ;;  %v2583_v27 = vld [vmem:[%s3502_s3 + $0xb0] sm:$0xf0]  ;;  %s2793_s15 = smov 96  }
  0x10   : > { %s479_s25 = scalar_lea.vmem %s3499_s0, %s2559_s22  ;;  %804 = vmatpush.bf16.msra.mxu0 %v2240_v8  ;;  %v2180_v28 = vor.u32 %v2583_v27, %v2179_v26  ;;  %v2596_v29 = vld [vmem:[%s3502_s3 + $0x11c] sm:$0xf]  ;;  %v2241_v30 = vld [vmem:[%s3502_s3 + $0x12c] sm:$0xf0]  ;;  %v2247_v31 = vld [vmem:[%s3502_s3 + $0x120] sm:$0xf]  ;;  %s484_s18 = scalar_lea.vmem %s3513_s14, %s2559_s22 }
  0x11   : > { %v2889_v0 = vld [vmem:[%s479_s25] sm:$0xff]  ;;  %v2892_v1 = vld [vmem:[%s479_s25 + $0x8] sm:$0xff]  ;;  %v2244_v32 = vor.u32 %v2596_v29, %v2241_v30  ;;  %v2599_v33 = vld [vmem:[%s3502_s3 + $0x130] sm:$0xf0]  ;;  %vm913_vm7 = vcmask 261120   ;;  %s2794_s16 = smov 32  }
  0x12   : > { %490 = vadd.xlane.f32.xlu0 %v2889_v0  ;;  %v2597_v34 = vld [vmem:[%s3502_s3 + $0x124] sm:$0xf]  ;;  %v2249_v35 = vld [vmem:[%s3502_s3 + $0x134] sm:$0xf0]  ;;  %v2248_v36 = vor.u32 %v2599_v33, %v2247_v31  ;;  %v2578_v39 = vld [vmem:[%s3502_s3 + $0x88] sm:$0xf0] }
  0x13   : > { %v2705_v3 = vpop.eup %2704  ;;  %v2252_v37 = vor.u32 %v2597_v34, %v2249_v35  ;;  %818 = vmatpush.bf16.msra.mxu1 %v2244_v32  ;;  %v2159_v38 = vld [vmem:[%s3502_s3 + $0x78] sm:$0xf]  ;;  %v2591_v41 = vld [vmem:[%s3502_s3 + $0xf4] sm:$0xf]  ;;  %v2221_v42 = vld [vmem:[%s3502_s3 + $0x104] sm:$0xf0] }
  0x14   : > { %v495_v4 = vmul.f32 128.0, %v2705_v3  ;;  %805 = vmatpush.bf16.msra.mxu0 %v2220_v11  ;;  %vm499_vm0 = vweird.f32 %v2705_v3  ;;  %832 = vmatpush.bf16.msra.mxu2 %v2248_v36  ;;  %v2160_v40 = vor.u32 %v2578_v39, %v2159_v38  ;;  %v2227_v43 = vld [vmem:[%s3502_s3 + $0xf8] sm:$0xf]  ;;  %v2224_v44 = vor.u32 %v2591_v41, %v2221_v42  ;;  %v2594_v45 = vld [vmem:[%s3502_s3 + $0x108] sm:$0xf0] }
  0x15   : > { %846 = vmatpush.bf16.msra.mxu3 %v2252_v37  ;;  %v2592_v46 = vld [vmem:[%s3502_s3 + $0xfc] sm:$0xf]  ;;  %v2229_v47 = vld [vmem:[%s3502_s3 + $0x10c] sm:$0xf0]  ;;  %v2228_v48 = vor.u32 %v2594_v45, %v2227_v43  ;;  %v2573_v51 = vld [vmem:[%s3502_s3 + $0x60] sm:$0xf0] }
  0x16   : > { %v496_v10 = vsub.f32 1.0, %v495_v4  ;;  %v2232_v49 = vor.u32 %v2592_v46, %v2229_v47  ;;  %v2139_v50 = vld [vmem:[%s3502_s3 + $0x50] sm:$0xf]  ;;  %v2586_v53 = vld [vmem:[%s3502_s3 + $0xcc] sm:$0xf]  ;;  %vm1026_vm9 = vcmask 130048  }
  0x17   : > { %819 = vmatpush.bf16.msra.mxu1 %v2224_v44  ;;  %v2140_v52 = vor.u32 %v2573_v51, %v2139_v50  ;;  %v2201_v54 = vld [vmem:[%s3502_s3 + $0xdc] sm:$0xf0]  ;;  %v2207_v55 = vld [vmem:[%s3502_s3 + $0xd0] sm:$0xf]  ;;  %v2589_v57 = vld [vmem:[%s3502_s3 + $0xe0] sm:$0xf0] }
  0x18   : > { %v497_v12 = vmul.f32 %v2705_v3, %v496_v10  ;;  %806 = vmatpush.bf16.msra.mxu0 %v2200_v25  ;;  %833 = vmatpush.bf16.msra.mxu2 %v2228_v48  ;;  %v2204_v56 = vor.u32 %v2586_v53, %v2201_v54  ;;  %v2587_v58 = vld [vmem:[%s3502_s3 + $0xd4] sm:$0xf]  ;;  %v2209_v59 = vld [vmem:[%s3502_s3 + $0xe4] sm:$0xf0]  ;;  %v2208_v60 = vor.u32 %v2589_v57, %v2207_v55  ;;  %v2568_v63 = vld [vmem:[%s3502_s3 + $0x38] sm:$0xf0] }
  0x19   : > { %847 = vmatpush.bf16.msra.mxu3 %v2232_v49  ;;  %v2212_v61 = vor.u32 %v2587_v58, %v2209_v59  ;;  %v2119_v62 = vld [vmem:[%s3502_s3 + $0x28] sm:$0xf]  ;;  %v2181_v4 = vld [vmem:[%s3502_s3 + $0xb4] sm:$0xf0]  ;;  %v2584_v7 = vld [vmem:[%s3502_s3 + $0xb8] sm:$0xf0] }
  0x1a   : > { %492 = vadd.xlane.f32.xlu0 %v2892_v1  ;;  %v498_v13 = vadd.f32 %v2705_v3, %v497_v12  ;;  %v2120_v2 = vor.u32 %v2568_v63, %v2119_v62  ;;  %v2187_v5 = vld [vmem:[%s3502_s3 + $0xa8] sm:$0xf]  ;;  %v2582_v8 = vld [vmem:[%s3502_s3 + $0xac] sm:$0xf]  ;;  %v2189_v9 = vld [vmem:[%s3502_s3 + $0xbc] sm:$0xf0] }
  0x1b   : > { %820 = vmatpush.bf16.msra.mxu1 %v2204_v56  ;;  %v2188_v10 = vor.u32 %v2584_v7, %v2187_v5  ;;  %v2192_v11 = vor.u32 %v2582_v8, %v2189_v9  ;;  %v2099_v12 = vld [vmem:[%s3502_s3] sm:$0xf]  ;;  %v2577_v23 = vld [vmem:[%s3502_s3 + $0x84] sm:$0xf]  ;;  %v2169_v24 = vld [vmem:[%s3502_s3 + $0x94] sm:$0xf0] }
  0x1c   : > { %v2907_v14 = vsel %vm499_vm0, %v2705_v3, %v498_v13  ;;  %807 = vmatpush.bf16.msra.mxu0 %v2180_v28  ;;  %834 = vmatpush.bf16.msra.mxu2 %v2208_v60  ;;  %v2581_v3 = vld [vmem:[%s3502_s3 + $0xa4] sm:$0xf]  ;;  %v2563_v13 = vld [vmem:[%s3502_s3 + $0x10] sm:$0xf0]  ;;  %v2172_v26 = vor.u32 %v2577_v23, %v2169_v24  ;;  %v2255_v27 = vld [vmem:[%s3502_s3 + $0x128] sm:$0xf] }
  0x1d   : > { %848 = vmatpush.bf16.msra.mxu3 %v2212_v61  ;;  %v2184_v6 = vor.u32 %v2581_v3, %v2181_v4  ;;  %v2600_v28 = vld [vmem:[%s3502_s3 + $0x138] sm:$0xf0]  ;;  %v2571_v30 = vld [vmem:[%s3502_s3 + $0x54] sm:$0xf]  ;;  %v2141_v31 = vld [vmem:[%s3502_s3 + $0x64] sm:$0xf0] }
  0x1e   : > { %v2256_v29 = vor.u32 %v2600_v28, %v2255_v27  ;;  %v2147_v32 = vld [vmem:[%s3502_s3 + $0x58] sm:$0xf]  ;;  %v2144_v33 = vor.u32 %v2571_v30, %v2141_v31  ;;  %v2574_v34 = vld [vmem:[%s3502_s3 + $0x68] sm:$0xf0]  ;;  %v2572_v35 = vld [vmem:[%s3502_s3 + $0x5c] sm:$0xf] }
  0x1f   : > { %821 = vmatpush.bf16.msra.mxu1 %v2184_v6  ;;  %v2149_v36 = vld [vmem:[%s3502_s3 + $0x6c] sm:$0xf0]  ;;  %v2148_v37 = vor.u32 %v2574_v34, %v2147_v32  ;;  %v2235_v39 = vld [vmem:[%s3502_s3 + $0x100] sm:$0xf]  ;;  %v2566_v42 = vld [vmem:[%s3502_s3 + $0x2c] sm:$0xf] }
  0x20   : > { %808 = vmatpush.bf16.msra.mxu0 %v2160_v40  ;;  %835 = vmatpush.bf16.msra.mxu2 %v2188_v10  ;;  %v2152_v38 = vor.u32 %v2572_v35, %v2149_v36  ;;  %v2595_v40 = vld [vmem:[%s3502_s3 + $0x110] sm:$0xf0]  ;;  %v2121_v43 = vld [vmem:[%s3502_s3 + $0x3c] sm:$0xf0]  ;;  %v2127_v44 = vld [vmem:[%s3502_s3 + $0x30] sm:$0xf] }
  0x21   : > { %849 = vmatpush.bf16.msra.mxu3 %v2192_v11  ;;  %v2236_v41 = vor.u32 %v2595_v40, %v2235_v39  ;;  %v2124_v45 = vor.u32 %v2566_v42, %v2121_v43  ;;  %v2569_v46 = vld [vmem:[%s3502_s3 + $0x40] sm:$0xf0]  ;;  %v2567_v47 = vld [vmem:[%s3502_s3 + $0x34] sm:$0xf]  ;;  %v2129_v48 = vld [vmem:[%s3502_s3 + $0x44] sm:$0xf0] }
  0x22   : > { %v2128_v49 = vor.u32 %v2569_v46, %v2127_v44  ;;  %v2132_v50 = vor.u32 %v2567_v47, %v2129_v48  ;;  %v2215_v51 = vld [vmem:[%s3502_s3 + $0xd8] sm:$0xf]  ;;  %v2561_v56 = vld [vmem:[%s3502_s3 + $0x4] sm:$0xf]  ;;  %v2107_v58 = vld [vmem:[%s3502_s3 + $0x8] sm:$0xf] }
  0x23   : > { %v2101_v57 = vld [vmem:[%s3502_s3 + $0x14] sm:$0xf0]  ;;  %v2564_v60 = vld [vmem:[%s3502_s3 + $0x18] sm:$0xf0]  ;;  %v2562_v61 = vld [vmem:[%s3502_s3 + $0xc] sm:$0xf] }
  0x24   : > { %809 = vmatpush.bf16.msra.mxu0 %v2140_v52  ;;  %v2590_v52 = vld [vmem:[%s3502_s3 + $0xe8] sm:$0xf0]  ;;  %v2104_v59 = vor.u32 %v2561_v56, %v2101_v57  ;;  %v2109_v62 = vld [vmem:[%s3502_s3 + $0x1c] sm:$0xf0]  ;;  %v2195_v4 = vld [vmem:[%s3502_s3 + $0xb0] sm:$0xf] }
  0x25   : > { %850 = vmatpush.bf16.msra.mxu3 %v2172_v26  ;;  %v2216_v54 = vor.u32 %v2590_v52, %v2215_v51  ;;  %v2112_v3 = vor.u32 %v2562_v61, %v2109_v62  ;;  %v2585_v5 = vld [vmem:[%s3502_s3 + $0xc0] sm:$0xf0]  ;;  %v2175_v7 = vld [vmem:[%s3502_s3 + $0x88] sm:$0xf]  ;;  %v2580_v8 = vld [vmem:[%s3502_s3 + $0x98] sm:$0xf0] }
  0x26   : > { %v2196_v6 = vor.u32 %v2585_v5, %v2195_v4  ;;  %v2176_v9 = vor.u32 %v2580_v8, %v2175_v7  ;;  %v2155_v11 = vld [vmem:[%s3502_s3 + $0x60] sm:$0xf]  ;;  %v2565_v26 = vld [vmem:[%s3502_s3 + $0x20] sm:$0xf0] }
  0x28   : > { %810 = vmatpush.bf16.msra.mxu0 %v2120_v2  ;;  %v2108_v2 = vor.u32 %v2564_v60, %v2107_v58 }
  0x29   : > { %851 = vmatpush.bf16.msra.mxu3 %v2152_v38 }
  0x2d   : > { %852 = vmatpush.bf16.msra.mxu3 %v2132_v50 }
  0x31   : > { %853 = vmatpush.bf16.msra.mxu3 %v2112_v3 }
  0x85   : > { %v491_v15 = vpop.xlane.xlu0 %490 }
  0x86   : > { %v501_v16 = vmul.f32 %v2907_v14, %v491_v15  ;;  %v2100_v15 = vor.u32 %v2563_v13, %v2099_v12  ;;  %v2575_v12 = vld [vmem:[%s3502_s3 + $0x70] sm:$0xf0] }
  0x88   : > { %v2911_v17 = vsub.f32 %v2889_v0, %v501_v16  ;;  %v2576_v16 = vld [vmem:[%s3502_s3 + $0x7c] sm:$0xf]  ;;  %811 = vmatpush.bf16.msra.mxu0 %v2100_v15  ;;  %v2156_v15 = vor.u32 %v2575_v12, %v2155_v11 }
  0x8a   : > { %v505_v18 = vmul.f32 %v2911_v17, %v2911_v17 }
  0x8c   : > { %507 = vadd.xlane.f32.xlu1 %v505_v18  ;;  %v2161_v18 = vld [vmem:[%s3502_s3 + $0x8c] sm:$0xf0]  ;;  %860 = vmatpush.bf16.msrb.mxu0 %v2256_v29 }
  0x8d   : > { %v493_v19 = vpop.xlane.xlu0 %492 }
  0x8e   : > { %v502_v20 = vmul.f32 %v2907_v14, %v493_v19  ;;  %v2167_v19 = vld [vmem:[%s3502_s3 + $0x80] sm:$0xf] }
  0x90   : > { %v2917_v21 = vsub.f32 %v2892_v1, %v502_v20  ;;  %v2164_v20 = vor.u32 %v2576_v16, %v2161_v18  ;;  %861 = vmatpush.bf16.msrb.mxu0 %v2236_v41  ;;  %v2699_v41 = vld [vmem:[%s3501_s2] ss:$0 sm:$0xff] }
  0x92   : > { %v506_v22 = vmul.f32 %v2917_v21, %v2917_v21  ;;  %822 = vmatpush.bf16.msra.mxu1 %v2164_v20  ;;  %v2570_v20 = vld [vmem:[%s3502_s3 + $0x48] sm:$0xf0] }
  0x94   : > { %509 = vadd.xlane.f32.xlu1 %v506_v22  ;;  %v2579_v22 = vld [vmem:[%s3502_s3 + $0x90] sm:$0xf0]  ;;  %862 = vmatpush.bf16.msrb.mxu0 %v2216_v54  ;;  %v875_v54 = vld [vmem:[%s3511_s12 + $0x8] sm:$0xff] }
  0x95   : > { %v2168_v25 = vor.u32 %v2579_v22, %v2167_v19  ;;  %v2135_v19 = vld [vmem:[%s3502_s3 + $0x38] sm:$0xf] }
  0x96   : > { %823 = vmatpush.bf16.msra.mxu1 %v2144_v33  ;;  %v2136_v24 = vor.u32 %v2570_v20, %v2135_v19 }
  0x97   : > { %836 = vmatpush.bf16.msra.mxu2 %v2168_v25  ;;  %v2115_v25 = vld [vmem:[%s3502_s3 + $0x10] sm:$0xf] }
  0x98   : > { %863 = vmatpush.bf16.msrb.mxu0 %v2196_v6  ;;  %v2116_v29 = vor.u32 %v2565_v26, %v2115_v25 }
  0x9a   : > { %824 = vmatpush.bf16.msra.mxu1 %v2124_v45 }
  0x9b   : > { %837 = vmatpush.bf16.msra.mxu2 %v2148_v37  ;;  %v2698_v37 = vld [vmem:[%s3500_s1] ss:$0 sm:$0xff] }
  0x9c   : > { %864 = vmatpush.bf16.msrb.mxu0 %v2176_v9 }
  0x9e   : > { %825 = vmatpush.bf16.msra.mxu1 %v2104_v59 }
  0x9f   : > { %838 = vmatpush.bf16.msra.mxu2 %v2128_v49  ;;  %v876_v49 = vld [vmem:[%s3512_s13] sm:$0xff] }
  0xa0   : > { %865 = vmatpush.bf16.msrb.mxu0 %v2156_v15 }
  0xa3   : > { %839 = vmatpush.bf16.msra.mxu2 %v2108_v2 }
  0xa4   : > { %866 = vmatpush.bf16.msrb.mxu0 %v2136_v24 }
  0xa8   : > { %867 = vmatpush.bf16.msrb.mxu0 %v2116_v29 }
  0xff   : > { %v508_v53 = vpop.xlane.xlu1 %507 }
 0x100   : > { %v511_v55 = vmul.f32 %v508_v53, %v2907_v14 }
 0x102   : > { %v513_v63 = vadd.f32 1e-05, %v511_v55  ;;  %v877_v55 = vld [vmem:[%s3512_s13 + $0x8] sm:$0xff] }
 0x104   : > { %2706 = vrsqrt.f32 %v513_v63  ;;  %vm521_vm2 = vweird.f32 %v513_v63 }
 0x107   : > { %v510_v10 = vpop.xlane.xlu1 %509 }
 0x108   : > { %v512_v13 = vmul.f32 %v510_v10, %v2907_v14 }
 0x10a   : > { %v2707_v16 = vpop.eup %2706  ;;  %v514_v18 = vadd.f32 1e-05, %v512_v13 }
 0x10b   : > { %v516_v22 = vmul.f32 %v2707_v16, %v513_v63  ;;  %vm522_vm1 = vweird.f32 %v2707_v16 }
 0x10c   : > { %2708 = vrsqrt.f32 %v514_v18  ;;  %vm523_vm3 = vmor %vm521_vm2, %vm522_vm1  ;;  %vm531_vm5 = vweird.f32 %v514_v18 }
 0x10d   : > { %v517_v23 = vmul.f32 %v2707_v16, %v516_v22 }
 0x10f   : > { %v518_v27 = vmul.f32 0.5, %v517_v23 }
 0x111   : > { %v519_v28 = vsub.f32 1.5, %v518_v27 }
 0x112   : > { %v2709_v30 = vpop.eup %2708 }
 0x113   : > { %v520_v31 = vmul.f32 %v2707_v16, %v519_v28  ;;  %v526_v32 = vmul.f32 %v2709_v30, %v514_v18  ;;  %vm532_vm4 = vweird.f32 %v2709_v30 }
 0x114   : > { %vm533_vm6 = vmor %vm531_vm5, %vm532_vm4 }
 0x115   : > { %v527_v33 = vmul.f32 %v2709_v30, %v526_v32  ;;  %v524_v34 = vsel %vm523_vm3, %v2707_v16, %v520_v31 }
 0x116   : > { %v535_v38 = vmul.f32 %v524_v34, %v2911_v17 }
 0x117   : > { %v528_v35 = vmul.f32 0.5, %v527_v33 }
 0x118   : > { %v540_v42 = vmul.f32 %v2698_v37, %v535_v38  ;;  %v896_v38 = vlaneseq }
 0x119   : > { %v529_v36 = vsub.f32 1.5, %v528_v35 }
 0x11a   : > { %v545_v45 = vadd.f32 %v2699_v41, %v540_v42 }
 0x11b   : > { %v530_v39 = vmul.f32 %v2709_v30, %v529_v36 }
 0x11d   : > { %v534_v40 = vsel %vm533_vm6, %v2709_v30, %v530_v39  ;;  %v897_v39 = vshrl.u32 %v896_v38, 7 }
 0x11e   : > { %v536_v43 = vmul.f32 %v534_v40, %v2917_v21  ;;  %v874_v21 = vld [vmem:[%s3511_s12] sm:$0xff]  ;;  %v900_v40 = vand.u32 127, %v896_v38 }
 0x120   : > { %v541_v44 = vmul.f32 %v2698_v37, %v536_v43  ;;  %vm901_vm8 = vcmp.le.s32.totalorder %v900_v40, %v897_v39 }
 0x122   : > { %v546_v46 = vadd.f32 %v2699_v41, %v541_v44 }
 0x124   : > { %v547_v47 = vpack.c.bf16 %v546_v46, %v545_v45  ;;  %v898_v45 = vadd.s32 8, %v897_v39 }
 0x126   : > { %812 = vmatmul.bf16.vlgmr.msra.gmra.mxu0 %v547_v47  ;;  %826 = vmatmul.bf16.vlgmr.msra.gmra.mxu1 %v547_v47  ;;  %vm902_vm10 = vcmp.le.s32.totalorder %v900_v40, %v898_v45 }
 0x127   : > { %840 = vmatmul.bf16.vlgmr.msra.gmra.mxu2 %v547_v47  ;;  %854 = vmatmul.bf16.vlgmr.msra.gmra.mxu3 %v547_v47 }
 0x136   : > { %868 = vmatmul.bf16.vlgmr.msrb.gmra.mxu0 %v547_v47 }
 0x1a3   : > { %v813_v17 = vpop.f32.mrf.mxu0  ;;  %v827_v53 = vpop.f32.mrf.mxu1 }
 0x1a4   : > { %v878_v52 = vmul.f32 %v874_v21, %v813_v17  ;;  %v884_v3 = vmul.f32 %v874_v21, %v827_v53 }
 0x1aa   : > { %v855_v48 = vpop.f32.mrf.mxu3  ;;  %v841_v22 = vpop.f32.mrf.mxu2 }
 0x1ab   : > { %v815_v50 = vpop.f32.mrf.mxu0  ;;  %v880_v51 = vmul.f32 %v876_v49, %v855_v48  ;;  %v829_v5 = vpop.f32.mrf.mxu1  ;;  %v894_v25 = vpack.c.bf16 %v841_v22, %v841_v22 }
 0x1ac   : > { %v879_v58 = vmul.f32 %v875_v54, %v815_v50  ;;  %v885_v10 = vmul.f32 %v875_v54, %v829_v5 }
 0x1ad   : > { %v882_v56 = vadd.f32 %v880_v51, %v878_v52  ;;  %v1152_v27 = vunpack.c.l.b16 %v894_v25 }
 0x1af   : > { %v890_v61 = vpack.c.bf16 %v882_v56, %v882_v56 }
 0x1b1   : > { %v905_v4 = vunpack.c.l.b16 %v890_v61 }
 0x1b2   : > { %v857_v57 = vpop.f32.mrf.mxu3  ;;  %v843_v23 = vpop.f32.mrf.mxu2 }
 0x1b3   : > { %v881_v59 = vmul.f32 %v877_v55, %v857_v57  ;;  %v869_v60 = vpop.f32.mrf.mxu0  ;;  %v895_v24 = vpack.c.bf16 %v843_v23, %v843_v23 }
 0x1b4   : > { %v886_v63 = vmul.f32 %v876_v49, %v869_v60 }
 0x1b5   : > { %v883_v62 = vadd.f32 %v881_v59, %v879_v58  ;;  %v1153_v26 = vunpack.c.l.b16 %v895_v24 }
 0x1b6   : > { %v888_v7 = vadd.f32 %v886_v63, %v884_v3 }
 0x1b7   : > { %v891_v2 = vpack.c.bf16 %v883_v62, %v883_v62  ;;  %v3179_v29 = vpack.c.b16 %v1153_v26, %v1152_v27 }
 0x1b8   : > { %v892_v12 = vpack.c.bf16 %v888_v7, %v888_v7 }
 0x1b9   : > { %v906_v6 = vunpack.c.l.b16 %v891_v2 }
 0x1ba   : > { %v910_v16 = vunpack.c.l.b16 %v892_v12 }
 0x1bb   : > { %v907_v8 = vpack.c.b16 %v906_v6, %v905_v4  ;;  %v871_v9 = vpop.f32.mrf.mxu0 }
 0x1bc   : > { %v887_v11 = vmul.f32 %v877_v55, %v871_v9 }
 0x1bd   : > { %958 = vrot.lane.b32.xlu1 %v907_v8, %s2792_s30  ;;  %934 = vrot.lane.b32.xlu0 %v907_v8, %s2793_s15 }
 0x1be   : > { %v889_v13 = vadd.f32 %v887_v11, %v885_v10 }
 0x1c0   : > { %v893_v15 = vpack.c.bf16 %v889_v13, %v889_v13 }
 0x1c2   : > { %v911_v18 = vunpack.c.l.b16 %v893_v15 }
 0x1c4   : > { %v912_v19 = vpack.c.b16 %v911_v18, %v910_v16 }
 0x1c6   : > { %936 = vrot.lane.b32.xlu2 %v912_v19, %s2793_s15  ;;  %v918_v20 = vsel %vm913_vm7, %v912_v19, 0 }
 0x1c7   : > { %927 = vmatpush.bf16.xpose.msrb.mxu1 %v918_v20 }
 0x1ce   : > { %960 = vrot.lane.b32.xlu2 %v912_v19, %s2792_s30  ;;  %2257 = vmatmul.msk.bf16.vlgmr.msrb.gmra.mxu1 %vm913_vm7, %v907_v8 }
 0x1d6   : > { %984 = vrot.lane.b32.xlu2 %v912_v19, %s2794_s16 }
 0x1de   : > { %982 = vrot.lane.b32.xlu2 %v907_v8, %s2794_s16 }
 0x220   : > { %v937_v28 = vpop.permute.xlu2 %936 }
 0x221   : > { %v942_v30 = vsel %vm913_vm7, %v937_v28, 0 }
 0x222   : > { %951 = vmatpush.bf16.xpose.msrb.mxu2 %v942_v30 }
 0x228   : > { %v961_v31 = vpop.permute.xlu2 %960 }
 0x229   : > { %v966_v32 = vsel %vm913_vm7, %v961_v31, 0 }
 0x22a   : > { %1166 = vmatpush.bf16.msra.mxu2 %v3179_v29  ;;  %975 = vmatpush.bf16.xpose.msrb.mxu3 %v966_v32 }
 0x22f   : > { %v935_v33 = vpop.permute.xlu0 %934  ;;  %v959_v34 = vpop.permute.xlu1 %958 }
 0x230   : > { %2258 = vmatmul.msk.bf16.vlgmr.msrb.gmra.mxu2 %vm913_vm7, %v935_v33  ;;  %v985_v35 = vpop.permute.xlu2 %984 }
 0x231   : > { %v990_v36 = vsel %vm913_vm7, %v985_v35, 0  ;;  %2259 = vmatmul.msk.bf16.vlgmr.msrb.gmra.mxu3 %vm913_vm7, %v959_v34 }
 0x232   : > { %999 = vmatpush.bf16.xpose.msra.mxu1 %v990_v36 }
 0x238   : > { %v983_v37 = vpop.permute.xlu2 %982 }
 0x239   : > { %2260 = vmatmul.msk.bf16.vlgmr.msra.gmra.mxu1 %vm913_vm7, %v983_v37 }
 0x24b   : > { %v929_v41 = vpop.f32.mrf.mxu1 }
 0x24c   : > { %v1006_v42 = vmul.f32 0.17677669, %v929_v41 }
 0x24e   : > { %v1018_v43 = vsel %vm901_vm8, %v1006_v42, -1e+30 }
 0x24f   : > { %v1027_v44 = vsel %vm1026_vm9, %v1018_v43, -inf }
 0x250   : > { %1028 = vmax.xlane.f32.xlu2 %v1027_v44 }
 0x253   : > { %v931_v46 = vpop.f32.mrf.mxu1 }
 0x254   : > { %v1007_v47 = vmul.f32 0.17677669, %v931_v46 }
 0x256   : > { %v1019_v17 = vsel %vm902_vm10, %v1007_v47, -1e+30 }
 0x257   : > { %v1030_v48 = vsel %vm1026_vm9, %v1019_v17, -inf }
 0x258   : > { %1031 = vmax.xlane.f32.xlu0 %v1030_v48 }
 0x2b3   : > { %v953_v49 = vpop.f32.mrf.mxu2 }
 0x2b4   : > { %v1008_v50 = vmul.f32 0.17677669, %v953_v49  ;;  %v977_v21 = vpop.f32.mrf.mxu3 }
 0x2b5   : > { %v1010_v51 = vmul.f32 0.17677669, %v977_v21 }
 0x2b6   : > { %v1001_v52 = vpop.f32.mrf.mxu1  ;;  %v1020_v53 = vsel %vm901_vm8, %v1008_v50, -1e+30 }
 0x2b7   : > { %v1033_v54 = vsel %vm1026_vm9, %v1020_v53, -inf  ;;  %v1022_v55 = vsel %vm901_vm8, %v1010_v51, -1e+30  ;;  %v1012_v56 = vmul.f32 0.17677669, %v1001_v52 }
 0x2b8   : > { %1034 = vmax.xlane.f32.xlu1 %v1033_v54  ;;  %v1039_v57 = vsel %vm1026_vm9, %v1022_v55, -inf }
 0x2b9   : > { %1040 = vmax.xlane.f32.xlu0 %v1039_v57  ;;  %v1024_v60 = vsel %vm901_vm8, %v1012_v56, -1e+30 }
 0x2ba   : > { %v1045_v4 = vsel %vm1026_vm9, %v1024_v60, -inf }
 0x2bb   : > { %v955_v58 = vpop.f32.mrf.mxu2 }
 0x2bc   : > { %v1009_v59 = vmul.f32 0.17677669, %v955_v58  ;;  %v979_v61 = vpop.f32.mrf.mxu3 }
 0x2bd   : > { %v1011_v5 = vmul.f32 0.17677669, %v979_v61 }
 0x2be   : > { %v1003_v62 = vpop.f32.mrf.mxu1  ;;  %v1021_v63 = vsel %vm902_vm10, %v1009_v59, -1e+30 }
 0x2bf   : > { %v1013_v2 = vmul.f32 0.17677669, %v1003_v62  ;;  %v1036_v3 = vsel %vm1026_vm9, %v1021_v63, -inf  ;;  %v1023_v10 = vsel %vm902_vm10, %v1011_v5, -1e+30 }
 0x2c0   : > { %1037 = vmax.xlane.f32.xlu2 %v1036_v3  ;;  %1046 = vmax.xlane.f32.xlu1 %v1045_v4  ;;  %v1042_v12 = vsel %vm1026_vm9, %v1023_v10, -inf }
 0x2c1   : > { %v1025_v6 = vsel %vm902_vm10, %v1013_v2, -1e+30 }
 0x2c2   : > { %v1048_v7 = vsel %vm1026_vm9, %v1025_v6, -inf }
 0x2c3   : > { %v1029_v8 = vpop.xlane.xlu2 %1028  ;;  %1049 = vmax.xlane.f32.xlu0 %v1048_v7 }
 0x2c4   : > { %v1051_v9 = vsub.f32 %v1018_v43, %v1029_v8 }
 0x2c6   : > { %v1059_v11 = vmul.f32 1.442695, %v1051_v9 }
 0x2c8   : > { %2710 = vpow2.f32 %v1059_v11  ;;  %1043 = vmax.xlane.f32.xlu2 %v1042_v12 }
 0x2cb   : > { %v1032_v13 = vpop.xlane.xlu0 %1031 }
 0x2cc   : > { %v1052_v15 = vsub.f32 %v1019_v17, %v1032_v13  ;;  %v2602_v13 = vld [vmem:[%s3503_s4 + $0x8] sm:$0xff] }
 0x2cd   : > { %1195 = vmatpush.bf16.msra.mxu3 %v2602_v13 }
 0x2ce   : > { %v2711_v16 = vpop.eup %2710  ;;  %v1061_v18 = vmul.f32 1.442695, %v1052_v15 }
 0x2cf   : > { %v1075_v19 = vsel %vm1026_vm9, %v2711_v16, 0.0 }
 0x2d0   : > { %2712 = vpow2.f32 %v1061_v18  ;;  %1076 = vadd.xlane.f32.xlu2 %v1075_v19 }
 0x2d6   : > { %v2713_v20 = vpop.eup %2712 }
 0x2d7   : > { %v1078_v22 = vsel %vm1026_vm9, %v2713_v20, 0.0 }
 0x2d8   : > { %1079 = vadd.xlane.f32.xlu1 %v1078_v22  ;;  %v2601_v22 = vld [vmem:[%s3503_s4] sm:$0xff] }
 0x2d9   : > { %1196 = vmatpush.bf16.msra.mxu3 %v2601_v22 }
 0x32b   : > { %v1035_v23 = vpop.xlane.xlu1 %1034 }
 0x32c   : > { %v1053_v24 = vsub.f32 %v1020_v53, %v1035_v23  ;;  %v1041_v25 = vpop.xlane.xlu0 %1040 }
 0x32d   : > { %v1055_v26 = vsub.f32 %v1022_v55, %v1041_v25 }
 0x32e   : > { %v1063_v27 = vmul.f32 1.442695, %v1053_v24 }
 0x32f   : > { %v1067_v28 = vmul.f32 1.442695, %v1055_v26 }
 0x330   : > { %2714 = vpow2.f32 %v1063_v27 }
 0x331   : > { %2716 = vpow2.f32 %v1067_v28 }
 0x333   : > { %v1038_v30 = vpop.xlane.xlu2 %1037  ;;  %v1047_v31 = vpop.xlane.xlu1 %1046 }
 0x334   : > { %v1054_v32 = vsub.f32 %v1021_v63, %v1038_v30  ;;  %v1057_v33 = vsub.f32 %v1024_v60, %v1047_v31 }
 0x336   : > { %v2715_v34 = vpop.eup %2714  ;;  %v1065_v35 = vmul.f32 1.442695, %v1054_v32  ;;  %v1071_v36 = vmul.f32 1.442695, %v1057_v33  ;;  %v1050_v37 = vpop.xlane.xlu0 %1049 }
 0x337   : > { %v3206_v38 = vpop.eup %2716  ;;  %v1058_v39 = vsub.f32 %v1025_v6, %v1050_v37  ;;  %v1081_v40 = vsel %vm1026_vm9, %v2715_v34, 0.0 }
 0x338   : > { %2718 = vpow2.f32 %v1065_v35  ;;  %1082 = vadd.xlane.f32.xlu0 %v1081_v40  ;;  %v1087_v41 = vsel %vm1026_vm9, %v3206_v38, 0.0 }
 0x339   : > { %2720 = vpow2.f32 %v1071_v36  ;;  %1088 = vadd.xlane.f32.xlu1 %v1087_v41  ;;  %v1073_v42 = vmul.f32 1.442695, %v1058_v39 }
 0x33b   : > { %v1044_v43 = vpop.xlane.xlu2 %1043  ;;  %2722 = vpow2.f32 %v1073_v42 }
 0x33c   : > { %v1056_v46 = vsub.f32 %v1023_v10, %v1044_v43 }
 0x33e   : > { %v2719_v44 = vpop.eup %2718  ;;  %v1069_v48 = vmul.f32 1.442695, %v1056_v46  ;;  %v2603_v46 = vld [vmem:[%s3503_s4 + $0x10] sm:$0xff] }
 0x33f   : > { %v3211_v45 = vpop.eup %2720  ;;  %v1084_v47 = vsel %vm1026_vm9, %v2719_v44, 0.0 }
 0x340   : > { %1085 = vadd.xlane.f32.xlu2 %v1084_v47  ;;  %v1093_v17 = vsel %vm1026_vm9, %v3211_v45, 0.0  ;;  %v2606_v47 = vld [vmem:[%s3503_s4 + $0x28] sm:$0xff] }
 0x341   : > { %1094 = vadd.xlane.f32.xlu0 %v1093_v17  ;;  %v2723_v50 = vpop.eup %2722  ;;  %v2608_v17 = vld [vmem:[%s3503_s4 + $0x38] sm:$0xff]  ;;  %1309 = vmatpush.bf16.msrb.mxu3 %v2606_v47 }
 0x342   : > { %v1096_v21 = vsel %vm1026_vm9, %v2723_v50, 0.0 }
 0x343   : > { %v1077_v49 = vpop.xlane.xlu2 %1076 }
 0x344   : > { %2724 = vrcp.f32 %v1077_v49  ;;  %v2607_v49 = vld [vmem:[%s3503_s4 + $0x30] sm:$0xff] }
 0x345   : > { %2726 = vpow2.f32 %v1069_v48  ;;  %v2605_v48 = vld [vmem:[%s3503_s4 + $0x20] sm:$0xff] }
 0x346   : > { %1310 = vmatpush.bf16.msrb.mxu3 %v2605_v48  ;;  %v2631_v48 = vld [vmem:[%s3507_s8 + $0xac] sm:$0xf0] }
 0x349   : > { %1097 = vadd.xlane.f32.xlu0 %v1096_v21 }
 0x34a   : > { %v2725_v52 = vpop.eup %2724 }
 0x34b   : > { %v1080_v51 = vpop.xlane.xlu1 %1079  ;;  %v2727_v53 = vpop.eup %2726  ;;  %v1107_v54 = vmul.f32 %v2725_v52, %v2711_v16 }
 0x34c   : > { %2728 = vrcp.f32 %v1080_v51  ;;  %v1090_v55 = vsel %vm1026_vm9, %v2727_v53, 0.0 }
 0x34d   : > { %v1115_v57 = vpack.c.bf16 %v1107_v54, %v1107_v54 }
 0x34f   : > { %v1147_v60 = vunpack.c.l.b16 %v1115_v57 }
 0x351   : > { %1091 = vadd.xlane.f32.xlu0 %v1090_v55 }
 0x352   : > { %v2729_v56 = vpop.eup %2728  ;;  %1267 = vrot.lane.b32.xlu1 %v3179_v29, %s2792_s30 }
 0x353   : > { %v1108_v58 = vmul.f32 %v2729_v56, %v2713_v20 }
 0x355   : > { %v1116_v59 = vpack.c.bf16 %v1108_v58, %v1108_v58 }
 0x357   : > { %v1148_v61 = vunpack.c.l.b16 %v1116_v59 }
 0x358   : > { %1210 = vrot.lane.b32.xlu2 %v3179_v29, %s2793_s15 }
 0x359   : > { %v1149_v62 = vpack.c.b16 %v1148_v61, %v1147_v60  ;;  %v2700_v60 = vld [vmem:[%s3504_s5] ss:$0 sm:$0xff] }
 0x35b   : > { %2261 = vmatmul.msk.bf16.vlgmr.msra.gmra.mxu2 %vm1026_vm9, %v1149_v62 }
 0x365   : > { %1324 = vrot.lane.b32.xlu0 %v3179_v29, %s2794_s16 }
 0x3ab   : > { %v1083_v63 = vpop.xlane.xlu0 %1082 }
 0x3ac   : > { %2730 = vrcp.f32 %v1083_v63  ;;  %v1089_v10 = vpop.xlane.xlu1 %1088  ;;  %v1143_v63 = vadd.f32 %v2700_v60, %v2889_v0 }
 0x3b2   : > { %v2731_v3 = vpop.eup %2730 }
 0x3b3   : > { %v1086_v2 = vpop.xlane.xlu2 %1085  ;;  %v1109_v5 = vmul.f32 %v2731_v3, %v2715_v34 }
 0x3b4   : > { %2732 = vrcp.f32 %v1086_v2  ;;  %v1095_v4 = vpop.xlane.xlu0 %1094 }
 0x3b5   : > { %v1117_v7 = vpack.c.bf16 %v1109_v5, %v1109_v5  ;;  %2734 = vrcp.f32 %v1089_v10 }
 0x3b7   : > { %v1207_v29 = vunpack.c.l.b16 %v1117_v7 }
 0x3ba   : > { %v2733_v6 = vpop.eup %2732 }
 0x3bb   : > { %v1110_v8 = vmul.f32 %v2733_v6, %v2719_v44  ;;  %v1211_v9 = vpop.permute.xlu2 %1210  ;;  %v2735_v20 = vpop.eup %2734  ;;  %v1144_v6 = vadd.f32 %v2700_v60, %v2892_v1  ;;  %v2625_v60 = vld [vmem:[%s3507_s8 + $0x84] sm:$0xf] }
 0x3bc   : > { %v1098_v11 = vpop.xlane.xlu0 %1097  ;;  %1223 = vmatpush.bf16.msra.mxu0 %v1211_v9  ;;  %v1111_v23 = vmul.f32 %v2735_v20, %v3206_v38 }
 0x3bd   : > { %v1118_v12 = vpack.c.bf16 %v1110_v8, %v1110_v8  ;;  %2736 = vrcp.f32 %v1098_v11 }
 0x3be   : > { %v1119_v27 = vpack.c.bf16 %v1111_v23, %v1111_v23  ;;  %v2415_v23 = vld [vmem:[%s3507_s8 + $0xe0] sm:$0xf] }
 0x3bf   : > { %v1208_v15 = vunpack.c.l.b16 %v1118_v12 }
 0x3c0   : > { %v1264_v33 = vunpack.c.l.b16 %v1119_v27  ;;  %v2417_v27 = vld [vmem:[%s3507_s8 + $0xf0] sm:$0xf0] }
 0x3c1   : > { %v1209_v16 = vpack.c.b16 %v1208_v15, %v1207_v29 }
 0x3c3   : > { %2271 = vmatmul.msk.bf16.vlgmr.msra.gmra.mxu0 %vm1026_vm9, %v1209_v16  ;;  %v2737_v24 = vpop.eup %2736 }
 0x3c4   : > { %v1092_v18 = vpop.xlane.xlu0 %1091  ;;  %v1268_v19 = vpop.permute.xlu1 %1267  ;;  %v1114_v30 = vmul.f32 %v2737_v24, %v2723_v50  ;;  %v2639_v24 = vld [vmem:[%s3507_s8 + $0xec] sm:$0xf0] }
 0x3c5   : > { %2738 = vrcp.f32 %v1092_v18  ;;  %1280 = vmatpush.bf16.msrb.mxu2 %v1268_v19 }
 0x3c6   : > { %2740 = vrcp.f32 %v1095_v4  ;;  %v1122_v35 = vpack.c.bf16 %v1114_v30, %v1114_v30  ;;  %v2640_v30 = vld [vmem:[%s3507_s8 + $0xf4] sm:$0xf0] }
 0x3c8   : > { %v1322_v39 = vunpack.c.l.b16 %v1122_v35 }
 0x3cb   : > { %v2739_v25 = vpop.eup %2738 }
 0x3cc   : > { %v2741_v26 = vpop.eup %2740  ;;  %v1112_v28 = vmul.f32 %v2739_v25, %v2727_v53  ;;  %v2637_v25 = vld [vmem:[%s3507_s8 + $0xe4] sm:$0xf] }
 0x3cd   : > { %v1113_v32 = vmul.f32 %v2741_v26, %v3211_v45  ;;  %v2604_v45 = vld [vmem:[%s3503_s4 + $0x18] sm:$0xff]  ;;  %v2416_v26 = vor.u32 %v2639_v24, %v2415_v23  ;;  %v2335_v24 = vld [vmem:[%s3507_s8 + $0x40] sm:$0xf] }
 0x3ce   : > { %v1120_v31 = vpack.c.bf16 %v1112_v28, %v1112_v28  ;;  %1252 = vmatpush.bf16.msrb.mxu1 %v2604_v45  ;;  %v2423_v28 = vld [vmem:[%s3507_s8 + $0xe8] sm:$0xf]  ;;  %v2634_v45 = vld [vmem:[%s3507_s8 + $0xcc] sm:$0xf] }
 0x3cf   : > { %v1121_v37 = vpack.c.bf16 %v1113_v32, %v1113_v32  ;;  %v2424_v32 = vor.u32 %v2640_v30, %v2423_v28  ;;  %1631 = vmatpush.bf16.msra.mxu2 %v2416_v26  ;;  %v2617_v26 = vld [vmem:[%s3507_s8 + $0x44] sm:$0xf]  ;;  %v2337_v28 = vld [vmem:[%s3507_s8 + $0x50] sm:$0xf0]  ;;  %v2343_v30 = vld [vmem:[%s3507_s8 + $0x48] sm:$0xf] }
 0x3d0   : > { %v1265_v34 = vunpack.c.l.b16 %v1120_v31  ;;  %v2420_v31 = vor.u32 %v2637_v25, %v2417_v27  ;;  %v2619_v25 = vld [vmem:[%s3507_s8 + $0x4c] sm:$0xf0] }
 0x3d1   : > { %v1321_v40 = vunpack.c.l.b16 %v1121_v37  ;;  %v2635_v37 = vld [vmem:[%s3507_s8 + $0xcc] sm:$0xf0]  ;;  %v2336_v27 = vor.u32 %v2619_v25, %v2335_v24  ;;  %v2669_v24 = vld [vmem:[#allocation2 + $0xe0] sm:$0xff] }
 0x3d2   : > { %v1266_v36 = vpack.c.b16 %v1265_v34, %v1264_v33  ;;  %1253 = vmatpush.bf16.msrb.mxu1 %v2603_v46  ;;  %v2638_v33 = vld [vmem:[%s3507_s8 + $0xec] sm:$0xf]  ;;  %v2425_v34 = vld [vmem:[%s3507_s8 + $0xf8] sm:$0xf0] }
 0x3d3   : > { %v1323_v41 = vpack.c.b16 %v1322_v39, %v1321_v40  ;;  %v2428_v35 = vor.u32 %v2638_v33, %v2425_v34  ;;  %v2633_v39 = vld [vmem:[%s3507_s8 + $0xc4] sm:$0xf]  ;;  %v2409_v46 = vld [vmem:[%s3507_s8 + $0xd8] sm:$0xf0]  ;;  %v2618_v34 = vld [vmem:[%s3507_s8 + $0x4c] sm:$0xf] }
 0x3d4   : > { %2281 = vmatmul.msk.bf16.vlgmr.msrb.gmra.mxu2 %vm1026_vm9, %v1266_v36  ;;  %v2399_v36 = vld [vmem:[%s3507_s8 + $0xc0] sm:$0xf]  ;;  %v2412_v47 = vor.u32 %v2634_v45, %v2409_v46  ;;  %v2614_v46 = vld [vmem:[%s3507_s8 + $0x2c] sm:$0xf] }
 0x3d5   : > { %v2400_v40 = vor.u32 %v2635_v37, %v2399_v36  ;;  %v2319_v37 = vld [vmem:[%s3507_s8 + $0x20] sm:$0xf] }
 0x3d6   : > { %1366 = vmatpush.bf16.msra.mxu1 %v2608_v17  ;;  %v2383_v17 = vld [vmem:[%s3507_s8 + $0xa0] sm:$0xf] }
 0x3d7   : > { %v1325_v38 = vpop.permute.xlu0 %1324  ;;  %1632 = vmatpush.bf16.msra.mxu2 %v2400_v40  ;;  %v2613_v40 = vld [vmem:[%s3507_s8 + $0x24] sm:$0xf] }
 0x3d8   : > { %1337 = vmatpush.bf16.msrb.mxu0 %v1325_v38  ;;  %v2401_v38 = vld [vmem:[%s3507_s8 + $0xd0] sm:$0xf0] }
 0x3da   : > { %1367 = vmatpush.bf16.msra.mxu1 %v2607_v49  ;;  %v2629_v49 = vld [vmem:[%s3507_s8 + $0xa4] sm:$0xf] }
 0x3db   : > { %2291 = vmatmul.msk.bf16.vlgmr.msrb.gmra.mxu0 %vm1026_vm9, %v1323_v41  ;;  %v2407_v41 = vld [vmem:[%s3507_s8 + $0xc8] sm:$0xf] }
 0x3dc   : > { %1659 = vmatpush.bf16.msra.mxu0 %v2424_v32  ;;  %v2340_v32 = vor.u32 %v2617_v26, %v2337_v28 }
 0x3de   : > { %v1168_v42 = vpop.f32.mrf.mxu2 }
 0x3e6   : > { %v1170_v43 = vpop.f32.mrf.mxu2 }
 0x3e7   : > { %v1173_v44 = vpack.c.bf16 %v1170_v43, %v1168_v42  ;;  %v2636_v42 = vld [vmem:[%s3507_s8 + $0xd4] sm:$0xf0]  ;;  %v2404_v43 = vor.u32 %v2633_v39, %v2401_v38  ;;  %v2615_v39 = vld [vmem:[%s3507_s8 + $0x2c] sm:$0xf0] }
 0x3e8   : > { %v2320_v38 = vor.u32 %v2615_v39, %v2319_v37 }
 0x3e9   : > { %2270 = vmatmul.msk.bf16.vlgmr.msra.gmra.mxu3 %vm913_vm7, %v1173_v44  ;;  %v2408_v44 = vor.u32 %v2636_v42, %v2407_v41  ;;  %v2321_v41 = vld [vmem:[%s3507_s8 + $0x30] sm:$0xf0]  ;;  %v2327_v42 = vld [vmem:[%s3507_s8 + $0x28] sm:$0xf] }
 0x3ea   : > { %1645 = vmatpush.bf16.msra.mxu3 %v2420_v31  ;;  %v2620_v31 = vld [vmem:[%s3507_s8 + $0x54] sm:$0xf0] }
 0x3eb   : > { %1660 = vmatpush.bf16.msra.mxu0 %v2408_v44  ;;  %v2344_v33 = vor.u32 %v2620_v31, %v2343_v30  ;;  %v2324_v44 = vor.u32 %v2613_v40, %v2321_v41  ;;  %v2702_v40 = vld [vmem:[%s3506_s7] ss:$0 sm:$0xff] }
 0x3ee   : > { %1646 = vmatpush.bf16.msra.mxu3 %v2404_v43  ;;  %v2616_v43 = vld [vmem:[%s3507_s8 + $0x34] sm:$0xf0] }
 0x3ef   : > { %v2328_v45 = vor.u32 %v2616_v43, %v2327_v42 }
 0x440   : > { %v1225_v50 = vpop.f32.mrf.mxu0 }
 0x448   : > { %v1227_v21 = vpop.f32.mrf.mxu0 }
 0x449   : > { %v1230_v51 = vpack.c.bf16 %v1227_v21, %v1225_v50  ;;  %v2384_v50 = vor.u32 %v2631_v48, %v2383_v17  ;;  %v2385_v21 = vld [vmem:[%s3507_s8 + $0xb0] sm:$0xf0]  ;;  %v2303_v17 = vld [vmem:[%s3507_s8] sm:$0xf] }
 0x44b   : > { %2280 = vmatmul.msk.bf16.vlgmr.msrb.gmra.mxu1 %vm913_vm7, %v1230_v51  ;;  %v2391_v51 = vld [vmem:[%s3507_s8 + $0xa8] sm:$0xf]  ;;  %1633 = vmatpush.bf16.msra.mxu2 %v2384_v50  ;;  %v2611_v50 = vld [vmem:[%s3507_s8 + $0xc] sm:$0xf0] }
 0x44c   : > { %1673 = vmatpush.bf16.msrb.mxu1 %v2428_v35  ;;  %v2345_v35 = vld [vmem:[%s3507_s8 + $0x58] sm:$0xf0] }
 0x44d   : > { %v2348_v36 = vor.u32 %v2618_v34, %v2345_v35  ;;  %v2701_v34 = vld [vmem:[%s3505_s6] ss:$0 sm:$0xff] }
 0x450   : > { %1674 = vmatpush.bf16.msrb.mxu1 %v2412_v47  ;;  %v2329_v47 = vld [vmem:[%s3507_s8 + $0x38] sm:$0xf0] }
 0x457   : > { %v1282_v52 = vpop.f32.mrf.mxu2 }
 0x458   : > { %v1339_v53 = vpop.f32.mrf.mxu0 }
 0x45f   : > { %v1284_v54 = vpop.f32.mrf.mxu2 }
 0x460   : > { %v1287_v55 = vpack.c.bf16 %v1284_v54, %v1282_v52  ;;  %v1341_v56 = vpop.f32.mrf.mxu0  ;;  %v2632_v52 = vld [vmem:[%s3507_s8 + $0xb4] sm:$0xf0] }
 0x461   : > { %v1344_v57 = vpack.c.bf16 %v1341_v56, %v1339_v53  ;;  %v2388_v53 = vor.u32 %v2629_v49, %v2385_v21  ;;  %v2392_v54 = vor.u32 %v2632_v52, %v2391_v51  ;;  %v2393_v56 = vld [vmem:[%s3507_s8 + $0xb8] sm:$0xf0]  ;;  %v2332_v49 = vor.u32 %v2614_v46, %v2329_v47  ;;  %v2609_v21 = vld [vmem:[%s3507_s8 + $0x4] sm:$0xf]  ;;  %v2305_v51 = vld [vmem:[%s3507_s8 + $0x10] sm:$0xf0] }
 0x462   : > { %2290 = vmatmul.msk.bf16.vlgmr.msrb.gmra.mxu3 %vm913_vm7, %v1287_v55  ;;  %v2630_v55 = vld [vmem:[%s3507_s8 + $0xac] sm:$0xf]  ;;  %v2653_v46 = vld [vmem:[#allocation2 + $0x60] sm:$0xff]  ;;  %v2667_v47 = vld [vmem:[#allocation2 + $0xd0] sm:$0xff] }
 0x463   : > { %2300 = vmatmul.msk.bf16.vlgmr.msra.gmra.mxu1 %vm913_vm7, %v1344_v57  ;;  %v2396_v57 = vor.u32 %v2630_v55, %v2393_v56  ;;  %1647 = vmatpush.bf16.msra.mxu3 %v2388_v53  ;;  %v2304_v53 = vor.u32 %v2611_v50, %v2303_v17  ;;  %v2311_v55 = vld [vmem:[%s3507_s8 + $0x8] sm:$0xf]  ;;  %v2612_v56 = vld [vmem:[%s3507_s8 + $0x14] sm:$0xf0] }
 0x464   : > { %1661 = vmatpush.bf16.msra.mxu0 %v2392_v54  ;;  %v2308_v54 = vor.u32 %v2609_v21, %v2305_v51  ;;  %v2644_v17 = vld [vmem:[#allocation2 + $0x18] sm:$0xff]  ;;  %v2666_v50 = vld [vmem:[#allocation2 + $0xc8] sm:$0xff]  ;;  %v2643_v21 = vld [vmem:[#allocation2 + $0x10] sm:$0xff] }
 0x465   : > { %1675 = vmatpush.bf16.msrb.mxu1 %v2396_v57  ;;  %v2610_v57 = vld [vmem:[%s3507_s8 + $0xc] sm:$0xf]  ;;  %v2651_v51 = vld [vmem:[#allocation2 + $0x50] sm:$0xff] }
 0x46c   : > { %v1198_v58 = vpop.f32.mrf.mxu3 }
 0x46d   : > { %v1203_v2 = vadd.f32 %v1198_v58, %v1143_v63  ;;  %v2367_v58 = vld [vmem:[%s3507_s8 + $0x80] sm:$0xf]  ;;  %v2375_v63 = vld [vmem:[%s3507_s8 + $0x88] sm:$0xf] }
 0x474   : > { %v1200_v61 = vpop.f32.mrf.mxu3 }
 0x475   : > { %v1204_v9 = vadd.f32 %v1200_v61, %v1144_v6  ;;  %v2377_v6 = vld [vmem:[%s3507_s8 + $0x98] sm:$0xf0] }
 0x4c8   : > { %v1255_v59 = vpop.f32.mrf.mxu1 }
 0x4c9   : > { %v1260_v3 = vadd.f32 %v1255_v59, %v1203_v2  ;;  %v2627_v59 = vld [vmem:[%s3507_s8 + $0x8c] sm:$0xf0]  ;;  %v2628_v2 = vld [vmem:[%s3507_s8 + $0x94] sm:$0xf0] }
 0x4ca   : > { %v2368_v61 = vor.u32 %v2627_v59, %v2367_v58  ;;  %v2312_v58 = vor.u32 %v2612_v56, %v2311_v55  ;;  %v2313_v59 = vld [vmem:[%s3507_s8 + $0x18] sm:$0xf0]  ;;  %v2650_v55 = vld [vmem:[#allocation2 + $0x48] sm:$0xff]  ;;  %v2641_v56 = vld [vmem:[#allocation2] sm:$0xff] }
 0x4cc   : > { %1634 = vmatpush.bf16.msra.mxu2 %v2368_v61  ;;  %v2316_v61 = vor.u32 %v2610_v57, %v2313_v59  ;;  %v2649_v57 = vld [vmem:[#allocation2 + $0x40] sm:$0xff] }
 0x4d0   : > { %v1257_v62 = vpop.f32.mrf.mxu1 }
 0x4d1   : > { %v1261_v10 = vadd.f32 %v1257_v62, %v1204_v9  ;;  %v2369_v62 = vld [vmem:[%s3507_s8 + $0x90] sm:$0xf0]  ;;  %v2351_v9 = vld [vmem:[%s3507_s8 + $0x60] sm:$0xf] }
 0x4e0   : > { %v1369_v4 = vpop.f32.mrf.mxu1 }
 0x4e5   : > { %v1312_v5 = vpop.f32.mrf.mxu3 }
 0x4e6   : > { %v1317_v7 = vadd.f32 %v1312_v5, %v1260_v3  ;;  %v2372_v3 = vor.u32 %v2625_v60, %v2369_v62  ;;  %v2626_v5 = vld [vmem:[%s3507_s8 + $0x8c] sm:$0xf] }
 0x4e8   : > { %v3263_v8 = vadd.f32 %v1369_v4, %v1317_v7  ;;  %v1371_v13 = vpop.f32.mrf.mxu1  ;;  %v2376_v4 = vor.u32 %v2628_v2, %v2375_v63  ;;  %v2380_v7 = vor.u32 %v2626_v5, %v2377_v6  ;;  %1648 = vmatpush.bf16.msra.mxu3 %v2372_v3  ;;  %v2664_v63 = vld [vmem:[#allocation2 + $0xb8] sm:$0xff]  ;;  %v2663_v6 = vld [vmem:[#allocation2 + $0xb0] sm:$0xff] }
 0x4e9   : > { %v2672_v2 = vld [vmem:[#allocation2 + $0xf8] sm:$0xff] }
 0x4ea   : > { %1378 = vadd.xlane.f32.xlu2 %v3263_v8  ;;  %1662 = vmatpush.bf16.msra.mxu0 %v2376_v4  ;;  %v2648_v4 = vld [vmem:[#allocation2 + $0x38] sm:$0xff] }
 0x4eb   : > { %1676 = vmatpush.bf16.msrb.mxu1 %v2380_v7  ;;  %v2656_v5 = vld [vmem:[#allocation2 + $0x78] sm:$0xff]  ;;  %v2671_v7 = vld [vmem:[#allocation2 + $0xf0] sm:$0xff] }
 0x4ed   : > { %v1314_v11 = vpop.f32.mrf.mxu3 }
 0x4ee   : > { %v1318_v12 = vadd.f32 %v1314_v11, %v1261_v10  ;;  %v2623_v10 = vld [vmem:[%s3507_s8 + $0x6c] sm:$0xf0]  ;;  %v2621_v11 = vld [vmem:[%s3507_s8 + $0x64] sm:$0xf] }
 0x4f0   : > { %v3266_v29 = vadd.f32 %v1371_v13, %v1318_v12  ;;  %v2352_v12 = vor.u32 %v2623_v10, %v2351_v9  ;;  %v2353_v13 = vld [vmem:[%s3507_s8 + $0x70] sm:$0xf0] }
 0x4f2   : > { %1380 = vadd.xlane.f32.xlu1 %v3266_v29  ;;  %1635 = vmatpush.bf16.msra.mxu2 %v2352_v12  ;;  %v2655_v12 = vld [vmem:[#allocation2 + $0x70] sm:$0xff] }
 0x4f6   : > { %1636 = vmatpush.bf16.msra.mxu2 %v2336_v27 }
 0x4fa   : > { %1637 = vmatpush.bf16.msra.mxu2 %v2320_v38 }
 0x4fe   : > { %1638 = vmatpush.bf16.msra.mxu2 %v2304_v53  ;;  %v2665_v53 = vld [vmem:[#allocation2 + $0xc0] sm:$0xff] }
 0x502   : > { %1959 = vmatpush.bf16.msrb.mxu2 %v2648_v4 }
 0x55d   : > { %v1379_v0 = vpop.xlane.xlu2 %1378 }
 0x55e   : > { %v1382_v15 = vmul.f32 %v1379_v0, %v2907_v14  ;;  %v2359_v0 = vld [vmem:[%s3507_s8 + $0x68] sm:$0xf] }
 0x560   : > { %v3271_v16 = vsub.f32 %v3263_v8, %v1382_v15  ;;  %v2624_v15 = vld [vmem:[%s3507_s8 + $0x74] sm:$0xf0] }
 0x562   : > { %v1386_v1 = vmul.f32 %v3271_v16, %v3271_v16 }
 0x564   : > { %1388 = vadd.xlane.f32.xlu0 %v1386_v1  ;;  %v2356_v1 = vor.u32 %v2621_v11, %v2353_v13  ;;  %v2647_v11 = vld [vmem:[#allocation2 + $0x30] sm:$0xff] }
 0x565   : > { %v1381_v18 = vpop.xlane.xlu1 %1380  ;;  %1960 = vmatpush.bf16.msrb.mxu2 %v2647_v11 }
 0x566   : > { %v1383_v19 = vmul.f32 %v1381_v18, %v2907_v14  ;;  %v2360_v18 = vor.u32 %v2624_v15, %v2359_v0  ;;  %1649 = vmatpush.bf16.msra.mxu3 %v2356_v1  ;;  %v2662_v15 = vld [vmem:[#allocation2 + $0xa8] sm:$0xff] }
 0x567   : > { %v2670_v1 = vld [vmem:[#allocation2 + $0xe8] sm:$0xff] }
 0x568   : > { %v3277_v20 = vsub.f32 %v3266_v29, %v1383_v19  ;;  %v2622_v19 = vld [vmem:[%s3507_s8 + $0x6c] sm:$0xf]  ;;  %1663 = vmatpush.bf16.msra.mxu0 %v2360_v18 }
 0x569   : > { %v2654_v18 = vld [vmem:[#allocation2 + $0x68] sm:$0xff] }
 0x56a   : > { %v1387_v22 = vmul.f32 %v3277_v20, %v3277_v20  ;;  %1650 = vmatpush.bf16.msra.mxu3 %v2340_v32 }
 0x56c   : > { %1390 = vadd.xlane.f32.xlu2 %v1387_v22  ;;  %v2361_v22 = vld [vmem:[%s3507_s8 + $0x78] sm:$0xf0]  ;;  %1664 = vmatpush.bf16.msra.mxu0 %v2344_v33 }
 0x56d   : > { %v2364_v23 = vor.u32 %v2622_v19, %v2361_v22 }
 0x56e   : > { %1651 = vmatpush.bf16.msra.mxu3 %v2324_v44  ;;  %v2668_v44 = vld [vmem:[#allocation2 + $0xd8] sm:$0xff] }
 0x56f   : > { %1677 = vmatpush.bf16.msrb.mxu1 %v2364_v23  ;;  %v2661_v23 = vld [vmem:[#allocation2 + $0xa0] sm:$0xff] }
 0x570   : > { %1665 = vmatpush.bf16.msra.mxu0 %v2328_v45  ;;  %v2645_v45 = vld [vmem:[#allocation2 + $0x20] sm:$0xff] }
 0x572   : > { %1652 = vmatpush.bf16.msra.mxu3 %v2308_v54  ;;  %v2642_v54 = vld [vmem:[#allocation2 + $0x8] sm:$0xff] }
 0x573   : > { %1678 = vmatpush.bf16.msrb.mxu1 %v2348_v36 }
 0x574   : > { %1666 = vmatpush.bf16.msra.mxu0 %v2312_v58  ;;  %v1461_v58 = vld [vmem:[%s3508_s9] sm:$0xf] }
 0x576   : > { %1973 = vmatpush.bf16.msrb.mxu3 %v2656_v5  ;;  %v1463_v5 = vperm.slane %v1461_v58, 0 }
 0x577   : > { %1679 = vmatpush.bf16.msrb.mxu1 %v2332_v49  ;;  %v2658_v49 = vld [vmem:[#allocation2 + $0x88] sm:$0xff] }
 0x578   : > { %1987 = vmatpush.bf16.msrb.mxu0 %v2664_v63 }
 0x57a   : > { %1974 = vmatpush.bf16.msrb.mxu3 %v2655_v12 }
 0x57b   : > { %1680 = vmatpush.bf16.msrb.mxu1 %v2316_v61  ;;  %v1465_v61 = vperm.slane %v1461_v58, 2 }
 0x57c   : > { %1988 = vmatpush.bf16.msrb.mxu0 %v2663_v6  ;;  %v1464_v6 = vperm.slane %v1461_v58, 1 }
 0x57e   : > { %1975 = vmatpush.bf16.msrb.mxu3 %v2654_v18 }
 0x57f   : > { %2001 = vmatpush.bf16.msra.mxu1 %v2672_v2 }
 0x580   : > { %1989 = vmatpush.bf16.msrb.mxu0 %v2662_v15 }
 0x582   : > { %1976 = vmatpush.bf16.msrb.mxu3 %v2653_v46 }
 0x583   : > { %2002 = vmatpush.bf16.msra.mxu1 %v2671_v7 }
 0x584   : > { %1990 = vmatpush.bf16.msrb.mxu0 %v2661_v23 }
 0x587   : > { %2003 = vmatpush.bf16.msra.mxu1 %v2670_v1 }
 0x58b   : > { %2004 = vmatpush.bf16.msra.mxu1 %v2669_v24 }
 0x58f   : > { %2005 = vmatpush.bf16.msra.mxu1 %v2668_v44 }
 0x593   : > { %2006 = vmatpush.bf16.msra.mxu1 %v2667_v47 }
 0x597   : > { %2007 = vmatpush.bf16.msra.mxu1 %v2666_v50 }
 0x59b   : > { %2008 = vmatpush.bf16.msra.mxu1 %v2665_v53 }
 0x5d7   : > { %v1389_v48 = vpop.xlane.xlu0 %1388 }
 0x5d8   : > { %v1392_v52 = vmul.f32 %v1389_v48, %v2907_v14  ;;  %v2652_v48 = vld [vmem:[#allocation2 + $0x58] sm:$0xff] }
 0x5d9   : > { %1977 = vmatpush.bf16.msrb.mxu3 %v2652_v48 }
 0x5da   : > { %v1394_v60 = vadd.f32 1e-05, %v1392_v52  ;;  %v2657_v52 = vld [vmem:[#allocation2 + $0x80] sm:$0xff] }
 0x5dc   : > { %2742 = vrsqrt.f32 %v1394_v60  ;;  %vm1402_vm12 = vweird.f32 %v1394_v60 }
 0x5dd   : > { %1978 = vmatpush.bf16.msrb.mxu3 %v2651_v51 }
 0x5df   : > { %v1391_v62 = vpop.xlane.xlu2 %1390 }
 0x5e0   : > { %v1393_v3 = vmul.f32 %v1391_v62, %v2907_v14  ;;  %v2646_v14 = vld [vmem:[#allocation2 + $0x28] sm:$0xff]  ;;  %v1466_v62 = vperm.slane %v1461_v58, 3 }
 0x5e1   : > { %1961 = vmatpush.bf16.msrb.mxu2 %v2646_v14  ;;  %1979 = vmatpush.bf16.msrb.mxu3 %v2650_v55 }
 0x5e2   : > { %v2743_v9 = vpop.eup %2742  ;;  %v1395_v10 = vadd.f32 1e-05, %v1393_v3 }
 0x5e3   : > { %v1397_v13 = vmul.f32 %v2743_v9, %v1394_v60  ;;  %vm1403_vm11 = vweird.f32 %v2743_v9 }
 0x5e4   : > { %2744 = vrsqrt.f32 %v1395_v10  ;;  %vm1404_vm13 = vmor %vm1402_vm12, %vm1403_vm11  ;;  %vm1412_vm15 = vweird.f32 %v1395_v10 }
 0x5e5   : > { %v1398_v0 = vmul.f32 %v2743_v9, %v1397_v13  ;;  %1962 = vmatpush.bf16.msrb.mxu2 %v2645_v45  ;;  %1980 = vmatpush.bf16.msrb.mxu3 %v2649_v57 }
 0x5e7   : > { %v1399_v19 = vmul.f32 0.5, %v1398_v0 }
 0x5e9   : > { %v1400_v22 = vsub.f32 1.5, %v1399_v19  ;;  %1963 = vmatpush.bf16.msrb.mxu2 %v2644_v17 }
 0x5ea   : > { %v2745_v25 = vpop.eup %2744 }
 0x5eb   : > { %v1401_v26 = vmul.f32 %v2743_v9, %v1400_v22  ;;  %v1407_v27 = vmul.f32 %v2745_v25, %v1395_v10  ;;  %vm1413_vm14 = vweird.f32 %v2745_v25 }
 0x5ec   : > { %vm1414_vm0 = vmor %vm1412_vm15, %vm1413_vm14 }
 0x5ed   : > { %v1408_v28 = vmul.f32 %v2745_v25, %v1407_v27  ;;  %v1405_v30 = vsel %vm1404_vm13, %v2743_v9, %v1401_v26  ;;  %1964 = vmatpush.bf16.msrb.mxu2 %v2643_v21 }
 0x5ee   : > { %v1416_v33 = vmul.f32 %v1405_v30, %v3271_v16  ;;  %v2660_v16 = vld [vmem:[#allocation2 + $0x98] sm:$0xff] }
 0x5ef   : > { %v1409_v31 = vmul.f32 0.5, %v1408_v28  ;;  %1991 = vmatpush.bf16.msrb.mxu0 %v2660_v16 }
 0x5f0   : > { %v1421_v39 = vmul.f32 %v2701_v34, %v1416_v33  ;;  %v2703_v33 = vld [vmem:[%s3510_s11] ss:$0 sm:$0xff] }
 0x5f1   : > { %v1410_v32 = vsub.f32 1.5, %v1409_v31  ;;  %1965 = vmatpush.bf16.msrb.mxu2 %v2642_v54 }
 0x5f2   : > { %v1426_v41 = vadd.f32 %v2702_v40, %v1421_v39 }
 0x5f3   : > { %v1411_v35 = vmul.f32 %v2745_v25, %v1410_v32 }
 0x5f5   : > { %v1415_v36 = vsel %vm1414_vm0, %v2745_v25, %v1411_v35  ;;  %1966 = vmatpush.bf16.msrb.mxu2 %v2641_v56 }
 0x5f6   : > { %v1417_v37 = vmul.f32 %v1415_v36, %v3277_v20  ;;  %v2659_v20 = vld [vmem:[#allocation2 + $0x90] sm:$0xff] }
 0x5f7   : > { %1992 = vmatpush.bf16.msrb.mxu0 %v2659_v20 }
 0x5f8   : > { %v1422_v38 = vmul.f32 %v2701_v34, %v1417_v37 }
 0x5fa   : > { %v1427_v42 = vadd.f32 %v2702_v40, %v1422_v38 }
 0x5fb   : > { %1993 = vmatpush.bf16.msrb.mxu0 %v2658_v49 }
 0x5fc   : > { %v1428_v43 = vpack.c.bf16 %v1427_v42, %v1426_v41 }
 0x5fe   : > { %1639 = vmatmul.bf16.vlgmr.msra.gmra.mxu2 %v1428_v43  ;;  %1653 = vmatmul.bf16.vlgmr.msra.gmra.mxu3 %v1428_v43 }
 0x5ff   : > { %1667 = vmatmul.bf16.vlgmr.msra.gmra.mxu0 %v1428_v43  ;;  %1681 = vmatmul.bf16.vlgmr.msrb.gmra.mxu1 %v1428_v43 }
 0x600   : > { %1994 = vmatpush.bf16.msrb.mxu0 %v2657_v52 }
 0x67c   : > { %v1668_v59 = vpop.f32.mrf.mxu0  ;;  %v1682_v60 = vpop.f32.mrf.mxu1 }
 0x67d   : > { %v1669_v3 = vadd.f32 %v1668_v59, %v1465_v61  ;;  %v1683_v4 = vadd.f32 %v1682_v60, %v1466_v62 }
 0x67f   : > { %v1689_v12 = vmax.f32 %v1669_v3, 0.0  ;;  %v1690_v13 = vmax.f32 %v1683_v4, 0.0 }
 0x681   : > { %v1640_v63 = vpop.f32.mrf.mxu2  ;;  %v1654_v2 = vpop.f32.mrf.mxu3 }
 0x682   : > { %v1641_v1 = vadd.f32 %v1640_v63, %v1463_v5  ;;  %v1655_v14 = vadd.f32 %v1654_v2, %v1464_v6 }
 0x684   : > { %v1670_v7 = vpop.f32.mrf.mxu0  ;;  %v1684_v9 = vpop.f32.mrf.mxu1  ;;  %v1687_v26 = vmax.f32 %v1641_v1, 0.0  ;;  %v1688_v27 = vmax.f32 %v1655_v14, 0.0 }
 0x685   : > { %v1671_v10 = vadd.f32 %v1670_v7, %v1465_v61  ;;  %v1685_v11 = vadd.f32 %v1684_v9, %v1466_v62 }
 0x687   : > { %v1693_v0 = vmax.f32 %v1671_v10, 0.0  ;;  %v1694_v15 = vmax.f32 %v1685_v11, 0.0 }
 0x689   : > { %v1697_v18 = vpack.c.bf16 %v1693_v0, %v1689_v12  ;;  %v1698_v19 = vpack.c.bf16 %v1694_v15, %v1690_v13  ;;  %v1642_v22 = vpop.f32.mrf.mxu2  ;;  %v1656_v23 = vpop.f32.mrf.mxu3 }
 0x68a   : > { %v1643_v24 = vadd.f32 %v1642_v22, %v1463_v5  ;;  %v1657_v25 = vadd.f32 %v1656_v23, %v1464_v6 }
 0x68b   : > { %1995 = vmatmul.bf16.vlgmr.msrb.gmra.mxu0 %v1697_v18  ;;  %2009 = vmatmul.bf16.vlgmr.msra.gmra.mxu1 %v1698_v19 }
 0x68c   : > { %v1691_v28 = vmax.f32 %v1643_v24, 0.0  ;;  %v1692_v30 = vmax.f32 %v1657_v25, 0.0 }
 0x68e   : > { %v1695_v31 = vpack.c.bf16 %v1691_v28, %v1687_v26  ;;  %v1696_v32 = vpack.c.bf16 %v1692_v30, %v1688_v27 }
 0x690   : > { %1967 = vmatmul.bf16.vlgmr.msrb.gmra.mxu2 %v1695_v31  ;;  %1981 = vmatmul.bf16.vlgmr.msrb.gmra.mxu3 %v1696_v32 }
 0x708   : > { %v1996_v37 = vpop.f32.mrf.mxu0  ;;  %v2010_v40 = vpop.f32.mrf.mxu1 }
 0x710   : > { %v1998_v46 = vpop.f32.mrf.mxu0  ;;  %v2012_v47 = vpop.f32.mrf.mxu1 }
 0x713   : > { %v1968_v34 = vpop.f32.mrf.mxu2  ;;  %v1982_v35 = vpop.f32.mrf.mxu3 }
 0x714   : > { %v1969_v36 = vadd.f32 %v2703_v33, %v1968_v34 }
 0x716   : > { %v1983_v39 = vadd.f32 %v1982_v35, %v1969_v36 }
 0x718   : > { %v1997_v38 = vadd.f32 %v1996_v37, %v1983_v39 }
 0x71a   : > { %v2011_v41 = vadd.f32 %v2010_v40, %v1997_v38 }
 0x71b   : > { %v1970_v42 = vpop.f32.mrf.mxu2  ;;  %v1984_v44 = vpop.f32.mrf.mxu3 }
 0x71c   : > { %v2015_v43 = vadd.f32 %v2011_v41, %v3263_v8  ;;  %v1971_v16 = vadd.f32 %v2703_v33, %v1970_v42 }
 0x71e   : > { %2017 = vst [vmem:[%s484_s18] sm:$0xff] %v2015_v43  ;;  %v1985_v45 = vadd.f32 %v1984_v44, %v1971_v16 }
 0x720   : > { %v1999_v20 = vadd.f32 %v1998_v46, %v1985_v45 }
 0x722   : > { %v2013_v17 = vadd.f32 %v2012_v47, %v1999_v20 }
 0x724   : > { %v2016_v48 = vadd.f32 %v2013_v17, %v3266_v29 }
 0x726   : > { %2018 = vst [vmem:[%s484_s18 + $0x8] sm:$0xff] %v2016_v48 }
 0x727 PF: > { %s25_s29 = sadd.s32 1, %s2786_s29  }
 0x728   : > { %p22_p7 = scmp.ge.s32.totalorder %s25_s29, 4  }
 0x72a   :  { %24 = sbr.rel (!%p22_p7) target bundleno = 1 (0x1), region = 111 }
 0x72f   :  { %2040 = vsyncpa [#allocation3], 1 }
 0x730   :  { %2042 = vsyncpa [#allocation3 + $0x1], 1 }

// kernel: gpt_forward.4
= control target key start
LH: loop header
LB: loop body
LE: loop exit
PB: predicated region body
PF: predicated region fallthrough
CT: control target
= control target key end

     0   :  { %19 = vsyncpa [#allocation3], 0  ;;  %s3401_s0 = inlined_call_operand.vmem [shape: f32[2,16,128], index: 0, kind: input, shape index: {}]   ;;  %s3402_s1 = inlined_call_operand.vmem [shape: f32[1,128], index: 1, kind: input, shape index: {}]   ;;  %s3403_s2 = inlined_call_operand.vmem [shape: f32[1,128], index: 2, kind: input, shape index: {}]   ;;  %s3404_s3 = inlined_call_operand.vmem [shape: bf16[128,640], index: 3, kind: input, shape index: {}]   ;;  %s3405_s4 = inlined_call_operand.vmem [shape: bf16[128,128], index: 4, kind: input, shape index: {}]   ;;  %s3406_s5 = inlined_call_operand.vmem [shape: f32[1,128], index: 5, kind: input, shape index: {}]   ;;  %s3407_s6 = inlined_call_operand.vmem [shape: f32[1,128], index: 6, kind: input, shape index: {}]   ;;  %s3408_s7 = inlined_call_operand.vmem [shape: f32[1,128], index: 7, kind: input, shape index: {}]   ;;  %s3409_s8 = inlined_call_operand.hbm [shape: bf16[128,512], index: 8, kind: input, shape index: {}]   ;;  %s3410_s9 = inlined_call_operand.vmem [shape: f32[1,512], index: 9, kind: input, shape index: {}]   ;;  %s3411_s10 = inlined_call_operand.hbm [shape: bf16[512,128], index: 10, kind: input, shape index: {}]   ;;  %s3412_s11 = inlined_call_operand.vmem [shape: f32[1,128], index: 11, kind: input, shape index: {}]   ;;  %s3413_s12 = inlined_call_operand.vmem [shape: f32[16,128], index: 12, kind: input, shape index: {}]   ;;  %s3414_s13 = inlined_call_operand.vmem [shape: f32[16,128], index: 13, kind: input, shape index: {}]   ;;  %s3415_s14 = inlined_call_operand.vmem [shape: f32[2,16,128], index: 14, kind: output, shape index: {}]  }
   0x1   :  { %20 = vsyncpa [#allocation5], 0  ;;  %s2948_s29 = smov 0  }
   0x2 LB: > { %s388_s16 = sshll.u32 %s3409_s8, 4  ;;  %s2113_s17 = sadd.s32 4294967295, %s2861_s29   ;;  %s2861_s29 = sphi %s2948_s29, %s26_s29   ;;  %s389_s16 = int_to_ptr.hbm [resolvable:$true] %s388_s16 }
   0x3   : > { %p2115_p0 = scmp.ge.s32.totalorder %s2861_s29, 1  ;;  %p356_p1 = scmp.lt.s32.totalorder %s2861_s29, 3 }
   0x4   : > { %p2717_p2 = scmp.eq.s32.totalorder %s2113_s17, 0  ;;  %s2863_s19 = smov [#allocation2]  }
   0x5   : > { %p2959_p3 = pnand %p2115_p0, %p356_p1  ;;  %s390_s20 = sshll.u32 %s2863_s19, 4  ;;  %s391_s20 = int_to_ptr.vmem [resolvable:$true] %s390_s20 }
   0x6   : > { %s405_s23 = sshll.u32 %s3411_s10, 4  ;;  %s2864_s24 = smov [#allocation4]   ;;  %s406_s23 = int_to_ptr.hbm [resolvable:$true] %s405_s23 }
   0x7   : > { %p2710_p4 = pneg %p2959_p3  ;;  %s407_s25 = sshll.u32 %s2864_s24, 4  ;;  %s408_s25 = int_to_ptr.vmem [resolvable:$true] %s407_s25 }
   0x8   : > { %s2865_s26 = smov 256   ;;  %s2866_s27 = smov 16  }
   0x9   : > { %p2711_p5 = pnand %p2717_p2, %p2710_p4  ;;  %s2867_s28 = smov 64  }
   0xa   : > { %s2868_s30 = smov 4   ;;  %440 = sbr.rel (%p2959_p3) target bundleno = 1837 (0x72d), region = 76 }
   0xb   : > { %2713 = dma.hbm_to_vmem [thread:$0]  (!%p2711_p5), %s389_s16, 4096, %s391_s20, [#allocation3], %s2865_s26, %s2865_s26, %s2866_s27  }
   0xc   : > { %2716 = dma.hbm_to_vmem [thread:$0]  (!%p2711_p5), %s406_s23, 4096, %s408_s25, [#allocation5], %s2867_s28, %s2867_s28, %s2868_s30  }
   0xf   : > { %2852 = dma.done.wait (%p2717_p2), [#allocation3], 4096  }
  0x10   : > { %2854 = vsyncadd (%p2717_p2), [#allocation3], 4294963200 }
  0x11   : > { %2856 = dma.done.wait (%p2717_p2), [#allocation5], 4096  }
  0x12   : > { %2858 = vsyncadd (%p2717_p2), [#allocation5], 4294963200  ;;  %p492_p6 = scmp.lt.s32.totalorder %s2113_s17, 1  ;;  %v2869_v2 = vmov 128.0   ;;  %v2268_v5 = vld [vmem:[%s3404_s3 + $0x118] sm:$0xf] }
  0x13   : > { %2745 = vrcp.f32 %v2869_v2  ;;  %v2627_v6 = vld [vmem:[%s3404_s3 + $0x128] sm:$0xf0]  ;;  %v2248_v7 = vld [vmem:[%s3404_s3 + $0xf0] sm:$0xf]  ;;  %v2622_v9 = vld [vmem:[%s3404_s3 + $0x100] sm:$0xf0] }
  0x14   : > { %s3418_s17 = smov (!%p492_p6, %s2113_s17), 1  ;;  %v2269_v8 = vor.u32 %v2627_v6, %v2268_v5  ;;  %v2249_v11 = vor.u32 %v2622_v9, %v2248_v7  ;;  %v2228_v23 = vld [vmem:[%s3404_s3 + $0xc8] sm:$0xf]  ;;  %v2617_v24 = vld [vmem:[%s3404_s3 + $0xd8] sm:$0xf0]  ;;  %s2870_s23 = smov 64  }
  0x15   : > { %s2588_s15 = sshll.u32 %s3418_s17, 4  ;;  %v2229_v25 = vor.u32 %v2617_v24, %v2228_v23  ;;  %v2208_v26 = vld [vmem:[%s3404_s3 + $0xa0] sm:$0xf]  ;;  %v2612_v27 = vld [vmem:[%s3404_s3 + $0xb0] sm:$0xf0]  ;;  %s2871_s24 = smov 96  }
  0x16   : > { %s496_s18 = scalar_lea.vmem %s3401_s0, %s2588_s15  ;;  %821 = vmatpush.bf16.msra.mxu0 %v2269_v8  ;;  %v2209_v28 = vor.u32 %v2612_v27, %v2208_v26  ;;  %v2625_v29 = vld [vmem:[%s3404_s3 + $0x11c] sm:$0xf]  ;;  %v2270_v30 = vld [vmem:[%s3404_s3 + $0x12c] sm:$0xf0]  ;;  %v2276_v31 = vld [vmem:[%s3404_s3 + $0x120] sm:$0xf]  ;;  %s501_s28 = scalar_lea.vmem %s3415_s14, %s2588_s15 }
  0x17   : > { %v2983_v0 = vld [vmem:[%s496_s18] sm:$0xff]  ;;  %v2986_v1 = vld [vmem:[%s496_s18 + $0x8] sm:$0xff]  ;;  %v2273_v32 = vor.u32 %v2625_v29, %v2270_v30  ;;  %v2628_v33 = vld [vmem:[%s3404_s3 + $0x130] sm:$0xf0]  ;;  %vm930_vm7 = vcmask 261120   ;;  %s2872_s25 = smov 32  }
  0x18   : > { %507 = vadd.xlane.f32.xlu0 %v2983_v0  ;;  %v2626_v34 = vld [vmem:[%s3404_s3 + $0x124] sm:$0xf]  ;;  %v2278_v35 = vld [vmem:[%s3404_s3 + $0x134] sm:$0xf0]  ;;  %v2277_v36 = vor.u32 %v2628_v33, %v2276_v31  ;;  %v2607_v39 = vld [vmem:[%s3404_s3 + $0x88] sm:$0xf0] }
  0x19   : > { %v2746_v3 = vpop.eup %2745  ;;  %v2281_v37 = vor.u32 %v2626_v34, %v2278_v35  ;;  %835 = vmatpush.bf16.msra.mxu1 %v2273_v32  ;;  %v2188_v38 = vld [vmem:[%s3404_s3 + $0x78] sm:$0xf]  ;;  %v2620_v41 = vld [vmem:[%s3404_s3 + $0xf4] sm:$0xf]  ;;  %v2250_v42 = vld [vmem:[%s3404_s3 + $0x104] sm:$0xf0] }
  0x1a   : > { %v512_v4 = vmul.f32 128.0, %v2746_v3  ;;  %822 = vmatpush.bf16.msra.mxu0 %v2249_v11  ;;  %vm516_vm0 = vweird.f32 %v2746_v3  ;;  %849 = vmatpush.bf16.msra.mxu2 %v2277_v36  ;;  %v2189_v40 = vor.u32 %v2607_v39, %v2188_v38  ;;  %v2256_v43 = vld [vmem:[%s3404_s3 + $0xf8] sm:$0xf]  ;;  %v2253_v44 = vor.u32 %v2620_v41, %v2250_v42  ;;  %v2623_v45 = vld [vmem:[%s3404_s3 + $0x108] sm:$0xf0] }
  0x1b   : > { %863 = vmatpush.bf16.msra.mxu3 %v2281_v37  ;;  %v2621_v46 = vld [vmem:[%s3404_s3 + $0xfc] sm:$0xf]  ;;  %v2258_v47 = vld [vmem:[%s3404_s3 + $0x10c] sm:$0xf0]  ;;  %v2257_v48 = vor.u32 %v2623_v45, %v2256_v43  ;;  %v2602_v51 = vld [vmem:[%s3404_s3 + $0x60] sm:$0xf0] }
  0x1c   : > { %v513_v10 = vsub.f32 1.0, %v512_v4  ;;  %v2261_v49 = vor.u32 %v2621_v46, %v2258_v47  ;;  %v2168_v50 = vld [vmem:[%s3404_s3 + $0x50] sm:$0xf]  ;;  %v2615_v53 = vld [vmem:[%s3404_s3 + $0xcc] sm:$0xf]  ;;  %vm1043_vm9 = vcmask 130048  }
  0x1d   : > { %836 = vmatpush.bf16.msra.mxu1 %v2253_v44  ;;  %v2169_v52 = vor.u32 %v2602_v51, %v2168_v50  ;;  %v2230_v54 = vld [vmem:[%s3404_s3 + $0xdc] sm:$0xf0]  ;;  %v2236_v55 = vld [vmem:[%s3404_s3 + $0xd0] sm:$0xf]  ;;  %v2618_v57 = vld [vmem:[%s3404_s3 + $0xe0] sm:$0xf0] }
  0x1e   : > { %v514_v12 = vmul.f32 %v2746_v3, %v513_v10  ;;  %823 = vmatpush.bf16.msra.mxu0 %v2229_v25  ;;  %850 = vmatpush.bf16.msra.mxu2 %v2257_v48  ;;  %v2233_v56 = vor.u32 %v2615_v53, %v2230_v54  ;;  %v2616_v58 = vld [vmem:[%s3404_s3 + $0xd4] sm:$0xf]  ;;  %v2238_v59 = vld [vmem:[%s3404_s3 + $0xe4] sm:$0xf0]  ;;  %v2237_v60 = vor.u32 %v2618_v57, %v2236_v55  ;;  %v2597_v63 = vld [vmem:[%s3404_s3 + $0x38] sm:$0xf0] }
  0x1f   : > { %864 = vmatpush.bf16.msra.mxu3 %v2261_v49  ;;  %v2241_v61 = vor.u32 %v2616_v58, %v2238_v59  ;;  %v2148_v62 = vld [vmem:[%s3404_s3 + $0x28] sm:$0xf]  ;;  %v2210_v4 = vld [vmem:[%s3404_s3 + $0xb4] sm:$0xf0]  ;;  %v2613_v7 = vld [vmem:[%s3404_s3 + $0xb8] sm:$0xf0] }
  0x20   : > { %509 = vadd.xlane.f32.xlu0 %v2986_v1  ;;  %v515_v13 = vadd.f32 %v2746_v3, %v514_v12  ;;  %v2149_v2 = vor.u32 %v2597_v63, %v2148_v62  ;;  %v2216_v5 = vld [vmem:[%s3404_s3 + $0xa8] sm:$0xf]  ;;  %v2611_v8 = vld [vmem:[%s3404_s3 + $0xac] sm:$0xf]  ;;  %v2218_v9 = vld [vmem:[%s3404_s3 + $0xbc] sm:$0xf0] }
  0x21   : > { %837 = vmatpush.bf16.msra.mxu1 %v2233_v56  ;;  %v2217_v10 = vor.u32 %v2613_v7, %v2216_v5  ;;  %v2221_v11 = vor.u32 %v2611_v8, %v2218_v9  ;;  %v2128_v12 = vld [vmem:[%s3404_s3] sm:$0xf]  ;;  %v2606_v23 = vld [vmem:[%s3404_s3 + $0x84] sm:$0xf]  ;;  %v2198_v24 = vld [vmem:[%s3404_s3 + $0x94] sm:$0xf0] }
  0x22   : > { %v3001_v14 = vsel %vm516_vm0, %v2746_v3, %v515_v13  ;;  %824 = vmatpush.bf16.msra.mxu0 %v2209_v28  ;;  %851 = vmatpush.bf16.msra.mxu2 %v2237_v60  ;;  %v2610_v3 = vld [vmem:[%s3404_s3 + $0xa4] sm:$0xf]  ;;  %v2592_v13 = vld [vmem:[%s3404_s3 + $0x10] sm:$0xf0]  ;;  %v2201_v26 = vor.u32 %v2606_v23, %v2198_v24  ;;  %v2284_v27 = vld [vmem:[%s3404_s3 + $0x128] sm:$0xf] }
  0x23   : > { %865 = vmatpush.bf16.msra.mxu3 %v2241_v61  ;;  %v2213_v6 = vor.u32 %v2610_v3, %v2210_v4  ;;  %v2629_v28 = vld [vmem:[%s3404_s3 + $0x138] sm:$0xf0]  ;;  %v2600_v30 = vld [vmem:[%s3404_s3 + $0x54] sm:$0xf]  ;;  %v2170_v31 = vld [vmem:[%s3404_s3 + $0x64] sm:$0xf0] }
  0x24   : > { %v2285_v29 = vor.u32 %v2629_v28, %v2284_v27  ;;  %v2176_v32 = vld [vmem:[%s3404_s3 + $0x58] sm:$0xf]  ;;  %v2173_v33 = vor.u32 %v2600_v30, %v2170_v31  ;;  %v2603_v34 = vld [vmem:[%s3404_s3 + $0x68] sm:$0xf0]  ;;  %v2601_v35 = vld [vmem:[%s3404_s3 + $0x5c] sm:$0xf] }
  0x25   : > { %838 = vmatpush.bf16.msra.mxu1 %v2213_v6  ;;  %v2178_v36 = vld [vmem:[%s3404_s3 + $0x6c] sm:$0xf0]  ;;  %v2177_v37 = vor.u32 %v2603_v34, %v2176_v32  ;;  %v2264_v39 = vld [vmem:[%s3404_s3 + $0x100] sm:$0xf]  ;;  %v2595_v42 = vld [vmem:[%s3404_s3 + $0x2c] sm:$0xf] }
  0x26   : > { %825 = vmatpush.bf16.msra.mxu0 %v2189_v40  ;;  %852 = vmatpush.bf16.msra.mxu2 %v2217_v10  ;;  %v2181_v38 = vor.u32 %v2601_v35, %v2178_v36  ;;  %v2624_v40 = vld [vmem:[%s3404_s3 + $0x110] sm:$0xf0]  ;;  %v2150_v43 = vld [vmem:[%s3404_s3 + $0x3c] sm:$0xf0]  ;;  %v2156_v44 = vld [vmem:[%s3404_s3 + $0x30] sm:$0xf] }
  0x27   : > { %866 = vmatpush.bf16.msra.mxu3 %v2221_v11  ;;  %v2265_v41 = vor.u32 %v2624_v40, %v2264_v39  ;;  %v2153_v45 = vor.u32 %v2595_v42, %v2150_v43  ;;  %v2598_v46 = vld [vmem:[%s3404_s3 + $0x40] sm:$0xf0]  ;;  %v2596_v47 = vld [vmem:[%s3404_s3 + $0x34] sm:$0xf]  ;;  %v2158_v48 = vld [vmem:[%s3404_s3 + $0x44] sm:$0xf0] }
  0x28   : > { %v2157_v49 = vor.u32 %v2598_v46, %v2156_v44  ;;  %v2161_v50 = vor.u32 %v2596_v47, %v2158_v48  ;;  %v2244_v51 = vld [vmem:[%s3404_s3 + $0xd8] sm:$0xf]  ;;  %v2590_v56 = vld [vmem:[%s3404_s3 + $0x4] sm:$0xf]  ;;  %v2136_v58 = vld [vmem:[%s3404_s3 + $0x8] sm:$0xf] }
  0x29   : > { %v2130_v57 = vld [vmem:[%s3404_s3 + $0x14] sm:$0xf0]  ;;  %v2593_v60 = vld [vmem:[%s3404_s3 + $0x18] sm:$0xf0]  ;;  %v2591_v61 = vld [vmem:[%s3404_s3 + $0xc] sm:$0xf] }
  0x2a   : > { %826 = vmatpush.bf16.msra.mxu0 %v2169_v52  ;;  %v2619_v52 = vld [vmem:[%s3404_s3 + $0xe8] sm:$0xf0]  ;;  %v2133_v59 = vor.u32 %v2590_v56, %v2130_v57  ;;  %v2138_v62 = vld [vmem:[%s3404_s3 + $0x1c] sm:$0xf0]  ;;  %v2224_v4 = vld [vmem:[%s3404_s3 + $0xb0] sm:$0xf] }
  0x2b   : > { %867 = vmatpush.bf16.msra.mxu3 %v2201_v26  ;;  %v2245_v54 = vor.u32 %v2619_v52, %v2244_v51  ;;  %v2141_v3 = vor.u32 %v2591_v61, %v2138_v62  ;;  %v2614_v5 = vld [vmem:[%s3404_s3 + $0xc0] sm:$0xf0]  ;;  %v2204_v7 = vld [vmem:[%s3404_s3 + $0x88] sm:$0xf]  ;;  %v2609_v8 = vld [vmem:[%s3404_s3 + $0x98] sm:$0xf0] }
  0x2c   : > { %v2225_v6 = vor.u32 %v2614_v5, %v2224_v4  ;;  %v2205_v9 = vor.u32 %v2609_v8, %v2204_v7  ;;  %v2184_v11 = vld [vmem:[%s3404_s3 + $0x60] sm:$0xf]  ;;  %v2594_v26 = vld [vmem:[%s3404_s3 + $0x20] sm:$0xf0] }
  0x2e   : > { %827 = vmatpush.bf16.msra.mxu0 %v2149_v2  ;;  %v2137_v2 = vor.u32 %v2593_v60, %v2136_v58 }
  0x2f   : > { %868 = vmatpush.bf16.msra.mxu3 %v2181_v38 }
  0x33   : > { %869 = vmatpush.bf16.msra.mxu3 %v2161_v50 }
  0x37   : > { %870 = vmatpush.bf16.msra.mxu3 %v2141_v3 }
  0x8b   : > { %v508_v15 = vpop.xlane.xlu0 %507 }
  0x8c   : > { %v518_v16 = vmul.f32 %v3001_v14, %v508_v15  ;;  %v2129_v15 = vor.u32 %v2592_v13, %v2128_v12  ;;  %v2604_v12 = vld [vmem:[%s3404_s3 + $0x70] sm:$0xf0] }
  0x8e   : > { %v3005_v17 = vsub.f32 %v2983_v0, %v518_v16  ;;  %v2605_v16 = vld [vmem:[%s3404_s3 + $0x7c] sm:$0xf]  ;;  %828 = vmatpush.bf16.msra.mxu0 %v2129_v15  ;;  %v2185_v15 = vor.u32 %v2604_v12, %v2184_v11 }
  0x90   : > { %v522_v18 = vmul.f32 %v3005_v17, %v3005_v17 }
  0x92   : > { %524 = vadd.xlane.f32.xlu1 %v522_v18  ;;  %v2190_v18 = vld [vmem:[%s3404_s3 + $0x8c] sm:$0xf0]  ;;  %877 = vmatpush.bf16.msrb.mxu0 %v2285_v29 }
  0x93   : > { %v510_v19 = vpop.xlane.xlu0 %509 }
  0x94   : > { %v519_v20 = vmul.f32 %v3001_v14, %v510_v19  ;;  %v2196_v19 = vld [vmem:[%s3404_s3 + $0x80] sm:$0xf] }
  0x96   : > { %v3011_v21 = vsub.f32 %v2986_v1, %v519_v20  ;;  %v2193_v20 = vor.u32 %v2605_v16, %v2190_v18  ;;  %878 = vmatpush.bf16.msrb.mxu0 %v2265_v41  ;;  %v2740_v41 = vld [vmem:[%s3403_s2] ss:$0 sm:$0xff] }
  0x98   : > { %v523_v22 = vmul.f32 %v3011_v21, %v3011_v21  ;;  %839 = vmatpush.bf16.msra.mxu1 %v2193_v20  ;;  %v2599_v20 = vld [vmem:[%s3404_s3 + $0x48] sm:$0xf0] }
  0x9a   : > { %526 = vadd.xlane.f32.xlu1 %v523_v22  ;;  %v2608_v22 = vld [vmem:[%s3404_s3 + $0x90] sm:$0xf0]  ;;  %879 = vmatpush.bf16.msrb.mxu0 %v2245_v54  ;;  %v892_v54 = vld [vmem:[%s3413_s12 + $0x8] sm:$0xff] }
  0x9b   : > { %v2197_v25 = vor.u32 %v2608_v22, %v2196_v19  ;;  %v2164_v19 = vld [vmem:[%s3404_s3 + $0x38] sm:$0xf] }
  0x9c   : > { %840 = vmatpush.bf16.msra.mxu1 %v2173_v33  ;;  %v2165_v24 = vor.u32 %v2599_v20, %v2164_v19 }
  0x9d   : > { %853 = vmatpush.bf16.msra.mxu2 %v2197_v25  ;;  %v2144_v25 = vld [vmem:[%s3404_s3 + $0x10] sm:$0xf] }
  0x9e   : > { %880 = vmatpush.bf16.msrb.mxu0 %v2225_v6  ;;  %v2145_v29 = vor.u32 %v2594_v26, %v2144_v25 }
  0xa0   : > { %841 = vmatpush.bf16.msra.mxu1 %v2153_v45 }
  0xa1   : > { %854 = vmatpush.bf16.msra.mxu2 %v2177_v37  ;;  %v2739_v37 = vld [vmem:[%s3402_s1] ss:$0 sm:$0xff] }
  0xa2   : > { %881 = vmatpush.bf16.msrb.mxu0 %v2205_v9 }
  0xa4   : > { %842 = vmatpush.bf16.msra.mxu1 %v2133_v59 }
  0xa5   : > { %855 = vmatpush.bf16.msra.mxu2 %v2157_v49  ;;  %v893_v49 = vld [vmem:[%s3414_s13] sm:$0xff] }
  0xa6   : > { %882 = vmatpush.bf16.msrb.mxu0 %v2185_v15 }
  0xa9   : > { %856 = vmatpush.bf16.msra.mxu2 %v2137_v2 }
  0xaa   : > { %883 = vmatpush.bf16.msrb.mxu0 %v2165_v24 }
  0xae   : > { %884 = vmatpush.bf16.msrb.mxu0 %v2145_v29 }
 0x105   : > { %v525_v53 = vpop.xlane.xlu1 %524 }
 0x106   : > { %v528_v55 = vmul.f32 %v525_v53, %v3001_v14 }
 0x108   : > { %v530_v63 = vadd.f32 1e-05, %v528_v55  ;;  %v894_v55 = vld [vmem:[%s3414_s13 + $0x8] sm:$0xff] }
 0x10a   : > { %2747 = vrsqrt.f32 %v530_v63  ;;  %vm538_vm2 = vweird.f32 %v530_v63 }
 0x10d   : > { %v527_v10 = vpop.xlane.xlu1 %526 }
 0x10e   : > { %v529_v13 = vmul.f32 %v527_v10, %v3001_v14 }
 0x110   : > { %v2748_v16 = vpop.eup %2747  ;;  %v531_v18 = vadd.f32 1e-05, %v529_v13 }
 0x111   : > { %v533_v22 = vmul.f32 %v2748_v16, %v530_v63  ;;  %vm539_vm1 = vweird.f32 %v2748_v16 }
 0x112   : > { %2749 = vrsqrt.f32 %v531_v18  ;;  %vm540_vm3 = vmor %vm538_vm2, %vm539_vm1  ;;  %vm548_vm5 = vweird.f32 %v531_v18 }
 0x113   : > { %v534_v23 = vmul.f32 %v2748_v16, %v533_v22 }
 0x115   : > { %v535_v27 = vmul.f32 0.5, %v534_v23 }
 0x117   : > { %v536_v28 = vsub.f32 1.5, %v535_v27 }
 0x118   : > { %v2750_v30 = vpop.eup %2749 }
 0x119   : > { %v537_v31 = vmul.f32 %v2748_v16, %v536_v28  ;;  %v543_v32 = vmul.f32 %v2750_v30, %v531_v18  ;;  %vm549_vm4 = vweird.f32 %v2750_v30 }
 0x11a   : > { %vm550_vm6 = vmor %vm548_vm5, %vm549_vm4 }
 0x11b   : > { %v544_v33 = vmul.f32 %v2750_v30, %v543_v32  ;;  %v541_v34 = vsel %vm540_vm3, %v2748_v16, %v537_v31 }
 0x11c   : > { %v552_v38 = vmul.f32 %v541_v34, %v3005_v17 }
 0x11d   : > { %v545_v35 = vmul.f32 0.5, %v544_v33 }
 0x11e   : > { %v557_v42 = vmul.f32 %v2739_v37, %v552_v38  ;;  %v913_v38 = vlaneseq }
 0x11f   : > { %v546_v36 = vsub.f32 1.5, %v545_v35 }
 0x120   : > { %v562_v45 = vadd.f32 %v2740_v41, %v557_v42 }
 0x121   : > { %v547_v39 = vmul.f32 %v2750_v30, %v546_v36 }
 0x123   : > { %v551_v40 = vsel %vm550_vm6, %v2750_v30, %v547_v39  ;;  %v914_v39 = vshrl.u32 %v913_v38, 7 }
 0x124   : > { %v553_v43 = vmul.f32 %v551_v40, %v3011_v21  ;;  %v891_v21 = vld [vmem:[%s3413_s12] sm:$0xff]  ;;  %v917_v40 = vand.u32 127, %v913_v38 }
 0x126   : > { %v558_v44 = vmul.f32 %v2739_v37, %v553_v43  ;;  %vm918_vm8 = vcmp.le.s32.totalorder %v917_v40, %v914_v39 }
 0x128   : > { %v563_v46 = vadd.f32 %v2740_v41, %v558_v44 }
 0x12a   : > { %v564_v47 = vpack.c.bf16 %v563_v46, %v562_v45  ;;  %v915_v45 = vadd.s32 8, %v914_v39 }
 0x12c   : > { %829 = vmatmul.bf16.vlgmr.msra.gmra.mxu0 %v564_v47  ;;  %843 = vmatmul.bf16.vlgmr.msra.gmra.mxu1 %v564_v47  ;;  %vm919_vm10 = vcmp.le.s32.totalorder %v917_v40, %v915_v45 }
 0x12d   : > { %857 = vmatmul.bf16.vlgmr.msra.gmra.mxu2 %v564_v47  ;;  %871 = vmatmul.bf16.vlgmr.msra.gmra.mxu3 %v564_v47 }
 0x13c   : > { %885 = vmatmul.bf16.vlgmr.msrb.gmra.mxu0 %v564_v47 }
 0x1a9   : > { %v830_v17 = vpop.f32.mrf.mxu0  ;;  %v844_v53 = vpop.f32.mrf.mxu1 }
 0x1aa   : > { %v895_v52 = vmul.f32 %v891_v21, %v830_v17  ;;  %v901_v3 = vmul.f32 %v891_v21, %v844_v53 }
 0x1b0   : > { %v872_v48 = vpop.f32.mrf.mxu3  ;;  %v858_v22 = vpop.f32.mrf.mxu2 }
 0x1b1   : > { %v832_v50 = vpop.f32.mrf.mxu0  ;;  %v897_v51 = vmul.f32 %v893_v49, %v872_v48  ;;  %v846_v5 = vpop.f32.mrf.mxu1  ;;  %v911_v25 = vpack.c.bf16 %v858_v22, %v858_v22 }
 0x1b2   : > { %v896_v58 = vmul.f32 %v892_v54, %v832_v50  ;;  %v902_v10 = vmul.f32 %v892_v54, %v846_v5 }
 0x1b3   : > { %v899_v56 = vadd.f32 %v897_v51, %v895_v52  ;;  %v1169_v27 = vunpack.c.l.b16 %v911_v25 }
 0x1b5   : > { %v907_v61 = vpack.c.bf16 %v899_v56, %v899_v56 }
 0x1b7   : > { %v922_v4 = vunpack.c.l.b16 %v907_v61 }
 0x1b8   : > { %v874_v57 = vpop.f32.mrf.mxu3  ;;  %v860_v23 = vpop.f32.mrf.mxu2 }
 0x1b9   : > { %v898_v59 = vmul.f32 %v894_v55, %v874_v57  ;;  %v886_v60 = vpop.f32.mrf.mxu0  ;;  %v912_v24 = vpack.c.bf16 %v860_v23, %v860_v23 }
 0x1ba   : > { %v903_v63 = vmul.f32 %v893_v49, %v886_v60 }
 0x1bb   : > { %v900_v62 = vadd.f32 %v898_v59, %v896_v58  ;;  %v1170_v26 = vunpack.c.l.b16 %v912_v24 }
 0x1bc   : > { %v905_v7 = vadd.f32 %v903_v63, %v901_v3 }
 0x1bd   : > { %v908_v2 = vpack.c.bf16 %v900_v62, %v900_v62  ;;  %v3273_v29 = vpack.c.b16 %v1170_v26, %v1169_v27 }
 0x1be   : > { %v909_v12 = vpack.c.bf16 %v905_v7, %v905_v7 }
 0x1bf   : > { %v923_v6 = vunpack.c.l.b16 %v908_v2 }
 0x1c0   : > { %v927_v16 = vunpack.c.l.b16 %v909_v12 }
 0x1c1   : > { %v924_v8 = vpack.c.b16 %v923_v6, %v922_v4  ;;  %v888_v9 = vpop.f32.mrf.mxu0 }
 0x1c2   : > { %v904_v11 = vmul.f32 %v894_v55, %v888_v9 }
 0x1c3   : > { %975 = vrot.lane.b32.xlu1 %v924_v8, %s2870_s23  ;;  %951 = vrot.lane.b32.xlu0 %v924_v8, %s2871_s24 }
 0x1c4   : > { %v906_v13 = vadd.f32 %v904_v11, %v902_v10 }
 0x1c6   : > { %v910_v15 = vpack.c.bf16 %v906_v13, %v906_v13 }
 0x1c8   : > { %v928_v18 = vunpack.c.l.b16 %v910_v15 }
 0x1ca   : > { %v929_v19 = vpack.c.b16 %v928_v18, %v927_v16 }
 0x1cc   : > { %953 = vrot.lane.b32.xlu2 %v929_v19, %s2871_s24  ;;  %v935_v20 = vsel %vm930_vm7, %v929_v19, 0 }
 0x1cd   : > { %944 = vmatpush.bf16.xpose.msrb.mxu1 %v935_v20 }
 0x1d4   : > { %977 = vrot.lane.b32.xlu2 %v929_v19, %s2870_s23  ;;  %2286 = vmatmul.msk.bf16.vlgmr.msrb.gmra.mxu1 %vm930_vm7, %v924_v8 }
 0x1dc   : > { %1001 = vrot.lane.b32.xlu2 %v929_v19, %s2872_s25 }
 0x1e4   : > { %999 = vrot.lane.b32.xlu2 %v924_v8, %s2872_s25 }
 0x226   : > { %v954_v28 = vpop.permute.xlu2 %953 }
 0x227   : > { %v959_v30 = vsel %vm930_vm7, %v954_v28, 0 }
 0x228   : > { %968 = vmatpush.bf16.xpose.msrb.mxu2 %v959_v30 }
 0x22e   : > { %v978_v31 = vpop.permute.xlu2 %977 }
 0x22f   : > { %v983_v32 = vsel %vm930_vm7, %v978_v31, 0 }
 0x230   : > { %1183 = vmatpush.bf16.msra.mxu2 %v3273_v29  ;;  %992 = vmatpush.bf16.xpose.msrb.mxu3 %v983_v32 }
 0x235   : > { %v952_v33 = vpop.permute.xlu0 %951  ;;  %v976_v34 = vpop.permute.xlu1 %975 }
 0x236   : > { %2287 = vmatmul.msk.bf16.vlgmr.msrb.gmra.mxu2 %vm930_vm7, %v952_v33  ;;  %v1002_v35 = vpop.permute.xlu2 %1001 }
 0x237   : > { %v1007_v36 = vsel %vm930_vm7, %v1002_v35, 0  ;;  %2288 = vmatmul.msk.bf16.vlgmr.msrb.gmra.mxu3 %vm930_vm7, %v976_v34 }
 0x238   : > { %1016 = vmatpush.bf16.xpose.msra.mxu1 %v1007_v36 }
 0x23e   : > { %v1000_v37 = vpop.permute.xlu2 %999 }
 0x23f   : > { %2289 = vmatmul.msk.bf16.vlgmr.msra.gmra.mxu1 %vm930_vm7, %v1000_v37 }
 0x251   : > { %v946_v41 = vpop.f32.mrf.mxu1 }
 0x252   : > { %v1023_v42 = vmul.f32 0.17677669, %v946_v41 }
 0x254   : > { %v1035_v43 = vsel %vm918_vm8, %v1023_v42, -1e+30 }
 0x255   : > { %v1044_v44 = vsel %vm1043_vm9, %v1035_v43, -inf }
 0x256   : > { %1045 = vmax.xlane.f32.xlu2 %v1044_v44 }
 0x259   : > { %v948_v46 = vpop.f32.mrf.mxu1 }
 0x25a   : > { %v1024_v47 = vmul.f32 0.17677669, %v948_v46 }
 0x25c   : > { %v1036_v17 = vsel %vm919_vm10, %v1024_v47, -1e+30 }
 0x25d   : > { %v1047_v48 = vsel %vm1043_vm9, %v1036_v17, -inf }
 0x25e   : > { %1048 = vmax.xlane.f32.xlu0 %v1047_v48 }
 0x2b9   : > { %v970_v49 = vpop.f32.mrf.mxu2 }
 0x2ba   : > { %v1025_v50 = vmul.f32 0.17677669, %v970_v49  ;;  %v994_v21 = vpop.f32.mrf.mxu3 }
 0x2bb   : > { %v1027_v51 = vmul.f32 0.17677669, %v994_v21 }
 0x2bc   : > { %v1018_v52 = vpop.f32.mrf.mxu1  ;;  %v1037_v53 = vsel %vm918_vm8, %v1025_v50, -1e+30 }
 0x2bd   : > { %v1050_v54 = vsel %vm1043_vm9, %v1037_v53, -inf  ;;  %v1039_v55 = vsel %vm918_vm8, %v1027_v51, -1e+30  ;;  %v1029_v56 = vmul.f32 0.17677669, %v1018_v52 }
 0x2be   : > { %1051 = vmax.xlane.f32.xlu1 %v1050_v54  ;;  %v1056_v57 = vsel %vm1043_vm9, %v1039_v55, -inf }
 0x2bf   : > { %1057 = vmax.xlane.f32.xlu0 %v1056_v57  ;;  %v1041_v60 = vsel %vm918_vm8, %v1029_v56, -1e+30 }
 0x2c0   : > { %v1062_v4 = vsel %vm1043_vm9, %v1041_v60, -inf }
 0x2c1   : > { %v972_v58 = vpop.f32.mrf.mxu2 }
 0x2c2   : > { %v1026_v59 = vmul.f32 0.17677669, %v972_v58  ;;  %v996_v61 = vpop.f32.mrf.mxu3 }
 0x2c3   : > { %v1028_v5 = vmul.f32 0.17677669, %v996_v61 }
 0x2c4   : > { %v1020_v62 = vpop.f32.mrf.mxu1  ;;  %v1038_v63 = vsel %vm919_vm10, %v1026_v59, -1e+30 }
 0x2c5   : > { %v1030_v2 = vmul.f32 0.17677669, %v1020_v62  ;;  %v1053_v3 = vsel %vm1043_vm9, %v1038_v63, -inf  ;;  %v1040_v10 = vsel %vm919_vm10, %v1028_v5, -1e+30 }
 0x2c6   : > { %1054 = vmax.xlane.f32.xlu2 %v1053_v3  ;;  %1063 = vmax.xlane.f32.xlu1 %v1062_v4  ;;  %v1059_v12 = vsel %vm1043_vm9, %v1040_v10, -inf }
 0x2c7   : > { %v1042_v6 = vsel %vm919_vm10, %v1030_v2, -1e+30 }
 0x2c8   : > { %v1065_v7 = vsel %vm1043_vm9, %v1042_v6, -inf }
 0x2c9   : > { %v1046_v8 = vpop.xlane.xlu2 %1045  ;;  %1066 = vmax.xlane.f32.xlu0 %v1065_v7 }
 0x2ca   : > { %v1068_v9 = vsub.f32 %v1035_v43, %v1046_v8 }
 0x2cc   : > { %v1076_v11 = vmul.f32 1.442695, %v1068_v9 }
 0x2ce   : > { %2751 = vpow2.f32 %v1076_v11  ;;  %1060 = vmax.xlane.f32.xlu2 %v1059_v12 }
 0x2d1   : > { %v1049_v13 = vpop.xlane.xlu0 %1048 }
 0x2d2   : > { %v1069_v15 = vsub.f32 %v1036_v17, %v1049_v13  ;;  %v2631_v13 = vld [vmem:[%s3405_s4 + $0x8] sm:$0xff] }
 0x2d3   : > { %1212 = vmatpush.bf16.msra.mxu3 %v2631_v13 }
 0x2d4   : > { %v2752_v16 = vpop.eup %2751  ;;  %v1078_v18 = vmul.f32 1.442695, %v1069_v15 }
 0x2d5   : > { %v1092_v19 = vsel %vm1043_vm9, %v2752_v16, 0.0 }
 0x2d6   : > { %2753 = vpow2.f32 %v1078_v18  ;;  %1093 = vadd.xlane.f32.xlu2 %v1092_v19 }
 0x2dc   : > { %v2754_v20 = vpop.eup %2753 }
 0x2dd   : > { %v1095_v22 = vsel %vm1043_vm9, %v2754_v20, 0.0 }
 0x2de   : > { %1096 = vadd.xlane.f32.xlu1 %v1095_v22  ;;  %v2630_v22 = vld [vmem:[%s3405_s4] sm:$0xff] }
 0x2df   : > { %1213 = vmatpush.bf16.msra.mxu3 %v2630_v22 }
 0x331   : > { %v1052_v23 = vpop.xlane.xlu1 %1051 }
 0x332   : > { %v1070_v24 = vsub.f32 %v1037_v53, %v1052_v23  ;;  %v1058_v25 = vpop.xlane.xlu0 %1057 }
 0x333   : > { %v1072_v26 = vsub.f32 %v1039_v55, %v1058_v25 }
 0x334   : > { %v1080_v27 = vmul.f32 1.442695, %v1070_v24 }
 0x335   : > { %v1084_v28 = vmul.f32 1.442695, %v1072_v26 }
 0x336   : > { %2755 = vpow2.f32 %v1080_v27 }
 0x337   : > { %2757 = vpow2.f32 %v1084_v28 }
 0x339   : > { %v1055_v30 = vpop.xlane.xlu2 %1054  ;;  %v1064_v31 = vpop.xlane.xlu1 %1063 }
 0x33a   : > { %v1071_v32 = vsub.f32 %v1038_v63, %v1055_v30  ;;  %v1074_v33 = vsub.f32 %v1041_v60, %v1064_v31 }
 0x33c   : > { %v2756_v34 = vpop.eup %2755  ;;  %v1082_v35 = vmul.f32 1.442695, %v1071_v32  ;;  %v1088_v36 = vmul.f32 1.442695, %v1074_v33  ;;  %v1067_v37 = vpop.xlane.xlu0 %1066 }
 0x33d   : > { %v3300_v38 = vpop.eup %2757  ;;  %v1075_v39 = vsub.f32 %v1042_v6, %v1067_v37  ;;  %v1098_v40 = vsel %vm1043_vm9, %v2756_v34, 0.0 }
 0x33e   : > { %2759 = vpow2.f32 %v1082_v35  ;;  %1099 = vadd.xlane.f32.xlu0 %v1098_v40  ;;  %v1104_v41 = vsel %vm1043_vm9, %v3300_v38, 0.0 }
 0x33f   : > { %2761 = vpow2.f32 %v1088_v36  ;;  %1105 = vadd.xlane.f32.xlu1 %v1104_v41  ;;  %v1090_v42 = vmul.f32 1.442695, %v1075_v39 }
 0x341   : > { %v1061_v43 = vpop.xlane.xlu2 %1060  ;;  %2763 = vpow2.f32 %v1090_v42 }
 0x342   : > { %v1073_v46 = vsub.f32 %v1040_v10, %v1061_v43 }
 0x344   : > { %v2760_v44 = vpop.eup %2759  ;;  %v1086_v48 = vmul.f32 1.442695, %v1073_v46  ;;  %v2632_v46 = vld [vmem:[%s3405_s4 + $0x10] sm:$0xff] }
 0x345   : > { %v3305_v45 = vpop.eup %2761  ;;  %v1101_v47 = vsel %vm1043_vm9, %v2760_v44, 0.0 }
 0x346   : > { %1102 = vadd.xlane.f32.xlu2 %v1101_v47  ;;  %v1110_v17 = vsel %vm1043_vm9, %v3305_v45, 0.0  ;;  %v2635_v47 = vld [vmem:[%s3405_s4 + $0x28] sm:$0xff] }
 0x347   : > { %1111 = vadd.xlane.f32.xlu0 %v1110_v17  ;;  %v2764_v50 = vpop.eup %2763  ;;  %v2637_v17 = vld [vmem:[%s3405_s4 + $0x38] sm:$0xff]  ;;  %1326 = vmatpush.bf16.msrb.mxu3 %v2635_v47 }
 0x348   : > { %v1113_v21 = vsel %vm1043_vm9, %v2764_v50, 0.0 }
 0x349   : > { %v1094_v49 = vpop.xlane.xlu2 %1093 }
 0x34a   : > { %2765 = vrcp.f32 %v1094_v49  ;;  %v2636_v49 = vld [vmem:[%s3405_s4 + $0x30] sm:$0xff] }
 0x34b   : > { %2767 = vpow2.f32 %v1086_v48  ;;  %v2634_v48 = vld [vmem:[%s3405_s4 + $0x20] sm:$0xff] }
 0x34c   : > { %1327 = vmatpush.bf16.msrb.mxu3 %v2634_v48  ;;  %v2660_v48 = vld [vmem:[#allocation2 + $0xac] sm:$0xf0] }
 0x34f   : > { %1114 = vadd.xlane.f32.xlu0 %v1113_v21 }
 0x350   : > { %v2766_v52 = vpop.eup %2765 }
 0x351   : > { %v1097_v51 = vpop.xlane.xlu1 %1096  ;;  %v2768_v53 = vpop.eup %2767  ;;  %v1124_v54 = vmul.f32 %v2766_v52, %v2752_v16 }
 0x352   : > { %2769 = vrcp.f32 %v1097_v51  ;;  %v1107_v55 = vsel %vm1043_vm9, %v2768_v53, 0.0 }
 0x353   : > { %v1132_v57 = vpack.c.bf16 %v1124_v54, %v1124_v54 }
 0x355   : > { %v1164_v60 = vunpack.c.l.b16 %v1132_v57 }
 0x357   : > { %1108 = vadd.xlane.f32.xlu0 %v1107_v55 }
 0x358   : > { %v2770_v56 = vpop.eup %2769  ;;  %1284 = vrot.lane.b32.xlu1 %v3273_v29, %s2870_s23 }
 0x359   : > { %v1125_v58 = vmul.f32 %v2770_v56, %v2754_v20 }
 0x35b   : > { %v1133_v59 = vpack.c.bf16 %v1125_v58, %v1125_v58 }
 0x35d   : > { %v1165_v61 = vunpack.c.l.b16 %v1133_v59 }
 0x35e   : > { %1227 = vrot.lane.b32.xlu2 %v3273_v29, %s2871_s24 }
 0x35f   : > { %v1166_v62 = vpack.c.b16 %v1165_v61, %v1164_v60  ;;  %v2741_v60 = vld [vmem:[%s3406_s5] ss:$0 sm:$0xff] }
 0x361   : > { %2290 = vmatmul.msk.bf16.vlgmr.msra.gmra.mxu2 %vm1043_vm9, %v1166_v62 }
 0x36b   : > { %1341 = vrot.lane.b32.xlu0 %v3273_v29, %s2872_s25 }
 0x3b1   : > { %v1100_v63 = vpop.xlane.xlu0 %1099 }
 0x3b2   : > { %2771 = vrcp.f32 %v1100_v63  ;;  %v1106_v10 = vpop.xlane.xlu1 %1105  ;;  %v1160_v63 = vadd.f32 %v2741_v60, %v2983_v0 }
 0x3b8   : > { %v2772_v3 = vpop.eup %2771 }
 0x3b9   : > { %v1103_v2 = vpop.xlane.xlu2 %1102  ;;  %v1126_v5 = vmul.f32 %v2772_v3, %v2756_v34 }
 0x3ba   : > { %2773 = vrcp.f32 %v1103_v2  ;;  %v1112_v4 = vpop.xlane.xlu0 %1111 }
 0x3bb   : > { %v1134_v7 = vpack.c.bf16 %v1126_v5, %v1126_v5  ;;  %2775 = vrcp.f32 %v1106_v10 }
 0x3bd   : > { %v1224_v29 = vunpack.c.l.b16 %v1134_v7 }
 0x3c0   : > { %v2774_v6 = vpop.eup %2773 }
 0x3c1   : > { %v1127_v8 = vmul.f32 %v2774_v6, %v2760_v44  ;;  %v1228_v9 = vpop.permute.xlu2 %1227  ;;  %v2776_v20 = vpop.eup %2775  ;;  %v1161_v6 = vadd.f32 %v2741_v60, %v2986_v1  ;;  %v2654_v60 = vld [vmem:[#allocation2 + $0x84] sm:$0xf] }
 0x3c2   : > { %v1115_v11 = vpop.xlane.xlu0 %1114  ;;  %1240 = vmatpush.bf16.msra.mxu0 %v1228_v9  ;;  %v1128_v23 = vmul.f32 %v2776_v20, %v3300_v38 }
 0x3c3   : > { %v1135_v12 = vpack.c.bf16 %v1127_v8, %v1127_v8  ;;  %2777 = vrcp.f32 %v1115_v11 }
 0x3c4   : > { %v1136_v27 = vpack.c.bf16 %v1128_v23, %v1128_v23  ;;  %v2444_v23 = vld [vmem:[#allocation2 + $0xe0] sm:$0xf] }
 0x3c5   : > { %v1225_v15 = vunpack.c.l.b16 %v1135_v12 }
 0x3c6   : > { %v1281_v33 = vunpack.c.l.b16 %v1136_v27  ;;  %v2446_v27 = vld [vmem:[#allocation2 + $0xf0] sm:$0xf0] }
 0x3c7   : > { %v1226_v16 = vpack.c.b16 %v1225_v15, %v1224_v29 }
 0x3c9   : > { %2300 = vmatmul.msk.bf16.vlgmr.msra.gmra.mxu0 %vm1043_vm9, %v1226_v16  ;;  %v2778_v24 = vpop.eup %2777 }
 0x3ca   : > { %v1109_v18 = vpop.xlane.xlu0 %1108  ;;  %v1285_v19 = vpop.permute.xlu1 %1284  ;;  %v1131_v30 = vmul.f32 %v2778_v24, %v2764_v50  ;;  %v2668_v24 = vld [vmem:[#allocation2 + $0xec] sm:$0xf0] }
 0x3cb   : > { %2779 = vrcp.f32 %v1109_v18  ;;  %1297 = vmatpush.bf16.msrb.mxu2 %v1285_v19 }
 0x3cc   : > { %2781 = vrcp.f32 %v1112_v4  ;;  %v1139_v35 = vpack.c.bf16 %v1131_v30, %v1131_v30  ;;  %v2669_v30 = vld [vmem:[#allocation2 + $0xf4] sm:$0xf0] }
 0x3ce   : > { %v1339_v39 = vunpack.c.l.b16 %v1139_v35 }
 0x3d1   : > { %v2780_v25 = vpop.eup %2779 }
 0x3d2   : > { %v2782_v26 = vpop.eup %2781  ;;  %v1129_v28 = vmul.f32 %v2780_v25, %v2768_v53  ;;  %v2666_v25 = vld [vmem:[#allocation2 + $0xe4] sm:$0xf] }
 0x3d3   : > { %v1130_v32 = vmul.f32 %v2782_v26, %v3305_v45  ;;  %v2633_v45 = vld [vmem:[%s3405_s4 + $0x18] sm:$0xff]  ;;  %v2445_v26 = vor.u32 %v2668_v24, %v2444_v23  ;;  %v2364_v24 = vld [vmem:[#allocation2 + $0x40] sm:$0xf] }
 0x3d4   : > { %v1137_v31 = vpack.c.bf16 %v1129_v28, %v1129_v28  ;;  %1269 = vmatpush.bf16.msrb.mxu1 %v2633_v45  ;;  %v2452_v28 = vld [vmem:[#allocation2 + $0xe8] sm:$0xf]  ;;  %v2663_v45 = vld [vmem:[#allocation2 + $0xcc] sm:$0xf] }
 0x3d5   : > { %v1138_v37 = vpack.c.bf16 %v1130_v32, %v1130_v32  ;;  %v2453_v32 = vor.u32 %v2669_v30, %v2452_v28  ;;  %1648 = vmatpush.bf16.msra.mxu2 %v2445_v26  ;;  %v2646_v26 = vld [vmem:[#allocation2 + $0x44] sm:$0xf]  ;;  %v2366_v28 = vld [vmem:[#allocation2 + $0x50] sm:$0xf0]  ;;  %v2372_v30 = vld [vmem:[#allocation2 + $0x48] sm:$0xf] }
 0x3d6   : > { %v1282_v34 = vunpack.c.l.b16 %v1137_v31  ;;  %v2449_v31 = vor.u32 %v2666_v25, %v2446_v27  ;;  %v2648_v25 = vld [vmem:[#allocation2 + $0x4c] sm:$0xf0] }
 0x3d7   : > { %v1338_v40 = vunpack.c.l.b16 %v1138_v37  ;;  %v2664_v37 = vld [vmem:[#allocation2 + $0xcc] sm:$0xf0]  ;;  %v2365_v27 = vor.u32 %v2648_v25, %v2364_v24  ;;  %v2698_v24 = vld [vmem:[#allocation4 + $0xe0] sm:$0xff] }
 0x3d8   : > { %v1283_v36 = vpack.c.b16 %v1282_v34, %v1281_v33  ;;  %1270 = vmatpush.bf16.msrb.mxu1 %v2632_v46  ;;  %v2667_v33 = vld [vmem:[#allocation2 + $0xec] sm:$0xf]  ;;  %v2454_v34 = vld [vmem:[#allocation2 + $0xf8] sm:$0xf0] }
 0x3d9   : > { %v1340_v41 = vpack.c.b16 %v1339_v39, %v1338_v40  ;;  %v2457_v35 = vor.u32 %v2667_v33, %v2454_v34  ;;  %v2662_v39 = vld [vmem:[#allocation2 + $0xc4] sm:$0xf]  ;;  %v2438_v46 = vld [vmem:[#allocation2 + $0xd8] sm:$0xf0]  ;;  %v2647_v34 = vld [vmem:[#allocation2 + $0x4c] sm:$0xf] }
 0x3da   : > { %2310 = vmatmul.msk.bf16.vlgmr.msrb.gmra.mxu2 %vm1043_vm9, %v1283_v36  ;;  %v2428_v36 = vld [vmem:[#allocation2 + $0xc0] sm:$0xf]  ;;  %v2441_v47 = vor.u32 %v2663_v45, %v2438_v46  ;;  %v2643_v46 = vld [vmem:[#allocation2 + $0x2c] sm:$0xf] }
 0x3db   : > { %v2429_v40 = vor.u32 %v2664_v37, %v2428_v36  ;;  %v2348_v37 = vld [vmem:[#allocation2 + $0x20] sm:$0xf] }
 0x3dc   : > { %1383 = vmatpush.bf16.msra.mxu1 %v2637_v17  ;;  %v2412_v17 = vld [vmem:[#allocation2 + $0xa0] sm:$0xf] }
 0x3dd   : > { %v1342_v38 = vpop.permute.xlu0 %1341  ;;  %1649 = vmatpush.bf16.msra.mxu2 %v2429_v40  ;;  %v2642_v40 = vld [vmem:[#allocation2 + $0x24] sm:$0xf] }
 0x3de   : > { %1354 = vmatpush.bf16.msrb.mxu0 %v1342_v38  ;;  %v2430_v38 = vld [vmem:[#allocation2 + $0xd0] sm:$0xf0] }
 0x3e0   : > { %1384 = vmatpush.bf16.msra.mxu1 %v2636_v49  ;;  %v2658_v49 = vld [vmem:[#allocation2 + $0xa4] sm:$0xf] }
 0x3e1   : > { %2320 = vmatmul.msk.bf16.vlgmr.msrb.gmra.mxu0 %vm1043_vm9, %v1340_v41  ;;  %v2436_v41 = vld [vmem:[#allocation2 + $0xc8] sm:$0xf] }
 0x3e2   : > { %1676 = vmatpush.bf16.msra.mxu0 %v2453_v32  ;;  %v2369_v32 = vor.u32 %v2646_v26, %v2366_v28 }
 0x3e4   : > { %v1185_v42 = vpop.f32.mrf.mxu2 }
 0x3ec   : > { %v1187_v43 = vpop.f32.mrf.mxu2 }
 0x3ed   : > { %v1190_v44 = vpack.c.bf16 %v1187_v43, %v1185_v42  ;;  %v2665_v42 = vld [vmem:[#allocation2 + $0xd4] sm:$0xf0]  ;;  %v2433_v43 = vor.u32 %v2662_v39, %v2430_v38  ;;  %v2644_v39 = vld [vmem:[#allocation2 + $0x2c] sm:$0xf0] }
 0x3ee   : > { %v2349_v38 = vor.u32 %v2644_v39, %v2348_v37 }
 0x3ef   : > { %2299 = vmatmul.msk.bf16.vlgmr.msra.gmra.mxu3 %vm930_vm7, %v1190_v44  ;;  %v2437_v44 = vor.u32 %v2665_v42, %v2436_v41  ;;  %v2350_v41 = vld [vmem:[#allocation2 + $0x30] sm:$0xf0]  ;;  %v2356_v42 = vld [vmem:[#allocation2 + $0x28] sm:$0xf] }
 0x3f0   : > { %1662 = vmatpush.bf16.msra.mxu3 %v2449_v31  ;;  %v2649_v31 = vld [vmem:[#allocation2 + $0x54] sm:$0xf0] }
 0x3f1   : > { %1677 = vmatpush.bf16.msra.mxu0 %v2437_v44  ;;  %v2373_v33 = vor.u32 %v2649_v31, %v2372_v30  ;;  %v2353_v44 = vor.u32 %v2642_v40, %v2350_v41  ;;  %v2743_v40 = vld [vmem:[%s3408_s7] ss:$0 sm:$0xff] }
 0x3f4   : > { %1663 = vmatpush.bf16.msra.mxu3 %v2433_v43  ;;  %v2645_v43 = vld [vmem:[#allocation2 + $0x34] sm:$0xf0] }
 0x3f5   : > { %v2357_v45 = vor.u32 %v2645_v43, %v2356_v42 }
 0x446   : > { %v1242_v50 = vpop.f32.mrf.mxu0 }
 0x44e   : > { %v1244_v21 = vpop.f32.mrf.mxu0 }
 0x44f   : > { %v1247_v51 = vpack.c.bf16 %v1244_v21, %v1242_v50  ;;  %v2413_v50 = vor.u32 %v2660_v48, %v2412_v17  ;;  %v2414_v21 = vld [vmem:[#allocation2 + $0xb0] sm:$0xf0]  ;;  %v2332_v17 = vld [vmem:[#allocation2] sm:$0xf] }
 0x451   : > { %2309 = vmatmul.msk.bf16.vlgmr.msrb.gmra.mxu1 %vm930_vm7, %v1247_v51  ;;  %v2420_v51 = vld [vmem:[#allocation2 + $0xa8] sm:$0xf]  ;;  %1650 = vmatpush.bf16.msra.mxu2 %v2413_v50  ;;  %v2640_v50 = vld [vmem:[#allocation2 + $0xc] sm:$0xf0] }
 0x452   : > { %1690 = vmatpush.bf16.msrb.mxu1 %v2457_v35  ;;  %v2374_v35 = vld [vmem:[#allocation2 + $0x58] sm:$0xf0] }
 0x453   : > { %v2377_v36 = vor.u32 %v2647_v34, %v2374_v35  ;;  %v2742_v34 = vld [vmem:[%s3407_s6] ss:$0 sm:$0xff] }
 0x456   : > { %1691 = vmatpush.bf16.msrb.mxu1 %v2441_v47  ;;  %v2358_v47 = vld [vmem:[#allocation2 + $0x38] sm:$0xf0] }
 0x45d   : > { %v1299_v52 = vpop.f32.mrf.mxu2 }
 0x45e   : > { %v1356_v53 = vpop.f32.mrf.mxu0 }
 0x465   : > { %v1301_v54 = vpop.f32.mrf.mxu2 }
 0x466   : > { %v1304_v55 = vpack.c.bf16 %v1301_v54, %v1299_v52  ;;  %v1358_v56 = vpop.f32.mrf.mxu0  ;;  %v2661_v52 = vld [vmem:[#allocation2 + $0xb4] sm:$0xf0] }
 0x467   : > { %v1361_v57 = vpack.c.bf16 %v1358_v56, %v1356_v53  ;;  %v2417_v53 = vor.u32 %v2658_v49, %v2414_v21  ;;  %v2421_v54 = vor.u32 %v2661_v52, %v2420_v51  ;;  %v2422_v56 = vld [vmem:[#allocation2 + $0xb8] sm:$0xf0]  ;;  %v2361_v49 = vor.u32 %v2643_v46, %v2358_v47  ;;  %v2638_v21 = vld [vmem:[#allocation2 + $0x4] sm:$0xf]  ;;  %v2334_v51 = vld [vmem:[#allocation2 + $0x10] sm:$0xf0] }
 0x468   : > { %2319 = vmatmul.msk.bf16.vlgmr.msrb.gmra.mxu3 %vm930_vm7, %v1304_v55  ;;  %v2659_v55 = vld [vmem:[#allocation2 + $0xac] sm:$0xf]  ;;  %v2682_v46 = vld [vmem:[#allocation4 + $0x60] sm:$0xff]  ;;  %v2696_v47 = vld [vmem:[#allocation4 + $0xd0] sm:$0xff] }
 0x469   : > { %2329 = vmatmul.msk.bf16.vlgmr.msra.gmra.mxu1 %vm930_vm7, %v1361_v57  ;;  %v2425_v57 = vor.u32 %v2659_v55, %v2422_v56  ;;  %1664 = vmatpush.bf16.msra.mxu3 %v2417_v53  ;;  %v2333_v53 = vor.u32 %v2640_v50, %v2332_v17  ;;  %v2340_v55 = vld [vmem:[#allocation2 + $0x8] sm:$0xf]  ;;  %v2641_v56 = vld [vmem:[#allocation2 + $0x14] sm:$0xf0] }
 0x46a   : > { %1678 = vmatpush.bf16.msra.mxu0 %v2421_v54  ;;  %v2337_v54 = vor.u32 %v2638_v21, %v2334_v51  ;;  %v2673_v17 = vld [vmem:[#allocation4 + $0x18] sm:$0xff]  ;;  %v2695_v50 = vld [vmem:[#allocation4 + $0xc8] sm:$0xff]  ;;  %v2672_v21 = vld [vmem:[#allocation4 + $0x10] sm:$0xff] }
 0x46b   : > { %1692 = vmatpush.bf16.msrb.mxu1 %v2425_v57  ;;  %v2639_v57 = vld [vmem:[#allocation2 + $0xc] sm:$0xf]  ;;  %v2680_v51 = vld [vmem:[#allocation4 + $0x50] sm:$0xff] }
 0x472   : > { %v1215_v58 = vpop.f32.mrf.mxu3 }
 0x473   : > { %v1220_v2 = vadd.f32 %v1215_v58, %v1160_v63  ;;  %v2396_v58 = vld [vmem:[#allocation2 + $0x80] sm:$0xf]  ;;  %v2404_v63 = vld [vmem:[#allocation2 + $0x88] sm:$0xf] }
 0x47a   : > { %v1217_v61 = vpop.f32.mrf.mxu3 }
 0x47b   : > { %v1221_v9 = vadd.f32 %v1217_v61, %v1161_v6  ;;  %v2406_v6 = vld [vmem:[#allocation2 + $0x98] sm:$0xf0] }
 0x4ce   : > { %v1272_v59 = vpop.f32.mrf.mxu1 }
 0x4cf   : > { %v1277_v3 = vadd.f32 %v1272_v59, %v1220_v2  ;;  %v2656_v59 = vld [vmem:[#allocation2 + $0x8c] sm:$0xf0]  ;;  %v2657_v2 = vld [vmem:[#allocation2 + $0x94] sm:$0xf0] }
 0x4d0   : > { %v2397_v61 = vor.u32 %v2656_v59, %v2396_v58  ;;  %v2341_v58 = vor.u32 %v2641_v56, %v2340_v55  ;;  %v2342_v59 = vld [vmem:[#allocation2 + $0x18] sm:$0xf0]  ;;  %v2679_v55 = vld [vmem:[#allocation4 + $0x48] sm:$0xff]  ;;  %v2670_v56 = vld [vmem:[#allocation4] sm:$0xff] }
 0x4d2   : > { %1651 = vmatpush.bf16.msra.mxu2 %v2397_v61  ;;  %v2345_v61 = vor.u32 %v2639_v57, %v2342_v59  ;;  %v2678_v57 = vld [vmem:[#allocation4 + $0x40] sm:$0xff] }
 0x4d6   : > { %v1274_v62 = vpop.f32.mrf.mxu1 }
 0x4d7   : > { %v1278_v10 = vadd.f32 %v1274_v62, %v1221_v9  ;;  %v2398_v62 = vld [vmem:[#allocation2 + $0x90] sm:$0xf0]  ;;  %v2380_v9 = vld [vmem:[#allocation2 + $0x60] sm:$0xf] }
 0x4e6   : > { %v1386_v4 = vpop.f32.mrf.mxu1 }
 0x4eb   : > { %v1329_v5 = vpop.f32.mrf.mxu3 }
 0x4ec   : > { %v1334_v7 = vadd.f32 %v1329_v5, %v1277_v3  ;;  %v2401_v3 = vor.u32 %v2654_v60, %v2398_v62  ;;  %v2655_v5 = vld [vmem:[#allocation2 + $0x8c] sm:$0xf] }
 0x4ee   : > { %v3357_v8 = vadd.f32 %v1386_v4, %v1334_v7  ;;  %v1388_v13 = vpop.f32.mrf.mxu1  ;;  %v2405_v4 = vor.u32 %v2657_v2, %v2404_v63  ;;  %v2409_v7 = vor.u32 %v2655_v5, %v2406_v6  ;;  %1665 = vmatpush.bf16.msra.mxu3 %v2401_v3  ;;  %v2693_v63 = vld [vmem:[#allocation4 + $0xb8] sm:$0xff]  ;;  %v2692_v6 = vld [vmem:[#allocation4 + $0xb0] sm:$0xff] }
 0x4ef   : > { %v2701_v2 = vld [vmem:[#allocation4 + $0xf8] sm:$0xff] }
 0x4f0   : > { %1395 = vadd.xlane.f32.xlu2 %v3357_v8  ;;  %1679 = vmatpush.bf16.msra.mxu0 %v2405_v4  ;;  %v2677_v4 = vld [vmem:[#allocation4 + $0x38] sm:$0xff] }
 0x4f1   : > { %1693 = vmatpush.bf16.msrb.mxu1 %v2409_v7  ;;  %v2685_v5 = vld [vmem:[#allocation4 + $0x78] sm:$0xff]  ;;  %v2700_v7 = vld [vmem:[#allocation4 + $0xf0] sm:$0xff] }
 0x4f3   : > { %v1331_v11 = vpop.f32.mrf.mxu3 }
 0x4f4   : > { %v1335_v12 = vadd.f32 %v1331_v11, %v1278_v10  ;;  %v2652_v10 = vld [vmem:[#allocation2 + $0x6c] sm:$0xf0]  ;;  %v2650_v11 = vld [vmem:[#allocation2 + $0x64] sm:$0xf] }
 0x4f6   : > { %v3360_v29 = vadd.f32 %v1388_v13, %v1335_v12  ;;  %v2381_v12 = vor.u32 %v2652_v10, %v2380_v9  ;;  %v2382_v13 = vld [vmem:[#allocation2 + $0x70] sm:$0xf0] }
 0x4f8   : > { %1397 = vadd.xlane.f32.xlu1 %v3360_v29  ;;  %1652 = vmatpush.bf16.msra.mxu2 %v2381_v12  ;;  %v2684_v12 = vld [vmem:[#allocation4 + $0x70] sm:$0xff] }
 0x4fc   : > { %1653 = vmatpush.bf16.msra.mxu2 %v2365_v27 }
 0x500   : > { %1654 = vmatpush.bf16.msra.mxu2 %v2349_v38 }
 0x504   : > { %1655 = vmatpush.bf16.msra.mxu2 %v2333_v53  ;;  %v2694_v53 = vld [vmem:[#allocation4 + $0xc0] sm:$0xff] }
 0x508   : > { %1976 = vmatpush.bf16.msrb.mxu2 %v2677_v4 }
 0x563   : > { %v1396_v0 = vpop.xlane.xlu2 %1395 }
 0x564   : > { %v1399_v15 = vmul.f32 %v1396_v0, %v3001_v14  ;;  %v2388_v0 = vld [vmem:[#allocation2 + $0x68] sm:$0xf] }
 0x566   : > { %v3365_v16 = vsub.f32 %v3357_v8, %v1399_v15  ;;  %v2653_v15 = vld [vmem:[#allocation2 + $0x74] sm:$0xf0] }
 0x568   : > { %v1403_v1 = vmul.f32 %v3365_v16, %v3365_v16 }
 0x56a   : > { %1405 = vadd.xlane.f32.xlu0 %v1403_v1  ;;  %v2385_v1 = vor.u32 %v2650_v11, %v2382_v13  ;;  %v2676_v11 = vld [vmem:[#allocation4 + $0x30] sm:$0xff] }
 0x56b   : > { %v1398_v18 = vpop.xlane.xlu1 %1397  ;;  %1977 = vmatpush.bf16.msrb.mxu2 %v2676_v11 }
 0x56c   : > { %v1400_v19 = vmul.f32 %v1398_v18, %v3001_v14  ;;  %v2389_v18 = vor.u32 %v2653_v15, %v2388_v0  ;;  %1666 = vmatpush.bf16.msra.mxu3 %v2385_v1  ;;  %v2691_v15 = vld [vmem:[#allocation4 + $0xa8] sm:$0xff] }
 0x56d   : > { %v2699_v1 = vld [vmem:[#allocation4 + $0xe8] sm:$0xff] }
 0x56e   : > { %v3371_v20 = vsub.f32 %v3360_v29, %v1400_v19  ;;  %v2651_v19 = vld [vmem:[#allocation2 + $0x6c] sm:$0xf]  ;;  %1680 = vmatpush.bf16.msra.mxu0 %v2389_v18 }
 0x56f   : > { %v2683_v18 = vld [vmem:[#allocation4 + $0x68] sm:$0xff] }
 0x570   : > { %v1404_v22 = vmul.f32 %v3371_v20, %v3371_v20  ;;  %1667 = vmatpush.bf16.msra.mxu3 %v2369_v32 }
 0x572   : > { %1407 = vadd.xlane.f32.xlu2 %v1404_v22  ;;  %v2390_v22 = vld [vmem:[#allocation2 + $0x78] sm:$0xf0]  ;;  %1681 = vmatpush.bf16.msra.mxu0 %v2373_v33 }
 0x573   : > { %v2393_v23 = vor.u32 %v2651_v19, %v2390_v22 }
 0x574   : > { %1668 = vmatpush.bf16.msra.mxu3 %v2353_v44  ;;  %v2697_v44 = vld [vmem:[#allocation4 + $0xd8] sm:$0xff] }
 0x575   : > { %1694 = vmatpush.bf16.msrb.mxu1 %v2393_v23  ;;  %v2690_v23 = vld [vmem:[#allocation4 + $0xa0] sm:$0xff] }
 0x576   : > { %1682 = vmatpush.bf16.msra.mxu0 %v2357_v45  ;;  %v2674_v45 = vld [vmem:[#allocation4 + $0x20] sm:$0xff] }
 0x578   : > { %1669 = vmatpush.bf16.msra.mxu3 %v2337_v54  ;;  %v2671_v54 = vld [vmem:[#allocation4 + $0x8] sm:$0xff] }
 0x579   : > { %1695 = vmatpush.bf16.msrb.mxu1 %v2377_v36 }
 0x57a   : > { %1683 = vmatpush.bf16.msra.mxu0 %v2341_v58  ;;  %v1478_v58 = vld [vmem:[%s3410_s9] sm:$0xf] }
 0x57c   : > { %1990 = vmatpush.bf16.msrb.mxu3 %v2685_v5  ;;  %v1480_v5 = vperm.slane %v1478_v58, 0 }
 0x57d   : > { %1696 = vmatpush.bf16.msrb.mxu1 %v2361_v49  ;;  %v2687_v49 = vld [vmem:[#allocation4 + $0x88] sm:$0xff] }
 0x57e   : > { %2004 = vmatpush.bf16.msrb.mxu0 %v2693_v63 }
 0x580   : > { %1991 = vmatpush.bf16.msrb.mxu3 %v2684_v12 }
 0x581   : > { %1697 = vmatpush.bf16.msrb.mxu1 %v2345_v61  ;;  %v1482_v61 = vperm.slane %v1478_v58, 2 }
 0x582   : > { %2005 = vmatpush.bf16.msrb.mxu0 %v2692_v6  ;;  %v1481_v6 = vperm.slane %v1478_v58, 1 }
 0x584   : > { %1992 = vmatpush.bf16.msrb.mxu3 %v2683_v18 }
 0x585   : > { %2018 = vmatpush.bf16.msra.mxu1 %v2701_v2 }
 0x586   : > { %2006 = vmatpush.bf16.msrb.mxu0 %v2691_v15 }
 0x588   : > { %1993 = vmatpush.bf16.msrb.mxu3 %v2682_v46 }
 0x589   : > { %2019 = vmatpush.bf16.msra.mxu1 %v2700_v7 }
 0x58a   : > { %2007 = vmatpush.bf16.msrb.mxu0 %v2690_v23 }
 0x58d   : > { %2020 = vmatpush.bf16.msra.mxu1 %v2699_v1 }
 0x591   : > { %2021 = vmatpush.bf16.msra.mxu1 %v2698_v24 }
 0x595   : > { %2022 = vmatpush.bf16.msra.mxu1 %v2697_v44 }
 0x599   : > { %2023 = vmatpush.bf16.msra.mxu1 %v2696_v47 }
 0x59d   : > { %2024 = vmatpush.bf16.msra.mxu1 %v2695_v50 }
 0x5a1   : > { %2025 = vmatpush.bf16.msra.mxu1 %v2694_v53 }
 0x5dd   : > { %v1406_v48 = vpop.xlane.xlu0 %1405 }
 0x5de   : > { %v1409_v52 = vmul.f32 %v1406_v48, %v3001_v14  ;;  %v2681_v48 = vld [vmem:[#allocation4 + $0x58] sm:$0xff] }
 0x5df   : > { %1994 = vmatpush.bf16.msrb.mxu3 %v2681_v48 }
 0x5e0   : > { %v1411_v60 = vadd.f32 1e-05, %v1409_v52  ;;  %v2686_v52 = vld [vmem:[#allocation4 + $0x80] sm:$0xff] }
 0x5e2   : > { %2783 = vrsqrt.f32 %v1411_v60  ;;  %vm1419_vm12 = vweird.f32 %v1411_v60 }
 0x5e3   : > { %1995 = vmatpush.bf16.msrb.mxu3 %v2680_v51 }
 0x5e5   : > { %v1408_v62 = vpop.xlane.xlu2 %1407 }
 0x5e6   : > { %v1410_v3 = vmul.f32 %v1408_v62, %v3001_v14  ;;  %v2675_v14 = vld [vmem:[#allocation4 + $0x28] sm:$0xff]  ;;  %v1483_v62 = vperm.slane %v1478_v58, 3 }
 0x5e7   : > { %1978 = vmatpush.bf16.msrb.mxu2 %v2675_v14  ;;  %1996 = vmatpush.bf16.msrb.mxu3 %v2679_v55 }
 0x5e8   : > { %v2784_v9 = vpop.eup %2783  ;;  %v1412_v10 = vadd.f32 1e-05, %v1410_v3 }
 0x5e9   : > { %v1414_v13 = vmul.f32 %v2784_v9, %v1411_v60  ;;  %vm1420_vm11 = vweird.f32 %v2784_v9 }
 0x5ea   : > { %2785 = vrsqrt.f32 %v1412_v10  ;;  %vm1421_vm13 = vmor %vm1419_vm12, %vm1420_vm11  ;;  %vm1429_vm15 = vweird.f32 %v1412_v10 }
 0x5eb   : > { %v1415_v0 = vmul.f32 %v2784_v9, %v1414_v13  ;;  %1979 = vmatpush.bf16.msrb.mxu2 %v2674_v45  ;;  %1997 = vmatpush.bf16.msrb.mxu3 %v2678_v57 }
 0x5ed   : > { %v1416_v19 = vmul.f32 0.5, %v1415_v0 }
 0x5ef   : > { %v1417_v22 = vsub.f32 1.5, %v1416_v19  ;;  %1980 = vmatpush.bf16.msrb.mxu2 %v2673_v17 }
 0x5f0   : > { %v2786_v25 = vpop.eup %2785 }
 0x5f1   : > { %v1418_v26 = vmul.f32 %v2784_v9, %v1417_v22  ;;  %v1424_v27 = vmul.f32 %v2786_v25, %v1412_v10  ;;  %vm1430_vm14 = vweird.f32 %v2786_v25 }
 0x5f2   : > { %vm1431_vm0 = vmor %vm1429_vm15, %vm1430_vm14 }
 0x5f3   : > { %v1425_v28 = vmul.f32 %v2786_v25, %v1424_v27  ;;  %v1422_v30 = vsel %vm1421_vm13, %v2784_v9, %v1418_v26  ;;  %1981 = vmatpush.bf16.msrb.mxu2 %v2672_v21 }
 0x5f4   : > { %v1433_v33 = vmul.f32 %v1422_v30, %v3365_v16  ;;  %v2689_v16 = vld [vmem:[#allocation4 + $0x98] sm:$0xff] }
 0x5f5   : > { %v1426_v31 = vmul.f32 0.5, %v1425_v28  ;;  %2008 = vmatpush.bf16.msrb.mxu0 %v2689_v16 }
 0x5f6   : > { %v1438_v39 = vmul.f32 %v2742_v34, %v1433_v33  ;;  %v2744_v33 = vld [vmem:[%s3412_s11] ss:$0 sm:$0xff] }
 0x5f7   : > { %v1427_v32 = vsub.f32 1.5, %v1426_v31  ;;  %1982 = vmatpush.bf16.msrb.mxu2 %v2671_v54 }
 0x5f8   : > { %v1443_v41 = vadd.f32 %v2743_v40, %v1438_v39 }
 0x5f9   : > { %v1428_v35 = vmul.f32 %v2786_v25, %v1427_v32 }
 0x5fb   : > { %v1432_v36 = vsel %vm1431_vm0, %v2786_v25, %v1428_v35  ;;  %1983 = vmatpush.bf16.msrb.mxu2 %v2670_v56 }
 0x5fc   : > { %v1434_v37 = vmul.f32 %v1432_v36, %v3371_v20  ;;  %v2688_v20 = vld [vmem:[#allocation4 + $0x90] sm:$0xff] }
 0x5fd   : > { %2009 = vmatpush.bf16.msrb.mxu0 %v2688_v20 }
 0x5fe   : > { %v1439_v38 = vmul.f32 %v2742_v34, %v1434_v37 }
 0x600   : > { %v1444_v42 = vadd.f32 %v2743_v40, %v1439_v38 }
 0x601   : > { %2010 = vmatpush.bf16.msrb.mxu0 %v2687_v49 }
 0x602   : > { %v1445_v43 = vpack.c.bf16 %v1444_v42, %v1443_v41 }
 0x604   : > { %1656 = vmatmul.bf16.vlgmr.msra.gmra.mxu2 %v1445_v43  ;;  %1670 = vmatmul.bf16.vlgmr.msra.gmra.mxu3 %v1445_v43 }
 0x605   : > { %1684 = vmatmul.bf16.vlgmr.msra.gmra.mxu0 %v1445_v43  ;;  %1698 = vmatmul.bf16.vlgmr.msrb.gmra.mxu1 %v1445_v43 }
 0x606   : > { %2011 = vmatpush.bf16.msrb.mxu0 %v2686_v52 }
 0x682   : > { %v1685_v59 = vpop.f32.mrf.mxu0  ;;  %v1699_v60 = vpop.f32.mrf.mxu1 }
 0x683   : > { %v1686_v3 = vadd.f32 %v1685_v59, %v1482_v61  ;;  %v1700_v4 = vadd.f32 %v1699_v60, %v1483_v62 }
 0x685   : > { %v1706_v12 = vmax.f32 %v1686_v3, 0.0  ;;  %v1707_v13 = vmax.f32 %v1700_v4, 0.0 }
 0x687   : > { %v1657_v63 = vpop.f32.mrf.mxu2  ;;  %v1671_v2 = vpop.f32.mrf.mxu3 }
 0x688   : > { %v1658_v1 = vadd.f32 %v1657_v63, %v1480_v5  ;;  %v1672_v14 = vadd.f32 %v1671_v2, %v1481_v6 }
 0x68a   : > { %v1687_v7 = vpop.f32.mrf.mxu0  ;;  %v1701_v9 = vpop.f32.mrf.mxu1  ;;  %v1704_v26 = vmax.f32 %v1658_v1, 0.0  ;;  %v1705_v27 = vmax.f32 %v1672_v14, 0.0 }
 0x68b   : > { %v1688_v10 = vadd.f32 %v1687_v7, %v1482_v61  ;;  %v1702_v11 = vadd.f32 %v1701_v9, %v1483_v62 }
 0x68d   : > { %v1710_v0 = vmax.f32 %v1688_v10, 0.0  ;;  %v1711_v15 = vmax.f32 %v1702_v11, 0.0 }
 0x68f   : > { %v1714_v18 = vpack.c.bf16 %v1710_v0, %v1706_v12  ;;  %v1715_v19 = vpack.c.bf16 %v1711_v15, %v1707_v13  ;;  %v1659_v22 = vpop.f32.mrf.mxu2  ;;  %v1673_v23 = vpop.f32.mrf.mxu3 }
 0x690   : > { %v1660_v24 = vadd.f32 %v1659_v22, %v1480_v5  ;;  %v1674_v25 = vadd.f32 %v1673_v23, %v1481_v6 }
 0x691   : > { %2012 = vmatmul.bf16.vlgmr.msrb.gmra.mxu0 %v1714_v18  ;;  %2026 = vmatmul.bf16.vlgmr.msra.gmra.mxu1 %v1715_v19 }
 0x692   : > { %v1708_v28 = vmax.f32 %v1660_v24, 0.0  ;;  %v1709_v30 = vmax.f32 %v1674_v25, 0.0 }
 0x694   : > { %v1712_v31 = vpack.c.bf16 %v1708_v28, %v1704_v26  ;;  %v1713_v32 = vpack.c.bf16 %v1709_v30, %v1705_v27 }
 0x696   : > { %1984 = vmatmul.bf16.vlgmr.msrb.gmra.mxu2 %v1712_v31  ;;  %1998 = vmatmul.bf16.vlgmr.msrb.gmra.mxu3 %v1713_v32 }
 0x70e   : > { %v2013_v37 = vpop.f32.mrf.mxu0  ;;  %v2027_v40 = vpop.f32.mrf.mxu1 }
 0x716   : > { %v2015_v46 = vpop.f32.mrf.mxu0  ;;  %v2029_v47 = vpop.f32.mrf.mxu1 }
 0x719   : > { %v1985_v34 = vpop.f32.mrf.mxu2  ;;  %v1999_v35 = vpop.f32.mrf.mxu3 }
 0x71a   : > { %v1986_v36 = vadd.f32 %v2744_v33, %v1985_v34 }
 0x71c   : > { %v2000_v39 = vadd.f32 %v1999_v35, %v1986_v36 }
 0x71e   : > { %v2014_v38 = vadd.f32 %v2013_v37, %v2000_v39 }
 0x720   : > { %v2028_v41 = vadd.f32 %v2027_v40, %v2014_v38 }
 0x721   : > { %v1987_v42 = vpop.f32.mrf.mxu2  ;;  %v2001_v44 = vpop.f32.mrf.mxu3 }
 0x722   : > { %v2032_v43 = vadd.f32 %v2028_v41, %v3357_v8  ;;  %v1988_v16 = vadd.f32 %v2744_v33, %v1987_v42 }
 0x724   : > { %2034 = vst [vmem:[%s501_s28] sm:$0xff] %v2032_v43  ;;  %v2002_v45 = vadd.f32 %v2001_v44, %v1988_v16 }
 0x726   : > { %v2016_v20 = vadd.f32 %v2015_v46, %v2002_v45 }
 0x728   : > { %v2030_v17 = vadd.f32 %v2029_v47, %v2016_v20 }
 0x72a   : > { %v2033_v48 = vadd.f32 %v2030_v17, %v3360_v29 }
 0x72c   : > { %2035 = vst [vmem:[%s501_s28 + $0x8] sm:$0xff] %v2033_v48 }
 0x72d PF: > { %s26_s29 = sadd.s32 1, %s2861_s29  }
 0x72e   : > { %p23_p7 = scmp.ge.s32.totalorder %s26_s29, 4  }
 0x730   :  { %25 = sbr.rel (!%p23_p7) target bundleno = 2 (0x2), region = 115 }
 0x735   :  { %2057 = vsyncpa [#allocation3], 1 }
 0x736   :  { %2059 = vsyncpa [#allocation3 + $0x1], 1 }
 0x737   :  { %2060 = vsyncpa [#allocation5], 1 }

</bundles_post_ra>
